<compile_context>
chip_gen: v7x
topology: tpu7x:2x2x1
jax: 0.10.0
libtpu: 0.0.40
codegen_flags: <defaults>
</compile_context>

<pallas_src>
import functools

import jax
import jax.numpy as jnp
from jax.experimental import pallas as pl
from jax.experimental.pallas import tpu as pltpu

LN_EPS = 1e-5  # nn.LayerNorm default


def _gelu(x):
    # TODO(synk): nn.GELU default is erf-based; tanh approximation used here
    # for a Mosaic-safe transcendental (max abs error ~3e-4).
    c = jnp.asarray(0.7978845608028654, x.dtype)  # sqrt(2/pi)
    return 0.5 * x * (1.0 + jnp.tanh(c * (x + 0.044715 * x * x * x)))


def _layer_norm(x, g, b):
    mu = jnp.mean(x, axis=-1, keepdims=True)
    var = jnp.mean((x - mu) ** 2, axis=-1, keepdims=True)
    return (x - mu) * jax.lax.rsqrt(var + LN_EPS) * g + b


# ---------------------------------------------------------------------------
# Fused kernel: patchify + all blocks + head, grid over layers.
# ---------------------------------------------------------------------------
def fused_vit_kernel(
    patches_ref, pw_ref, pb_ref, pos_ref, cls_ref,          # patchify / embed
    lvec_ref, wqkv_ref, wproj_ref, w1_ref, b1_ref, w2_ref,   # per-layer (stacked)
    lng_ref, lnb_ref, hw1_ref, hb1_ref, hw2_ref, hb2_ref,    # final LN + head
    o_ref,                                                   # (B, NCP) padded output
    x_scr,                                                   # VMEM (B*S, D) resident x
    *, B, S, T, D, num_heads, head_dim):

    layer = pl.program_id(0)

    # ---- layer 0 only: patchify + pos + cls -> resident x ----------------
    @pl.when(layer == 0)
    def _init():
        # (B*T, K) @ (K, D) + bias   (Conv2d with kernel=stride=patch)
        tok = (jnp.dot(patches_ref[...], pw_ref[...],
                       preferred_element_type=jnp.float32) + pb_ref[...])
        rows = []
        for b in range(B):                                   # static unroll (tiny B)
            rows.append(cls_ref[...])                        # (1, D) cls (no pos)
            rows.append(tok[b * T:(b + 1) * T, :] + pos_ref[...])   # (T, D)
        x_scr[...] = jnp.concatenate(rows, axis=0)           # (B*S, D)

    # ---- per-layer packed (1, D) vectors ----------------------------------
    lvec = lvec_ref[0]                                       # (6, D)
    ln1g, ln1b = lvec[0:1], lvec[1:2]
    bproj = lvec[2:3]
    ln2g, ln2b = lvec[3:4], lvec[4:5]
    b2 = lvec[5:6]

    # ---- one pre-norm ViT block on the whole flattened batch -------------
    x = x_scr[...]                                           # (B*S, D)

    # Multi-head self-attention.  Fused QKV projection on all B*S rows.
    xn = _layer_norm(x, ln1g, ln1b)
    qkv = jnp.dot(xn, wqkv_ref[0], preferred_element_type=jnp.float32)  # (B*S, 3D)
    # NOTE: 1/sqrt(head_dim) is already folded into the q columns of wqkv.
    attn_rows = []
    for b in range(B):                                       # static unroll (tiny B)
        qkv_b = qkv[b * S:(b + 1) * S, :]                    # (S, 3D)
        heads = []
        for h in range(num_heads):                           # static unroll
            qh = qkv_b[:, h * head_dim:(h + 1) * head_dim]
            kh = qkv_b[:, D + h * head_dim:D + (h + 1) * head_dim]
            vh = qkv_b[:, 2 * D + h * head_dim:2 * D + (h + 1) * head_dim]
            s = jax.lax.dot_general(qh, kh, (((1,), (1,)), ((), ())),
                                    preferred_element_type=jnp.float32)  # (S, S)
            s = s - jnp.max(s, axis=-1, keepdims=True)
            e = jnp.exp(s)
            p = e * pl.reciprocal(jnp.sum(e, axis=-1, keepdims=True), approx=True)
            heads.append(jnp.dot(p, vh, preferred_element_type=jnp.float32))
        attn_rows.append(jnp.concatenate(heads, axis=-1))    # (S, D)
    attn = jnp.concatenate(attn_rows, axis=0)                # (B*S, D)
    x = x + (jnp.dot(attn, wproj_ref[0], preferred_element_type=jnp.float32)
             + bproj)

    # MLP (4x expansion), again on all B*S rows at once.
    xn2 = _layer_norm(x, ln2g, ln2b)
    hdn = jnp.dot(xn2, w1_ref[0], preferred_element_type=jnp.float32) + b1_ref[0]
    hdn = _gelu(hdn)
    x = x + jnp.dot(hdn, w2_ref[0], preferred_element_type=jnp.float32) + b2
    x_scr[...] = x

    # ---- last layer only: final LN + mean pool + MLP head ----------------
    @pl.when(layer == pl.num_programs(0) - 1)
    def _head():
        xl = _layer_norm(x, lng_ref[...], lnb_ref[...])      # (B*S, D)
        pooled = jnp.concatenate(
            [jnp.mean(xl[b * S:(b + 1) * S, :], axis=0, keepdims=True)
             for b in range(B)], axis=0)                     # (B, D)
        hh = (jnp.dot(pooled, hw1_ref[...], preferred_element_type=jnp.float32)
              + hb1_ref[...])
        hh = _gelu(hh)
        o_ref[...] = (jnp.dot(hh, hw2_ref[...], preferred_element_type=jnp.float32)
                      + hb2_ref[...])                        # (B, NCP) lane-dense


# ---------------------------------------------------------------------------
# Wrapper
# ---------------------------------------------------------------------------
def mae_vit_forward(noise, clean, params, cfg):
    del clean  # unused by MAE_ViT_gasf_fc.forward (matches PyTorch reference)
    B, C, Himg, Wimg = noise.shape
    p = cfg["patch_size"]
    Hp, Wp = Himg // p, Wimg // p
    T = Hp * Wp
    D = cfg["emb_dim"]
    S = T + 1
    K = C * p * p
    Hh = cfg["num_head"]
    hd = D // Hh
    nc = cfg["numclass"]
    L = cfg["num_layer"]
    NCP = 128  # pad head output to a full lane group for lane-dense stores

    # glue: Conv2d(kernel=stride=patch) on NCHW -> im2col rows, token order (h w)
    patches = (noise.reshape(B, C, Hp, p, Wp, p)
               .transpose(0, 2, 4, 1, 3, 5)                  # (B, Hp, Wp, C, p, p)
               .reshape(B * T, K))

    # fold the 1/sqrt(head_dim) attention scale into the q columns of Wqkv
    wqkv = params["wqkv"].at[:, :, :D].multiply(hd ** -0.5)

    # pack the six per-layer (1, D) vectors into one (L, 6, D) tensor
    lvecs = jnp.concatenate(
        [params["ln1_g"], params["ln1_b"], params["bproj"],
         params["ln2_g"], params["ln2_b"], params["b2"]], axis=1)

    # zero-pad head fc2 to 128 output lanes; slice back to nc after the kernel
    head_w2 = jnp.zeros((4 * D, NCP), jnp.float32).at[:, :nc].set(params["head_w2"])
    head_b2 = jnp.zeros((1, NCP), jnp.float32).at[:, :nc].set(params["head_b2"])

    kernel = functools.partial(fused_vit_kernel, B=B, S=S, T=T, D=D,
                               num_heads=Hh, head_dim=hd)

    def const(*shape):
        return pl.BlockSpec(shape, lambda l: (0,) * len(shape))

    def per_layer(*shape):
        return pl.BlockSpec((1,) + shape, lambda l: (l,) + (0,) * len(shape))

    out = pl.pallas_call(
        kernel,
        grid=(L,),
        in_specs=[
            const(B * T, K),            # patches
            const(K, D),                # patch_w
            const(1, D),                # patch_b
            const(T, D),                # pos_embedding
            const(1, D),                # cls token
            per_layer(6, D),            # packed [ln1_g, ln1_b, bproj, ln2_g, ln2_b, b2]
            per_layer(D, 3 * D),        # wqkv (scale folded)
            per_layer(D, D),            # wproj
            per_layer(D, 4 * D),        # mlp w1
            per_layer(1, 4 * D),        # mlp b1
            per_layer(4 * D, D),        # mlp w2
            const(1, D), const(1, D),             # final LN gamma/beta
            const(D, 4 * D), const(1, 4 * D),     # head fc1
            const(4 * D, NCP), const(1, NCP),     # head fc2 (lane-padded)
        ],
        out_specs=pl.BlockSpec((B, NCP), lambda l: (0, 0)),
        out_shape=jax.ShapeDtypeStruct((B, NCP), jnp.float32),
        scratch_shapes=[pltpu.VMEM((B * S, D), jnp.float32)],
        compiler_params=pltpu.CompilerParams(
            dimension_semantics=("arbitrary",)),
    )(patches, params["patch_w"], params["patch_b"], params["pos_embedding"],
      params["cls_token"], lvecs, wqkv, params["wproj"],
      params["w1"], params["b1"], params["w2"],
      params["ln_g"], params["ln_b"], params["head_w1"], params["head_b1"],
      head_w2, head_b2)

    return out[:, :nc]


# ---------------------------------------------------------------------------
# Deterministic synthetic parameters (shapes as in the module's __init__,
# per-layer weights pre-stacked with a leading layer axis; qkv fused).
# ---------------------------------------------------------------------------
def init_params(key, cfg):
    D = cfg["emb_dim"]
    C = cfg["in_channel"]
    p = cfg["patch_size"]
    T = (cfg["image_size"] // p) ** 2
    L = cfg["num_layer"]
    nc = cfg["numclass"]

    state = {"key": key}

    def w(shape, std=0.02):
        state["key"], sub = jax.random.split(state["key"])
        return jax.random.normal(sub, shape, jnp.float32) * std

    params = {
        "cls_token": w((1, D)),
        "pos_embedding": w((T, D)),
        "patch_w": w((C * p * p, D)),       # Conv2d weight flattened (c,kh,kw) x D
        "patch_b": w((1, D)),
        # per-layer, stacked on axis 0 (qkv_bias=False as in timm default)
        "ln1_g": jnp.ones((L, 1, D), jnp.float32),
        "ln1_b": jnp.zeros((L, 1, D), jnp.float32),
        "wqkv": w((L, D, 3 * D)),           # fused [Wq | Wk | Wv]
        "wproj": w((L, D, D)),
        "bproj": w((L, 1, D)),
        "ln2_g": jnp.ones((L, 1, D), jnp.float32),
        "ln2_b": jnp.zeros((L, 1, D), jnp.float32),
        "w1": w((L, D, 4 * D)),
        "b1": w((L, 1, 4 * D)),
        "w2": w((L, 4 * D, D)),
        "b2": w((L, 1, D)),
        # final LayerNorm + MLP head
        "ln_g": jnp.ones((1, D), jnp.float32),
        "ln_b": jnp.zeros((1, D), jnp.float32),
        "head_w1": w((D, 4 * D)),
        "head_b1": w((1, 4 * D)),
        "head_w2": w((4 * D, nc)),
        "head_b2": w((1, nc)),
    }
    return params


if __name__ == "__main__":
    cfg = dict(image_size=16, patch_size=4, emb_dim=32, in_channel=3,
               num_layer=2, num_head=4, numclass=11)
    key = jax.random.PRNGKey(0)
    kp, kn, kc = jax.random.split(key, 3)
    params = init_params(kp, cfg)

    noise = jax.random.normal(
        kn, (2, cfg["in_channel"], cfg["image_size"], cfg["image_size"]), jnp.float32)
    clean = jax.random.normal(
        kc, (2, cfg["in_channel"], cfg["image_size"], cfg["image_size"]), jnp.float32)

    out = mae_vit_forward(noise, clean, params, cfg)
    out = jax.block_until_ready(out)
    assert out.shape == (2, cfg["numclass"]), out.shape
    assert bool(jnp.all(jnp.isfinite(out)))
    print("KERNEL_OK")
</pallas_src>

<mosaic_0001>
module attributes {stable_mosaic.version = 11 : i64} {
  func.func @fused_vit_kernel(%arg0: i32, %arg1: memref<32x48xf32, #tpu.memory_space<vmem>>, %arg2: memref<48x32xf32, #tpu.memory_space<vmem>>, %arg3: memref<1x32xf32, #tpu.memory_space<vmem>>, %arg4: memref<16x32xf32, #tpu.memory_space<vmem>>, %arg5: memref<1x32xf32, #tpu.memory_space<vmem>>, %arg6: memref<1x6x32xf32, #tpu.memory_space<vmem>>, %arg7: memref<1x32x96xf32, #tpu.memory_space<vmem>>, %arg8: memref<1x32x32xf32, #tpu.memory_space<vmem>>, %arg9: memref<1x32x128xf32, #tpu.memory_space<vmem>>, %arg10: memref<1x1x128xf32, #tpu.memory_space<vmem>>, %arg11: memref<1x128x32xf32, #tpu.memory_space<vmem>>, %arg12: memref<1x32xf32, #tpu.memory_space<vmem>>, %arg13: memref<1x32xf32, #tpu.memory_space<vmem>>, %arg14: memref<32x128xf32, #tpu.memory_space<vmem>>, %arg15: memref<1x128xf32, #tpu.memory_space<vmem>>, %arg16: memref<128x128xf32, #tpu.memory_space<vmem>>, %arg17: memref<1x128xf32, #tpu.memory_space<vmem>>, %arg18: memref<2x128xf32, #tpu.memory_space<vmem>>, %arg19: memref<34x32xf32, #tpu.memory_space<vmem>>) attributes {dimension_semantics = [#tpu.dimension_semantics<arbitrary>], iteration_bounds = array<i64: 2>, scalar_prefetch = 0 : i64, scratch_operands = 1 : i64, tpu.core_type = #tpu.core_type<tc>, window_params = [{pipeline_mode = #tpu.pipeline_mode<synchronous>, transform_indices = @transform_0, window_bounds = array<i64: 32, 48>}, {pipeline_mode = #tpu.pipeline_mode<synchronous>, transform_indices = @transform_1, window_bounds = array<i64: 48, 32>}, {pipeline_mode = #tpu.pipeline_mode<synchronous>, transform_indices = @transform_2, window_bounds = array<i64: 1, 32>}, {pipeline_mode = #tpu.pipeline_mode<synchronous>, transform_indices = @transform_3, window_bounds = array<i64: 16, 32>}, {pipeline_mode = #tpu.pipeline_mode<synchronous>, transform_indices = @transform_4, window_bounds = array<i64: 1, 32>}, {transform_indices = @transform_5, window_bounds = array<i64: 1, 6, 32>}, {transform_indices = @transform_6, window_bounds = array<i64: 1, 32, 96>}, {transform_indices = @transform_7, window_bounds = array<i64: 1, 32, 32>}, {transform_indices = @transform_8, window_bounds = array<i64: 1, 32, 128>}, {transform_indices = @transform_9, window_bounds = array<i64: 1, 1, 128>}, {transform_indices = @transform_10, window_bounds = array<i64: 1, 128, 32>}, {pipeline_mode = #tpu.pipeline_mode<synchronous>, transform_indices = @transform_11, window_bounds = array<i64: 1, 32>}, {pipeline_mode = #tpu.pipeline_mode<synchronous>, transform_indices = @transform_12, window_bounds = array<i64: 1, 32>}, {pipeline_mode = #tpu.pipeline_mode<synchronous>, transform_indices = @transform_13, window_bounds = array<i64: 32, 128>}, {pipeline_mode = #tpu.pipeline_mode<synchronous>, transform_indices = @transform_14, window_bounds = array<i64: 1, 128>}, {pipeline_mode = #tpu.pipeline_mode<synchronous>, transform_indices = @transform_15, window_bounds = array<i64: 128, 128>}, {pipeline_mode = #tpu.pipeline_mode<synchronous>, transform_indices = @transform_16, window_bounds = array<i64: 1, 128>}, {pipeline_mode = #tpu.pipeline_mode<synchronous>, transform_indices = @transform_17, window_bounds = array<i64: 2, 128>}]} {
    %c0_i32 = arith.constant 0 : i32
    %0 = arith.cmpi eq, %arg0, %c0_i32 : i32
    %1 = arith.extui %0 : i1 to i32
    %c0_i32_0 = arith.constant 0 : i32
    %2 = arith.cmpi ne, %1, %c0_i32_0 : i32
    scf.if %2 {
      %c0_72 = arith.constant 0 : index
      %c0_73 = arith.constant 0 : index
      %220 = vector.load %arg1[%c0_72, %c0_73] : memref<32x48xf32, #tpu.memory_space<vmem>>, vector<32x48xf32>
      %c0_74 = arith.constant 0 : index
      %c0_75 = arith.constant 0 : index
      %221 = vector.load %arg2[%c0_74, %c0_75] : memref<48x32xf32, #tpu.memory_space<vmem>>, vector<48x32xf32>
      %cst_76 = arith.constant dense<0.000000e+00> : vector<32x32xf32>
      %222 = tpu.matmul %220, %221, %cst_76 {dimension_numbers = #tpu.dot_dimension_numbers<[1], [0], [0], [1], [0, 0, 1, 1], [], []>} : vector<32x48xf32>, vector<48x32xf32>, vector<32x32xf32> -> vector<32x32xf32>
      %c0_77 = arith.constant 0 : index
      %c0_78 = arith.constant 0 : index
      %223 = vector.load %arg3[%c0_77, %c0_78] : memref<1x32xf32, #tpu.memory_space<vmem>>, vector<1x32xf32>
      %224 = vector.broadcast %223 : vector<1x32xf32> to vector<32x32xf32>
      %225 = arith.addf %222, %224 : vector<32x32xf32>
      %c0_79 = arith.constant 0 : index
      %c0_80 = arith.constant 0 : index
      %226 = vector.load %arg5[%c0_79, %c0_80] : memref<1x32xf32, #tpu.memory_space<vmem>>, vector<1x32xf32>
      %227 = vector.extract_strided_slice %225 {offsets = [0, 0], sizes = [16, 32], strides = [1, 1]} : vector<32x32xf32> to vector<16x32xf32>
      %c0_81 = arith.constant 0 : index
      %c0_82 = arith.constant 0 : index
      %228 = vector.load %arg4[%c0_81, %c0_82] : memref<16x32xf32, #tpu.memory_space<vmem>>, vector<16x32xf32>
      %229 = arith.addf %227, %228 : vector<16x32xf32>
      %c0_83 = arith.constant 0 : index
      %c0_84 = arith.constant 0 : index
      %230 = vector.load %arg5[%c0_83, %c0_84] : memref<1x32xf32, #tpu.memory_space<vmem>>, vector<1x32xf32>
      %231 = vector.extract_strided_slice %225 {offsets = [16, 0], sizes = [16, 32], strides = [1, 1]} : vector<32x32xf32> to vector<16x32xf32>
      %c0_85 = arith.constant 0 : index
      %c0_86 = arith.constant 0 : index
      %232 = vector.load %arg4[%c0_85, %c0_86] : memref<16x32xf32, #tpu.memory_space<vmem>>, vector<16x32xf32>
      %233 = arith.addf %231, %232 : vector<16x32xf32>
      %234 = tpu.concatenate %226, %229, %230, %233 in 0 : vector<1x32xf32>, vector<16x32xf32>, vector<1x32xf32>, vector<16x32xf32> -> vector<34x32xf32>
      %c0_87 = arith.constant 0 : index
      %c0_88 = arith.constant 0 : index
      %235 = vector.load %arg19[%c0_87, %c0_88] : memref<34x32xf32, #tpu.memory_space<vmem>>, vector<34x32xf32>
      tpu.vector_store %arg19[%c0_87, %c0_88], %234 {strides = array<i32>} : memref<34x32xf32, #tpu.memory_space<vmem>>, vector<34x32xf32>,
    } else {
    }
    %c0 = arith.constant 0 : index
    %c0_1 = arith.constant 0 : index
    %c0_2 = arith.constant 0 : index
    %3 = vector.load %arg6[%c0, %c0_1, %c0_2] : memref<1x6x32xf32, #tpu.memory_space<vmem>>, vector<1x6x32xf32>
    %4 = vector.shape_cast %3 : vector<1x6x32xf32> to vector<6x32xf32>
    %5 = vector.extract_strided_slice %4 {offsets = [0, 0], sizes = [1, 32], strides = [1, 1]} : vector<6x32xf32> to vector<1x32xf32>
    %6 = vector.extract_strided_slice %4 {offsets = [1, 0], sizes = [1, 32], strides = [1, 1]} : vector<6x32xf32> to vector<1x32xf32>
    %7 = vector.extract_strided_slice %4 {offsets = [2, 0], sizes = [1, 32], strides = [1, 1]} : vector<6x32xf32> to vector<1x32xf32>
    %8 = vector.extract_strided_slice %4 {offsets = [3, 0], sizes = [1, 32], strides = [1, 1]} : vector<6x32xf32> to vector<1x32xf32>
    %9 = vector.extract_strided_slice %4 {offsets = [4, 0], sizes = [1, 32], strides = [1, 1]} : vector<6x32xf32> to vector<1x32xf32>
    %10 = vector.extract_strided_slice %4 {offsets = [5, 0], sizes = [1, 32], strides = [1, 1]} : vector<6x32xf32> to vector<1x32xf32>
    %c0_3 = arith.constant 0 : index
    %c0_4 = arith.constant 0 : index
    %11 = vector.load %arg19[%c0_3, %c0_4] : memref<34x32xf32, #tpu.memory_space<vmem>>, vector<34x32xf32>
    %cst = arith.constant dense<0.000000e+00> : vector<34xf32>
    %12 = vector.multi_reduction <add>, %11, %cst [1] : vector<34x32xf32> to vector<34xf32>
    %13 = vector.shape_cast %12 : vector<34xf32> to vector<34x1xf32>
    %cst_5 = arith.constant 3.200000e+01 : f32
    %14 = vector.broadcast %cst_5 : f32 to vector<34x1xf32>
    %15 = arith.divf %13, %14 : vector<34x1xf32>
    %16 = vector.broadcast %15 : vector<34x1xf32> to vector<34x32xf32>
    %17 = arith.subf %11, %16 : vector<34x32xf32>
    %18 = arith.mulf %17, %17 : vector<34x32xf32>
    %cst_6 = arith.constant dense<0.000000e+00> : vector<34xf32>
    %19 = vector.multi_reduction <add>, %18, %cst_6 [1] : vector<34x32xf32> to vector<34xf32>
    %20 = vector.shape_cast %19 : vector<34xf32> to vector<34x1xf32>
    %cst_7 = arith.constant 3.200000e+01 : f32
    %21 = vector.broadcast %cst_7 : f32 to vector<34x1xf32>
    %22 = arith.divf %20, %21 : vector<34x1xf32>
    %23 = vector.broadcast %15 : vector<34x1xf32> to vector<34x32xf32>
    %24 = arith.subf %11, %23 : vector<34x32xf32>
    %cst_8 = arith.constant 9.99999974E-6 : f32
    %25 = vector.broadcast %cst_8 : f32 to vector<34x1xf32>
    %26 = arith.addf %22, %25 : vector<34x1xf32>
    %27 = math.rsqrt %26 : vector<34x1xf32>
    %28 = vector.broadcast %27 : vector<34x1xf32> to vector<34x32xf32>
    %29 = arith.mulf %24, %28 : vector<34x32xf32>
    %30 = vector.broadcast %5 : vector<1x32xf32> to vector<34x32xf32>
    %31 = arith.mulf %29, %30 : vector<34x32xf32>
    %32 = vector.broadcast %6 : vector<1x32xf32> to vector<34x32xf32>
    %33 = arith.addf %31, %32 : vector<34x32xf32>
    %c0_9 = arith.constant 0 : index
    %c0_10 = arith.constant 0 : index
    %c0_11 = arith.constant 0 : index
    %34 = vector.load %arg7[%c0_9, %c0_10, %c0_11] : memref<1x32x96xf32, #tpu.memory_space<vmem>>, vector<1x32x96xf32>
    %35 = vector.shape_cast %34 : vector<1x32x96xf32> to vector<32x96xf32>
    %cst_12 = arith.constant dense<0.000000e+00> : vector<34x96xf32>
    %36 = tpu.matmul %33, %35, %cst_12 {dimension_numbers = #tpu.dot_dimension_numbers<[1], [0], [0], [1], [0, 0, 1, 1], [], []>} : vector<34x32xf32>, vector<32x96xf32>, vector<34x96xf32> -> vector<34x96xf32>
    %37 = vector.extract_strided_slice %36 {offsets = [0, 0], sizes = [17, 96], strides = [1, 1]} : vector<34x96xf32> to vector<17x96xf32>
    %38 = vector.extract_strided_slice %37 {offsets = [0, 0], sizes = [17, 8], strides = [1, 1]} : vector<17x96xf32> to vector<17x8xf32>
    %39 = vector.extract_strided_slice %37 {offsets = [0, 32], sizes = [17, 8], strides = [1, 1]} : vector<17x96xf32> to vector<17x8xf32>
    %40 = vector.extract_strided_slice %37 {offsets = [0, 64], sizes = [17, 8], strides = [1, 1]} : vector<17x96xf32> to vector<17x8xf32>
    %cst_13 = arith.constant dense<0.000000e+00> : vector<17x17xf32>
    %41 = tpu.matmul %38, %39, %cst_13 {dimension_numbers = #tpu.dot_dimension_numbers<[1], [1], [0], [0], [0, 0, 1, 0], [], []>} : vector<17x8xf32>, vector<17x8xf32>, vector<17x17xf32> -> vector<17x17xf32>
    %cst_14 = arith.constant dense<0xFF800000> : vector<17xf32>
    %42 = vector.multi_reduction <maximumf>, %41, %cst_14 [1] : vector<17x17xf32> to vector<17xf32>
    %43 = vector.shape_cast %42 : vector<17xf32> to vector<17x1xf32>
    %44 = vector.broadcast %43 : vector<17x1xf32> to vector<17x17xf32>
    %45 = arith.subf %41, %44 : vector<17x17xf32>
    %46 = math.exp %45 : vector<17x17xf32>
    %cst_15 = arith.constant dense<0.000000e+00> : vector<17xf32>
    %47 = vector.multi_reduction <add>, %46, %cst_15 [1] : vector<17x17xf32> to vector<17xf32>
    %48 = vector.shape_cast %47 : vector<17xf32> to vector<17x1xf32>
    %49 = tpu.reciprocal %48 {approx = true} : vector<17x1xf32> -> vector<17x1xf32>
    %50 = vector.broadcast %49 : vector<17x1xf32> to vector<17x17xf32>
    %51 = arith.mulf %46, %50 : vector<17x17xf32>
    %cst_16 = arith.constant dense<0.000000e+00> : vector<17x8xf32>
    %52 = tpu.matmul %51, %40, %cst_16 {dimension_numbers = #tpu.dot_dimension_numbers<[1], [0], [0], [1], [0, 0, 1, 1], [], []>} : vector<17x17xf32>, vector<17x8xf32>, vector<17x8xf32> -> vector<17x8xf32>
    %53 = vector.extract_strided_slice %37 {offsets = [0, 8], sizes = [17, 8], strides = [1, 1]} : vector<17x96xf32> to vector<17x8xf32>
    %54 = vector.extract_strided_slice %37 {offsets = [0, 40], sizes = [17, 8], strides = [1, 1]} : vector<17x96xf32> to vector<17x8xf32>
    %55 = vector.extract_strided_slice %37 {offsets = [0, 72], sizes = [17, 8], strides = [1, 1]} : vector<17x96xf32> to vector<17x8xf32>
    %cst_17 = arith.constant dense<0.000000e+00> : vector<17x17xf32>
    %56 = tpu.matmul %53, %54, %cst_17 {dimension_numbers = #tpu.dot_dimension_numbers<[1], [1], [0], [0], [0, 0, 1, 0], [], []>} : vector<17x8xf32>, vector<17x8xf32>, vector<17x17xf32> -> vector<17x17xf32>
    %cst_18 = arith.constant dense<0xFF800000> : vector<17xf32>
    %57 = vector.multi_reduction <maximumf>, %56, %cst_18 [1] : vector<17x17xf32> to vector<17xf32>
    %58 = vector.shape_cast %57 : vector<17xf32> to vector<17x1xf32>
    %59 = vector.broadcast %58 : vector<17x1xf32> to vector<17x17xf32>
    %60 = arith.subf %56, %59 : vector<17x17xf32>
    %61 = math.exp %60 : vector<17x17xf32>
    %cst_19 = arith.constant dense<0.000000e+00> : vector<17xf32>
    %62 = vector.multi_reduction <add>, %61, %cst_19 [1] : vector<17x17xf32> to vector<17xf32>
    %63 = vector.shape_cast %62 : vector<17xf32> to vector<17x1xf32>
    %64 = tpu.reciprocal %63 {approx = true} : vector<17x1xf32> -> vector<17x1xf32>
    %65 = vector.broadcast %64 : vector<17x1xf32> to vector<17x17xf32>
    %66 = arith.mulf %61, %65 : vector<17x17xf32>
    %cst_20 = arith.constant dense<0.000000e+00> : vector<17x8xf32>
    %67 = tpu.matmul %66, %55, %cst_20 {dimension_numbers = #tpu.dot_dimension_numbers<[1], [0], [0], [1], [0, 0, 1, 1], [], []>} : vector<17x17xf32>, vector<17x8xf32>, vector<17x8xf32> -> vector<17x8xf32>
    %68 = vector.extract_strided_slice %37 {offsets = [0, 16], sizes = [17, 8], strides = [1, 1]} : vector<17x96xf32> to vector<17x8xf32>
    %69 = vector.extract_strided_slice %37 {offsets = [0, 48], sizes = [17, 8], strides = [1, 1]} : vector<17x96xf32> to vector<17x8xf32>
    %70 = vector.extract_strided_slice %37 {offsets = [0, 80], sizes = [17, 8], strides = [1, 1]} : vector<17x96xf32> to vector<17x8xf32>
    %cst_21 = arith.constant dense<0.000000e+00> : vector<17x17xf32>
    %71 = tpu.matmul %68, %69, %cst_21 {dimension_numbers = #tpu.dot_dimension_numbers<[1], [1], [0], [0], [0, 0, 1, 0], [], []>} : vector<17x8xf32>, vector<17x8xf32>, vector<17x17xf32> -> vector<17x17xf32>
    %cst_22 = arith.constant dense<0xFF800000> : vector<17xf32>
    %72 = vector.multi_reduction <maximumf>, %71, %cst_22 [1] : vector<17x17xf32> to vector<17xf32>
    %73 = vector.shape_cast %72 : vector<17xf32> to vector<17x1xf32>
    %74 = vector.broadcast %73 : vector<17x1xf32> to vector<17x17xf32>
    %75 = arith.subf %71, %74 : vector<17x17xf32>
    %76 = math.exp %75 : vector<17x17xf32>
    %cst_23 = arith.constant dense<0.000000e+00> : vector<17xf32>
    %77 = vector.multi_reduction <add>, %76, %cst_23 [1] : vector<17x17xf32> to vector<17xf32>
    %78 = vector.shape_cast %77 : vector<17xf32> to vector<17x1xf32>
    %79 = tpu.reciprocal %78 {approx = true} : vector<17x1xf32> -> vector<17x1xf32>
    %80 = vector.broadcast %79 : vector<17x1xf32> to vector<17x17xf32>
    %81 = arith.mulf %76, %80 : vector<17x17xf32>
    %cst_24 = arith.constant dense<0.000000e+00> : vector<17x8xf32>
    %82 = tpu.matmul %81, %70, %cst_24 {dimension_numbers = #tpu.dot_dimension_numbers<[1], [0], [0], [1], [0, 0, 1, 1], [], []>} : vector<17x17xf32>, vector<17x8xf32>, vector<17x8xf32> -> vector<17x8xf32>
    %83 = vector.extract_strided_slice %37 {offsets = [0, 24], sizes = [17, 8], strides = [1, 1]} : vector<17x96xf32> to vector<17x8xf32>
    %84 = vector.extract_strided_slice %37 {offsets = [0, 56], sizes = [17, 8], strides = [1, 1]} : vector<17x96xf32> to vector<17x8xf32>
    %85 = vector.extract_strided_slice %37 {offsets = [0, 88], sizes = [17, 8], strides = [1, 1]} : vector<17x96xf32> to vector<17x8xf32>
    %cst_25 = arith.constant dense<0.000000e+00> : vector<17x17xf32>
    %86 = tpu.matmul %83, %84, %cst_25 {dimension_numbers = #tpu.dot_dimension_numbers<[1], [1], [0], [0], [0, 0, 1, 0], [], []>} : vector<17x8xf32>, vector<17x8xf32>, vector<17x17xf32> -> vector<17x17xf32>
    %cst_26 = arith.constant dense<0xFF800000> : vector<17xf32>
    %87 = vector.multi_reduction <maximumf>, %86, %cst_26 [1] : vector<17x17xf32> to vector<17xf32>
    %88 = vector.shape_cast %87 : vector<17xf32> to vector<17x1xf32>
    %89 = vector.broadcast %88 : vector<17x1xf32> to vector<17x17xf32>
    %90 = arith.subf %86, %89 : vector<17x17xf32>
    %91 = math.exp %90 : vector<17x17xf32>
    %cst_27 = arith.constant dense<0.000000e+00> : vector<17xf32>
    %92 = vector.multi_reduction <add>, %91, %cst_27 [1] : vector<17x17xf32> to vector<17xf32>
    %93 = vector.shape_cast %92 : vector<17xf32> to vector<17x1xf32>
    %94 = tpu.reciprocal %93 {approx = true} : vector<17x1xf32> -> vector<17x1xf32>
    %95 = vector.broadcast %94 : vector<17x1xf32> to vector<17x17xf32>
    %96 = arith.mulf %91, %95 : vector<17x17xf32>
    %cst_28 = arith.constant dense<0.000000e+00> : vector<17x8xf32>
    %97 = tpu.matmul %96, %85, %cst_28 {dimension_numbers = #tpu.dot_dimension_numbers<[1], [0], [0], [1], [0, 0, 1, 1], [], []>} : vector<17x17xf32>, vector<17x8xf32>, vector<17x8xf32> -> vector<17x8xf32>
    %98 = tpu.concatenate %52, %67, %82, %97 in 1 : vector<17x8xf32>, vector<17x8xf32>, vector<17x8xf32>, vector<17x8xf32> -> vector<17x32xf32>
    %99 = vector.extract_strided_slice %36 {offsets = [17, 0], sizes = [17, 96], strides = [1, 1]} : vector<34x96xf32> to vector<17x96xf32>
    %100 = vector.extract_strided_slice %99 {offsets = [0, 0], sizes = [17, 8], strides = [1, 1]} : vector<17x96xf32> to vector<17x8xf32>
    %101 = vector.extract_strided_slice %99 {offsets = [0, 32], sizes = [17, 8], strides = [1, 1]} : vector<17x96xf32> to vector<17x8xf32>
    %102 = vector.extract_strided_slice %99 {offsets = [0, 64], sizes = [17, 8], strides = [1, 1]} : vector<17x96xf32> to vector<17x8xf32>
    %cst_29 = arith.constant dense<0.000000e+00> : vector<17x17xf32>
    %103 = tpu.matmul %100, %101, %cst_29 {dimension_numbers = #tpu.dot_dimension_numbers<[1], [1], [0], [0], [0, 0, 1, 0], [], []>} : vector<17x8xf32>, vector<17x8xf32>, vector<17x17xf32> -> vector<17x17xf32>
    %cst_30 = arith.constant dense<0xFF800000> : vector<17xf32>
    %104 = vector.multi_reduction <maximumf>, %103, %cst_30 [1] : vector<17x17xf32> to vector<17xf32>
    %105 = vector.shape_cast %104 : vector<17xf32> to vector<17x1xf32>
    %106 = vector.broadcast %105 : vector<17x1xf32> to vector<17x17xf32>
    %107 = arith.subf %103, %106 : vector<17x17xf32>
    %108 = math.exp %107 : vector<17x17xf32>
    %cst_31 = arith.constant dense<0.000000e+00> : vector<17xf32>
    %109 = vector.multi_reduction <add>, %108, %cst_31 [1] : vector<17x17xf32> to vector<17xf32>
    %110 = vector.shape_cast %109 : vector<17xf32> to vector<17x1xf32>
    %111 = tpu.reciprocal %110 {approx = true} : vector<17x1xf32> -> vector<17x1xf32>
    %112 = vector.broadcast %111 : vector<17x1xf32> to vector<17x17xf32>
    %113 = arith.mulf %108, %112 : vector<17x17xf32>
    %cst_32 = arith.constant dense<0.000000e+00> : vector<17x8xf32>
    %114 = tpu.matmul %113, %102, %cst_32 {dimension_numbers = #tpu.dot_dimension_numbers<[1], [0], [0], [1], [0, 0, 1, 1], [], []>} : vector<17x17xf32>, vector<17x8xf32>, vector<17x8xf32> -> vector<17x8xf32>
    %115 = vector.extract_strided_slice %99 {offsets = [0, 8], sizes = [17, 8], strides = [1, 1]} : vector<17x96xf32> to vector<17x8xf32>
    %116 = vector.extract_strided_slice %99 {offsets = [0, 40], sizes = [17, 8], strides = [1, 1]} : vector<17x96xf32> to vector<17x8xf32>
    %117 = vector.extract_strided_slice %99 {offsets = [0, 72], sizes = [17, 8], strides = [1, 1]} : vector<17x96xf32> to vector<17x8xf32>
    %cst_33 = arith.constant dense<0.000000e+00> : vector<17x17xf32>
    %118 = tpu.matmul %115, %116, %cst_33 {dimension_numbers = #tpu.dot_dimension_numbers<[1], [1], [0], [0], [0, 0, 1, 0], [], []>} : vector<17x8xf32>, vector<17x8xf32>, vector<17x17xf32> -> vector<17x17xf32>
    %cst_34 = arith.constant dense<0xFF800000> : vector<17xf32>
    %119 = vector.multi_reduction <maximumf>, %118, %cst_34 [1] : vector<17x17xf32> to vector<17xf32>
    %120 = vector.shape_cast %119 : vector<17xf32> to vector<17x1xf32>
    %121 = vector.broadcast %120 : vector<17x1xf32> to vector<17x17xf32>
    %122 = arith.subf %118, %121 : vector<17x17xf32>
    %123 = math.exp %122 : vector<17x17xf32>
    %cst_35 = arith.constant dense<0.000000e+00> : vector<17xf32>
    %124 = vector.multi_reduction <add>, %123, %cst_35 [1] : vector<17x17xf32> to vector<17xf32>
    %125 = vector.shape_cast %124 : vector<17xf32> to vector<17x1xf32>
    %126 = tpu.reciprocal %125 {approx = true} : vector<17x1xf32> -> vector<17x1xf32>
    %127 = vector.broadcast %126 : vector<17x1xf32> to vector<17x17xf32>
    %128 = arith.mulf %123, %127 : vector<17x17xf32>
    %cst_36 = arith.constant dense<0.000000e+00> : vector<17x8xf32>
    %129 = tpu.matmul %128, %117, %cst_36 {dimension_numbers = #tpu.dot_dimension_numbers<[1], [0], [0], [1], [0, 0, 1, 1], [], []>} : vector<17x17xf32>, vector<17x8xf32>, vector<17x8xf32> -> vector<17x8xf32>
    %130 = vector.extract_strided_slice %99 {offsets = [0, 16], sizes = [17, 8], strides = [1, 1]} : vector<17x96xf32> to vector<17x8xf32>
    %131 = vector.extract_strided_slice %99 {offsets = [0, 48], sizes = [17, 8], strides = [1, 1]} : vector<17x96xf32> to vector<17x8xf32>
    %132 = vector.extract_strided_slice %99 {offsets = [0, 80], sizes = [17, 8], strides = [1, 1]} : vector<17x96xf32> to vector<17x8xf32>
    %cst_37 = arith.constant dense<0.000000e+00> : vector<17x17xf32>
    %133 = tpu.matmul %130, %131, %cst_37 {dimension_numbers = #tpu.dot_dimension_numbers<[1], [1], [0], [0], [0, 0, 1, 0], [], []>} : vector<17x8xf32>, vector<17x8xf32>, vector<17x17xf32> -> vector<17x17xf32>
    %cst_38 = arith.constant dense<0xFF800000> : vector<17xf32>
    %134 = vector.multi_reduction <maximumf>, %133, %cst_38 [1] : vector<17x17xf32> to vector<17xf32>
    %135 = vector.shape_cast %134 : vector<17xf32> to vector<17x1xf32>
    %136 = vector.broadcast %135 : vector<17x1xf32> to vector<17x17xf32>
    %137 = arith.subf %133, %136 : vector<17x17xf32>
    %138 = math.exp %137 : vector<17x17xf32>
    %cst_39 = arith.constant dense<0.000000e+00> : vector<17xf32>
    %139 = vector.multi_reduction <add>, %138, %cst_39 [1] : vector<17x17xf32> to vector<17xf32>
    %140 = vector.shape_cast %139 : vector<17xf32> to vector<17x1xf32>
    %141 = tpu.reciprocal %140 {approx = true} : vector<17x1xf32> -> vector<17x1xf32>
    %142 = vector.broadcast %141 : vector<17x1xf32> to vector<17x17xf32>
    %143 = arith.mulf %138, %142 : vector<17x17xf32>
    %cst_40 = arith.constant dense<0.000000e+00> : vector<17x8xf32>
    %144 = tpu.matmul %143, %132, %cst_40 {dimension_numbers = #tpu.dot_dimension_numbers<[1], [0], [0], [1], [0, 0, 1, 1], [], []>} : vector<17x17xf32>, vector<17x8xf32>, vector<17x8xf32> -> vector<17x8xf32>
    %145 = vector.extract_strided_slice %99 {offsets = [0, 24], sizes = [17, 8], strides = [1, 1]} : vector<17x96xf32> to vector<17x8xf32>
    %146 = vector.extract_strided_slice %99 {offsets = [0, 56], sizes = [17, 8], strides = [1, 1]} : vector<17x96xf32> to vector<17x8xf32>
    %147 = vector.extract_strided_slice %99 {offsets = [0, 88], sizes = [17, 8], strides = [1, 1]} : vector<17x96xf32> to vector<17x8xf32>
    %cst_41 = arith.constant dense<0.000000e+00> : vector<17x17xf32>
    %148 = tpu.matmul %145, %146, %cst_41 {dimension_numbers = #tpu.dot_dimension_numbers<[1], [1], [0], [0], [0, 0, 1, 0], [], []>} : vector<17x8xf32>, vector<17x8xf32>, vector<17x17xf32> -> vector<17x17xf32>
    %cst_42 = arith.constant dense<0xFF800000> : vector<17xf32>
    %149 = vector.multi_reduction <maximumf>, %148, %cst_42 [1] : vector<17x17xf32> to vector<17xf32>
    %150 = vector.shape_cast %149 : vector<17xf32> to vector<17x1xf32>
    %151 = vector.broadcast %150 : vector<17x1xf32> to vector<17x17xf32>
    %152 = arith.subf %148, %151 : vector<17x17xf32>
    %153 = math.exp %152 : vector<17x17xf32>
    %cst_43 = arith.constant dense<0.000000e+00> : vector<17xf32>
    %154 = vector.multi_reduction <add>, %153, %cst_43 [1] : vector<17x17xf32> to vector<17xf32>
    %155 = vector.shape_cast %154 : vector<17xf32> to vector<17x1xf32>
    %156 = tpu.reciprocal %155 {approx = true} : vector<17x1xf32> -> vector<17x1xf32>
    %157 = vector.broadcast %156 : vector<17x1xf32> to vector<17x17xf32>
    %158 = arith.mulf %153, %157 : vector<17x17xf32>
    %cst_44 = arith.constant dense<0.000000e+00> : vector<17x8xf32>
    %159 = tpu.matmul %158, %147, %cst_44 {dimension_numbers = #tpu.dot_dimension_numbers<[1], [0], [0], [1], [0, 0, 1, 1], [], []>} : vector<17x17xf32>, vector<17x8xf32>, vector<17x8xf32> -> vector<17x8xf32>
    %160 = tpu.concatenate %114, %129, %144, %159 in 1 : vector<17x8xf32>, vector<17x8xf32>, vector<17x8xf32>, vector<17x8xf32> -> vector<17x32xf32>
    %161 = tpu.concatenate %98, %160 in 0 : vector<17x32xf32>, vector<17x32xf32> -> vector<34x32xf32>
    %c0_45 = arith.constant 0 : index
    %c0_46 = arith.constant 0 : index
    %c0_47 = arith.constant 0 : index
    %162 = vector.load %arg8[%c0_45, %c0_46, %c0_47] : memref<1x32x32xf32, #tpu.memory_space<vmem>>, vector<1x32x32xf32>
    %163 = vector.shape_cast %162 : vector<1x32x32xf32> to vector<32x32xf32>
    %cst_48 = arith.constant dense<0.000000e+00> : vector<34x32xf32>
    %164 = tpu.matmul %161, %163, %cst_48 {dimension_numbers = #tpu.dot_dimension_numbers<[1], [0], [0], [1], [0, 0, 1, 1], [], []>} : vector<34x32xf32>, vector<32x32xf32>, vector<34x32xf32> -> vector<34x32xf32>
    %165 = vector.broadcast %7 : vector<1x32xf32> to vector<34x32xf32>
    %166 = arith.addf %164, %165 : vector<34x32xf32>
    %167 = arith.addf %11, %166 : vector<34x32xf32>
    %cst_49 = arith.constant dense<0.000000e+00> : vector<34xf32>
    %168 = vector.multi_reduction <add>, %167, %cst_49 [1] : vector<34x32xf32> to vector<34xf32>
    %169 = vector.shape_cast %168 : vector<34xf32> to vector<34x1xf32>
    %cst_50 = arith.constant 3.200000e+01 : f32
    %170 = vector.broadcast %cst_50 : f32 to vector<34x1xf32>
    %171 = arith.divf %169, %170 : vector<34x1xf32>
    %172 = vector.broadcast %171 : vector<34x1xf32> to vector<34x32xf32>
    %173 = arith.subf %167, %172 : vector<34x32xf32>
    %174 = arith.mulf %173, %173 : vector<34x32xf32>
    %cst_51 = arith.constant dense<0.000000e+00> : vector<34xf32>
    %175 = vector.multi_reduction <add>, %174, %cst_51 [1] : vector<34x32xf32> to vector<34xf32>
    %176 = vector.shape_cast %175 : vector<34xf32> to vector<34x1xf32>
    %cst_52 = arith.constant 3.200000e+01 : f32
    %177 = vector.broadcast %cst_52 : f32 to vector<34x1xf32>
    %178 = arith.divf %176, %177 : vector<34x1xf32>
    %179 = vector.broadcast %171 : vector<34x1xf32> to vector<34x32xf32>
    %180 = arith.subf %167, %179 : vector<34x32xf32>
    %cst_53 = arith.constant 9.99999974E-6 : f32
    %181 = vector.broadcast %cst_53 : f32 to vector<34x1xf32>
    %182 = arith.addf %178, %181 : vector<34x1xf32>
    %183 = math.rsqrt %182 : vector<34x1xf32>
    %184 = vector.broadcast %183 : vector<34x1xf32> to vector<34x32xf32>
    %185 = arith.mulf %180, %184 : vector<34x32xf32>
    %186 = vector.broadcast %8 : vector<1x32xf32> to vector<34x32xf32>
    %187 = arith.mulf %185, %186 : vector<34x32xf32>
    %188 = vector.broadcast %9 : vector<1x32xf32> to vector<34x32xf32>
    %189 = arith.addf %187, %188 : vector<34x32xf32>
    %c0_54 = arith.constant 0 : index
    %c0_55 = arith.constant 0 : index
    %c0_56 = arith.constant 0 : index
    %190 = vector.load %arg9[%c0_54, %c0_55, %c0_56] : memref<1x32x128xf32, #tpu.memory_space<vmem>>, vector<1x32x128xf32>
    %191 = vector.shape_cast %190 : vector<1x32x128xf32> to vector<32x128xf32>
    %cst_57 = arith.constant dense<0.000000e+00> : vector<34x128xf32>
    %192 = tpu.matmul %189, %191, %cst_57 {dimension_numbers = #tpu.dot_dimension_numbers<[1], [0], [0], [1], [0, 0, 1, 1], [], []>} : vector<34x32xf32>, vector<32x128xf32>, vector<34x128xf32> -> vector<34x128xf32>
    %c0_58 = arith.constant 0 : index
    %c0_59 = arith.constant 0 : index
    %c0_60 = arith.constant 0 : index
    %193 = vector.load %arg10[%c0_58, %c0_59, %c0_60] : memref<1x1x128xf32, #tpu.memory_space<vmem>>, vector<1x1x128xf32>
    %194 = vector.shape_cast %193 : vector<1x1x128xf32> to vector<1x128xf32>
    %195 = vector.broadcast %194 : vector<1x128xf32> to vector<34x128xf32>
    %196 = arith.addf %192, %195 : vector<34x128xf32>
    %cst_61 = arith.constant 5.000000e-01 : f32
    %197 = vector.broadcast %cst_61 : f32 to vector<34x128xf32>
    %198 = arith.mulf %197, %196 : vector<34x128xf32>
    %cst_62 = arith.constant 4.471500e-02 : f32
    %199 = vector.broadcast %cst_62 : f32 to vector<34x128xf32>
    %200 = arith.mulf %199, %196 : vector<34x128xf32>
    %201 = arith.mulf %200, %196 : vector<34x128xf32>
    %202 = arith.mulf %201, %196 : vector<34x128xf32>
    %203 = arith.addf %196, %202 : vector<34x128xf32>
    %cst_63 = arith.constant 0.797884583 : f32
    %204 = vector.broadcast %cst_63 : f32 to vector<34x128xf32>
    %205 = arith.mulf %204, %203 : vector<34x128xf32>
    %206 = math.tanh %205 : vector<34x128xf32>
    %cst_64 = arith.constant 1.000000e+00 : f32
    %207 = vector.broadcast %cst_64 : f32 to vector<34x128xf32>
    %208 = arith.addf %207, %206 : vector<34x128xf32>
    %209 = arith.mulf %198, %208 : vector<34x128xf32>
    %c0_65 = arith.constant 0 : index
    %c0_66 = arith.constant 0 : index
    %c0_67 = arith.constant 0 : index
    %210 = vector.load %arg11[%c0_65, %c0_66, %c0_67] : memref<1x128x32xf32, #tpu.memory_space<vmem>>, vector<1x128x32xf32>
    %211 = vector.shape_cast %210 : vector<1x128x32xf32> to vector<128x32xf32>
    %cst_68 = arith.constant dense<0.000000e+00> : vector<34x32xf32>
    %212 = tpu.matmul %209, %211, %cst_68 {dimension_numbers = #tpu.dot_dimension_numbers<[1], [0], [0], [1], [0, 0, 1, 1], [], []>} : vector<34x128xf32>, vector<128x32xf32>, vector<34x32xf32> -> vector<34x32xf32>
    %213 = arith.addf %167, %212 : vector<34x32xf32>
    %214 = vector.broadcast %10 : vector<1x32xf32> to vector<34x32xf32>
    %215 = arith.addf %213, %214 : vector<34x32xf32>
    %c0_69 = arith.constant 0 : index
    %c0_70 = arith.constant 0 : index
    %216 = vector.load %arg19[%c0_69, %c0_70] : memref<34x32xf32, #tpu.memory_space<vmem>>, vector<34x32xf32>
    tpu.vector_store %arg19[%c0_69, %c0_70], %215 {strides = array<i32>} : memref<34x32xf32, #tpu.memory_space<vmem>>, vector<34x32xf32>,
    %c1_i32 = arith.constant 1 : i32
    %217 = arith.cmpi eq, %arg0, %c1_i32 : i32
    %218 = arith.extui %217 : i1 to i32
    %c0_i32_71 = arith.constant 0 : i32
    %219 = arith.cmpi ne, %218, %c0_i32_71 : i32
    scf.if %219 {
      %c0_72 = arith.constant 0 : index
      %c0_73 = arith.constant 0 : index
      %220 = vector.load %arg12[%c0_72, %c0_73] : memref<1x32xf32, #tpu.memory_space<vmem>>, vector<1x32xf32>
      %c0_74 = arith.constant 0 : index
      %c0_75 = arith.constant 0 : index
      %221 = vector.load %arg13[%c0_74, %c0_75] : memref<1x32xf32, #tpu.memory_space<vmem>>, vector<1x32xf32>
      %cst_76 = arith.constant dense<0.000000e+00> : vector<34xf32>
      %222 = vector.multi_reduction <add>, %215, %cst_76 [1] : vector<34x32xf32> to vector<34xf32>
      %223 = vector.shape_cast %222 : vector<34xf32> to vector<34x1xf32>
      %cst_77 = arith.constant 3.200000e+01 : f32
      %224 = vector.broadcast %cst_77 : f32 to vector<34x1xf32>
      %225 = arith.divf %223, %224 : vector<34x1xf32>
      %226 = vector.broadcast %225 : vector<34x1xf32> to vector<34x32xf32>
      %227 = arith.subf %215, %226 : vector<34x32xf32>
      %228 = arith.mulf %227, %227 : vector<34x32xf32>
      %cst_78 = arith.constant dense<0.000000e+00> : vector<34xf32>
      %229 = vector.multi_reduction <add>, %228, %cst_78 [1] : vector<34x32xf32> to vector<34xf32>
      %230 = vector.shape_cast %229 : vector<34xf32> to vector<34x1xf32>
      %cst_79 = arith.constant 3.200000e+01 : f32
      %231 = vector.broadcast %cst_79 : f32 to vector<34x1xf32>
      %232 = arith.divf %230, %231 : vector<34x1xf32>
      %233 = vector.broadcast %225 : vector<34x1xf32> to vector<34x32xf32>
      %234 = arith.subf %215, %233 : vector<34x32xf32>
      %cst_80 = arith.constant 9.99999974E-6 : f32
      %235 = vector.broadcast %cst_80 : f32 to vector<34x1xf32>
      %236 = arith.addf %232, %235 : vector<34x1xf32>
      %237 = math.rsqrt %236 : vector<34x1xf32>
      %238 = vector.broadcast %237 : vector<34x1xf32> to vector<34x32xf32>
      %239 = arith.mulf %234, %238 : vector<34x32xf32>
      %240 = vector.broadcast %220 : vector<1x32xf32> to vector<34x32xf32>
      %241 = arith.mulf %239, %240 : vector<34x32xf32>
      %242 = vector.broadcast %221 : vector<1x32xf32> to vector<34x32xf32>
      %243 = arith.addf %241, %242 : vector<34x32xf32>
      %244 = vector.extract_strided_slice %243 {offsets = [0, 0], sizes = [17, 32], strides = [1, 1]} : vector<34x32xf32> to vector<17x32xf32>
      %cst_81 = arith.constant dense<0.000000e+00> : vector<32xf32>
      %245 = vector.multi_reduction <add>, %244, %cst_81 [0] : vector<17x32xf32> to vector<32xf32>
      %246 = vector.shape_cast %245 : vector<32xf32> to vector<1x32xf32>
      %cst_82 = arith.constant 1.700000e+01 : f32
      %247 = vector.broadcast %cst_82 : f32 to vector<1x32xf32>
      %248 = arith.divf %246, %247 : vector<1x32xf32>
      %249 = vector.extract_strided_slice %243 {offsets = [17, 0], sizes = [17, 32], strides = [1, 1]} : vector<34x32xf32> to vector<17x32xf32>
      %cst_83 = arith.constant dense<0.000000e+00> : vector<32xf32>
      %250 = vector.multi_reduction <add>, %249, %cst_83 [0] : vector<17x32xf32> to vector<32xf32>
      %251 = vector.shape_cast %250 : vector<32xf32> to vector<1x32xf32>
      %cst_84 = arith.constant 1.700000e+01 : f32
      %252 = vector.broadcast %cst_84 : f32 to vector<1x32xf32>
      %253 = arith.divf %251, %252 : vector<1x32xf32>
      %254 = tpu.concatenate %248, %253 in 0 : vector<1x32xf32>, vector<1x32xf32> -> vector<2x32xf32>
      %c0_85 = arith.constant 0 : index
      %c0_86 = arith.constant 0 : index
      %255 = vector.load %arg14[%c0_85, %c0_86] : memref<32x128xf32, #tpu.memory_space<vmem>>, vector<32x128xf32>
      %cst_87 = arith.constant dense<0.000000e+00> : vector<2x128xf32>
      %256 = tpu.matmul %254, %255, %cst_87 {dimension_numbers = #tpu.dot_dimension_numbers<[1], [0], [0], [1], [0, 0, 1, 1], [], []>} : vector<2x32xf32>, vector<32x128xf32>, vector<2x128xf32> -> vector<2x128xf32>
      %c0_88 = arith.constant 0 : index
      %c0_89 = arith.constant 0 : index
      %257 = vector.load %arg15[%c0_88, %c0_89] : memref<1x128xf32, #tpu.memory_space<vmem>>, vector<1x128xf32>
      %258 = vector.broadcast %257 : vector<1x128xf32> to vector<2x128xf32>
      %259 = arith.addf %256, %258 : vector<2x128xf32>
      %cst_90 = arith.constant 5.000000e-01 : f32
      %260 = vector.broadcast %cst_90 : f32 to vector<2x128xf32>
      %261 = arith.mulf %260, %259 : vector<2x128xf32>
      %cst_91 = arith.constant 4.471500e-02 : f32
      %262 = vector.broadcast %cst_91 : f32 to vector<2x128xf32>
      %263 = arith.mulf %262, %259 : vector<2x128xf32>
      %264 = arith.mulf %263, %259 : vector<2x128xf32>
      %265 = arith.mulf %264, %259 : vector<2x128xf32>
      %266 = arith.addf %259, %265 : vector<2x128xf32>
      %cst_92 = arith.constant 0.797884583 : f32
      %267 = vector.broadcast %cst_92 : f32 to vector<2x128xf32>
      %268 = arith.mulf %267, %266 : vector<2x128xf32>
      %269 = math.tanh %268 : vector<2x128xf32>
      %cst_93 = arith.constant 1.000000e+00 : f32
      %270 = vector.broadcast %cst_93 : f32 to vector<2x128xf32>
      %271 = arith.addf %270, %269 : vector<2x128xf32>
      %272 = arith.mulf %261, %271 : vector<2x128xf32>
      %c0_94 = arith.constant 0 : index
      %c0_95 = arith.constant 0 : index
      %273 = vector.load %arg16[%c0_94, %c0_95] : memref<128x128xf32, #tpu.memory_space<vmem>>, vector<128x128xf32>
      %cst_96 = arith.constant dense<0.000000e+00> : vector<2x128xf32>
      %274 = tpu.matmul %272, %273, %cst_96 {dimension_numbers = #tpu.dot_dimension_numbers<[1], [0], [0], [1], [0, 0, 1, 1], [], []>} : vector<2x128xf32>, vector<128x128xf32>, vector<2x128xf32> -> vector<2x128xf32>
      %c0_97 = arith.constant 0 : index
      %c0_98 = arith.constant 0 : index
      %275 = vector.load %arg17[%c0_97, %c0_98] : memref<1x128xf32, #tpu.memory_space<vmem>>, vector<1x128xf32>
      %276 = vector.broadcast %275 : vector<1x128xf32> to vector<2x128xf32>
      %277 = arith.addf %274, %276 : vector<2x128xf32>
      %c0_99 = arith.constant 0 : index
      %c0_100 = arith.constant 0 : index
      %278 = vector.load %arg18[%c0_99, %c0_100] : memref<2x128xf32, #tpu.memory_space<vmem>>, vector<2x128xf32>
      tpu.vector_store %arg18[%c0_99, %c0_100], %277 {strides = array<i32>} : memref<2x128xf32, #tpu.memory_space<vmem>>, vector<2x128xf32>,
    } else {
    }
    return
  }
  func.func @transform_0(%arg0: i32) -> (i32, i32) {
    %c0_i32 = arith.constant 0 : i32
    %c0_i32_0 = arith.constant 0 : i32
    %c0_i32_1 = arith.constant 0 : i32
    return %c0_i32, %c0_i32_0 : i32, i32
  }
  func.func @transform_1(%arg0: i32) -> (i32, i32) {
    %c0_i32 = arith.constant 0 : i32
    %c0_i32_0 = arith.constant 0 : i32
    %c0_i32_1 = arith.constant 0 : i32
    return %c0_i32, %c0_i32_0 : i32, i32
  }
  func.func @transform_2(%arg0: i32) -> (i32, i32) {
    %c0_i32 = arith.constant 0 : i32
    %c0_i32_0 = arith.constant 0 : i32
    %c0_i32_1 = arith.constant 0 : i32
    return %c0_i32, %c0_i32_0 : i32, i32
  }
  func.func @transform_3(%arg0: i32) -> (i32, i32) {
    %c0_i32 = arith.constant 0 : i32
    %c0_i32_0 = arith.constant 0 : i32
    %c0_i32_1 = arith.constant 0 : i32
    return %c0_i32, %c0_i32_0 : i32, i32
  }
  func.func @transform_4(%arg0: i32) -> (i32, i32) {
    %c0_i32 = arith.constant 0 : i32
    %c0_i32_0 = arith.constant 0 : i32
    %c0_i32_1 = arith.constant 0 : i32
    return %c0_i32, %c0_i32_0 : i32, i32
  }
  func.func @transform_5(%arg0: i32) -> (i32, i32, i32) {
    %c0_i32 = arith.constant 0 : i32
    %c0_i32_0 = arith.constant 0 : i32
    %c0_i32_1 = arith.constant 0 : i32
    return %arg0, %c0_i32, %c0_i32_0 : i32, i32, i32
  }
  func.func @transform_6(%arg0: i32) -> (i32, i32, i32) {
    %c0_i32 = arith.constant 0 : i32
    %c0_i32_0 = arith.constant 0 : i32
    %c0_i32_1 = arith.constant 0 : i32
    return %arg0, %c0_i32, %c0_i32_0 : i32, i32, i32
  }
  func.func @transform_7(%arg0: i32) -> (i32, i32, i32) {
    %c0_i32 = arith.constant 0 : i32
    %c0_i32_0 = arith.constant 0 : i32
    %c0_i32_1 = arith.constant 0 : i32
    return %arg0, %c0_i32, %c0_i32_0 : i32, i32, i32
  }
  func.func @transform_8(%arg0: i32) -> (i32, i32, i32) {
    %c0_i32 = arith.constant 0 : i32
    %c0_i32_0 = arith.constant 0 : i32
    %c0_i32_1 = arith.constant 0 : i32
    return %arg0, %c0_i32, %c0_i32_0 : i32, i32, i32
  }
  func.func @transform_9(%arg0: i32) -> (i32, i32, i32) {
    %c0_i32 = arith.constant 0 : i32
    %c0_i32_0 = arith.constant 0 : i32
    %c0_i32_1 = arith.constant 0 : i32
    return %arg0, %c0_i32, %c0_i32_0 : i32, i32, i32
  }
  func.func @transform_10(%arg0: i32) -> (i32, i32, i32) {
    %c0_i32 = arith.constant 0 : i32
    %c0_i32_0 = arith.constant 0 : i32
    %c0_i32_1 = arith.constant 0 : i32
    return %arg0, %c0_i32, %c0_i32_0 : i32, i32, i32
  }
  func.func @transform_11(%arg0: i32) -> (i32, i32) {
    %c0_i32 = arith.constant 0 : i32
    %c0_i32_0 = arith.constant 0 : i32
    %c0_i32_1 = arith.constant 0 : i32
    return %c0_i32, %c0_i32_0 : i32, i32
  }
  func.func @transform_12(%arg0: i32) -> (i32, i32) {
    %c0_i32 = arith.constant 0 : i32
    %c0_i32_0 = arith.constant 0 : i32
    %c0_i32_1 = arith.constant 0 : i32
    return %c0_i32, %c0_i32_0 : i32, i32
  }
  func.func @transform_13(%arg0: i32) -> (i32, i32) {
    %c0_i32 = arith.constant 0 : i32
    %c0_i32_0 = arith.constant 0 : i32
    %c0_i32_1 = arith.constant 0 : i32
    return %c0_i32, %c0_i32_0 : i32, i32
  }
  func.func @transform_14(%arg0: i32) -> (i32, i32) {
    %c0_i32 = arith.constant 0 : i32
    %c0_i32_0 = arith.constant 0 : i32
    %c0_i32_1 = arith.constant 0 : i32
    return %c0_i32, %c0_i32_0 : i32, i32
  }
  func.func @transform_15(%arg0: i32) -> (i32, i32) {
    %c0_i32 = arith.constant 0 : i32
    %c0_i32_0 = arith.constant 0 : i32
    %c0_i32_1 = arith.constant 0 : i32
    return %c0_i32, %c0_i32_0 : i32, i32
  }
  func.func @transform_16(%arg0: i32) -> (i32, i32) {
    %c0_i32 = arith.constant 0 : i32
    %c0_i32_0 = arith.constant 0 : i32
    %c0_i32_1 = arith.constant 0 : i32
    return %c0_i32, %c0_i32_0 : i32, i32
  }
  func.func @transform_17(%arg0: i32) -> (i32, i32) {
    %c0_i32 = arith.constant 0 : i32
    %c0_i32_0 = arith.constant 0 : i32
    %c0_i32_1 = arith.constant 0 : i32
    return %c0_i32, %c0_i32_0 : i32, i32
  }
}

</mosaic_0001>

<bundles_post_ra>
// kernel: tpu_custom_call.1
= control target key start
LH: loop header
LB: loop body
LE: loop exit
PB: predicated region body
PF: predicated region fallthrough
CT: control target
= control target key end

     0   :  { %s6573_s0 = inlined_call_operand.vmem [shape: f32[32,48], index: 0, kind: input, shape index: {}]   ;;  %s6574_s1 = inlined_call_operand.vmem [shape: f32[48,32], index: 1, kind: input, shape index: {}]   ;;  %s6575_s2 = inlined_call_operand.hbm [shape: f32[1,32], index: 2, kind: input, shape index: {}]   ;;  %s6576_s3 = inlined_call_operand.hbm [shape: f32[16,32], index: 3, kind: input, shape index: {}]   ;;  %s6577_s4 = inlined_call_operand.hbm [shape: f32[1,32], index: 4, kind: input, shape index: {}]   ;;  %s6578_s5 = inlined_call_operand.vmem [shape: f32[2,6,32], index: 5, kind: input, shape index: {}]   ;;  %s6579_s6 = inlined_call_operand.vmem [shape: f32[2,32,96], index: 6, kind: input, shape index: {}]   ;;  %s6580_s7 = inlined_call_operand.vmem [shape: f32[2,32,32], index: 7, kind: input, shape index: {}]   ;;  %s6581_s8 = inlined_call_operand.vmem [shape: f32[2,32,128], index: 8, kind: input, shape index: {}]   ;;  %s6582_s9 = inlined_call_operand.vmem [shape: f32[2,1,128], index: 9, kind: input, shape index: {}]   ;;  %s6583_s10 = inlined_call_operand.vmem [shape: f32[2,128,32], index: 10, kind: input, shape index: {}]   ;;  %s6584_s11 = inlined_call_operand.vmem [shape: f32[1,32], index: 11, kind: input, shape index: {}]   ;;  %s6585_s12 = inlined_call_operand.vmem [shape: f32[1,32], index: 12, kind: input, shape index: {}]   ;;  %s6586_s13 = inlined_call_operand.vmem [shape: f32[32,128], index: 13, kind: input, shape index: {}]   ;;  %s6587_s14 = inlined_call_operand.vmem [shape: f32[1,128], index: 14, kind: input, shape index: {}]   ;;  %s6588_s15 = inlined_call_operand.vmem [shape: f32[128,128], index: 15, kind: input, shape index: {}]   ;;  %s6589_s16 = inlined_call_operand.vmem [shape: f32[1,128], index: 16, kind: input, shape index: {}]   ;;  %s6590_s17 = inlined_call_operand.hbm [shape: f32[2,128], index: 17, kind: output, shape index: {}]  }
   0x1   :  { %6595 = sst [smem:[#allocation14_spill]] %s6573_s0 }
   0x2   :  { %6596 = sst [smem:[#allocation15_spill]] %s6574_s1 }
   0x3   :  { %6597 = sst [smem:[#allocation16_spill]] %s6575_s2 }
   0x4   :  { %6598 = sst [smem:[#allocation17_spill]] %s6587_s14 }
   0x5   :  { %6599 = sst [smem:[#allocation18_spill]] %s6589_s16 }
   0x6   :  { %6600 = sst [smem:[#allocation19_spill]] %s6590_s17 }
   0x7   :  { %22 = vsyncpa [#allocation4], 0 }
   0x8   :  { %23 = vsyncpa [#allocation7], 0 }
   0x9   :  { %24 = vsyncpa [#allocation5], 0  ;;  %s5372_s24 = smov 0  }
   0xa LB: > { %6601 = sst [smem:[#allocation13_spill]] %s5254_s24  ;;  %s5256_s25 = smov [#allocation6]   ;;  %s5254_s24 = sphi %s5372_s24, %s30_s24  }
   0xb   : > { %s472_s26 = sshll.u32 %s5256_s25, 4  ;;  %s5378_s27 = sadd.s32 4294967295, %s5254_s24   ;;  %s5388_s26 = int_to_ptr.vmem [resolvable:$true] %s472_s26 }
   0xc   : > { %p3958_p0 = scmp.ge.s32.totalorder %s5254_s24, 1  ;;  %p443_p1 = scmp.lt.s32.totalorder %s5254_s24, 3 }
   0xd   : > { %p4860_p3 = scmp.eq.s32.totalorder %s5378_s27, 0  ;;  %s5257_s29 = smov [#allocation3]  }
   0xe   : > { %p5384_p4 = pnand %p3958_p0, %p443_p1  ;;  %s462_s0 = sshll.u32 %s5257_s29, 4  ;;  %s5398_s0 = int_to_ptr.vmem [resolvable:$true] %s462_s0 }
   0xf   : > { %s5258_s18 = smov [#allocation8]   ;;  %s5126_s21 = scalar_lea.hbm %s6576_s3, 256 }
  0x10   : > { %p4850_p5 = pneg %p5384_p4  ;;  %s486_s19 = sshll.u32 %s5258_s18, 4  ;;  %s5400_s19 = int_to_ptr.vmem [resolvable:$true] %s486_s19 }
  0x11   : > { %p5127_p7 = scmp.ne.s32.totalorder %s6576_s3, %s5126_s21  ;;  %p5133_p11 = scmp.lt.u32.totalorder %s5126_s21, %s6576_s3 }
  0x12   : > { %p5394_p6 = pnand %p4860_p3, %p4850_p5 }
  0x14   : > { %p5410_p8 = pneg %p5394_p6 }
  0x16   : > { %p5129_p9 = pnand %p5410_p8, %p5127_p7 }
  0x18   : > { %p5130_p10 = pneg %p5129_p9 }
  0x1a   : > { %p5135_p12 = pnand %p5133_p11, %p5130_p10 }
  0x1c   : > { %5138 = shalt.err (!%p5135_p12)
}
  0x1d   : > { %s5139_s1 = scalar_lea.vmem %s5388_s26, 256  ;;  %p5147_p5 = scmp.lt.s32.totalorder %s5388_s26, %s5388_s26 }
  0x1e   : > { %p5140_p13 = scmp.ne.s32.totalorder %s5388_s26, %s5139_s1  ;;  %p5148_p2 = scmp.lt.s32.totalorder %s5139_s1, %s5139_s1 }
  0x20   : > { %p5142_p0 = pnand %p5140_p13, %p5410_p8  ;;  %p5149_p7 = por %p5148_p2, %p5147_p5 }
  0x22   : > { %p5143_p1 = pneg %p5142_p0 }
  0x24   : > { %p5150_p9 = pnand %p5149_p7, %p5143_p1 }
  0x26   : > { %5153 = shalt.err (!%p5150_p9)
}
  0x27   : > { %s5259_s20 = smov 128   ;;  %s5260_s21 = smov 8  }
  0x28   : > { %4856 = dma.hbm_to_vmem [thread:$0]  (!%p5394_p6), %s6576_s3, 256, %s5388_s26, [#allocation7], %s5259_s20, %s5259_s20, %s5260_s21  }
  0x29   : > { %s6605_s2 = sld [smem:[#allocation16_spill]] }
  0x2f   : > { %s5154_s24 = scalar_lea.hbm %s6605_s2, 16 }
  0x30   : > { %p5155_p2 = scmp.ne.s32.totalorder %s6605_s2, %s5154_s24  ;;  %p5161_p12 = scmp.lt.u32.totalorder %s5154_s24, %s6605_s2 }
  0x32   : > { %p5157_p10 = pnand %p5155_p2, %p5410_p8 }
  0x34   : > { %p5158_p11 = pneg %p5157_p10 }
  0x36   : > { %p5163_p13 = pnand %p5161_p12, %p5158_p11 }
  0x38   : > { %5166 = shalt.err (!%p5163_p13)
}
  0x39   : > { %s5167_s26 = scalar_lea.vmem %s5398_s0, 16  ;;  %s5174_s16 = scalar_lea.vmem %s5398_s0, 32 }
  0x3a   : > { %p5168_p0 = scmp.ne.s32.totalorder %s5398_s0, %s5167_s26  ;;  %p5175_p7 = scmp.lt.s32.totalorder %s5398_s0, %s5398_s0 }
  0x3b   : > { %p5176_p9 = scmp.lt.s32.totalorder %s5174_s16, %s5167_s26 }
  0x3c   : > { %p5170_p1 = pnand %p5168_p0, %p5410_p8 }
  0x3d   : > { %p5177_p2 = por %p5176_p9, %p5175_p7 }
  0x3e   : > { %p5171_p5 = pneg %p5170_p1 }
  0x40   : > { %p5178_p10 = pnand %p5177_p2, %p5171_p5 }
  0x42   : > { %5181 = shalt.err (!%p5178_p10)
}
  0x43   : > { %4853 = dma.hbm_to_vmem [thread:$0]  (!%p5394_p6), %s6605_s2, 16, %s5398_s0, [#allocation4]  }
  0x44   : > { %s5182_s21 = scalar_lea.hbm %s6577_s4, 16 }
  0x45   : > { %p5183_p11 = scmp.ne.s32.totalorder %s6577_s4, %s5182_s21  ;;  %p5189_p0 = scmp.lt.u32.totalorder %s5182_s21, %s6577_s4 }
  0x47   : > { %p5185_p12 = pnand %p5183_p11, %p5410_p8 }
  0x49   : > { %p5186_p13 = pneg %p5185_p12 }
  0x4b   : > { %p5191_p1 = pnand %p5189_p0, %p5186_p13 }
  0x4d   : > { %5194 = shalt.err (!%p5191_p1)
}
  0x4e   : > { %s5195_s0 = scalar_lea.vmem %s5400_s19, 16  ;;  %s5202_s1 = scalar_lea.vmem %s5400_s19, 32 }
  0x4f   : > { %p5196_p5 = scmp.ne.s32.totalorder %s5400_s19, %s5195_s0  ;;  %p5203_p2 = scmp.lt.s32.totalorder %s5400_s19, %s5400_s19 }
  0x50   : > { %p5204_p10 = scmp.lt.s32.totalorder %s5202_s1, %s5195_s0 }
  0x51   : > { %p5198_p7 = pnand %p5196_p5, %p5410_p8 }
  0x52   : > { %p5205_p11 = por %p5204_p10, %p5203_p2 }
  0x53   : > { %p5199_p9 = pneg %p5198_p7 }
  0x55   : > { %p5206_p12 = pnand %p5205_p11, %p5199_p9 }
  0x57   : > { %5209 = shalt.err (!%p5206_p12)
}
  0x58   : > { %4859 = dma.hbm_to_vmem [thread:$0]  (!%p5394_p6), %s6577_s4, 16, %s5400_s19, [#allocation7]  }
  0x59   : > { %562 = sbr.rel (%p5384_p4) target bundleno = 4570 (0x11da), region = 88 }
  0x60   : > { %5241 = dma.done.wait (%p4860_p3), [#allocation4], 16  }
  0x61   : > { %5243 = vsyncadd (%p4860_p3), [#allocation4], 4294967280 }
  0x62   : > { %5245 = dma.done.wait (%p4860_p3), [#allocation7], 272  }
  0x63   : > { %5247 = vsyncadd (%p4860_p3), [#allocation7], 4294967024  ;;  %p639_p8 = scmp.lt.s32.totalorder %s5378_s27, 1  ;;  %p6606_p3 = scmp.ne.s32.totalorder %s5378_s27, 0 }
  0x64   : > { %s6607_s23 = sld [smem:[#allocation15_spill]] (!%p6606_p3)  ;;  %s6608_s0 = sld [smem:[#allocation14_spill]] (!%p6606_p3)  ;;  %vm687_vm0 = vcmask (!%p6606_p3), 392192   ;;  %v802_v13 = vlaneseq (!%p6606_p3)  ;;  %v3977_v15 = vld [vmem:[#allocation3] ss:$0 sm:$0xff] (!%p6606_p3)  ;;  %v787_v19 = vld [vmem:[#allocation6 + $0x8] sm:$0xff] (!%p6606_p3) }
  0x65   : > { %s5491_s30 = scalar_select %p639_p8, %s5378_s27, 1 }
  0x66   : > { %669 = sbr.rel (%p6606_p3) target bundleno = 343 (0x157), region = 104  ;;  %v803_v14 = vshrl.u32 (!%p6606_p3), %v802_v13, 7  ;;  %v785_v18 = vld [vmem:[#allocation8] sm:$0x1] (!%p6606_p3)  ;;  %v786_v24 = vld [vmem:[#allocation6] sm:$0xff] (!%p6606_p3)  ;;  %vm794_vm1 = vcmask (!%p6606_p3), 1040384  }
  0x67   : > { %s3967_s28 = sshll.u32 %s5491_s30, 3  ;;  %s4088_s19 = sshll.u32 %s5491_s30, 5  ;;  %vm824_vm2 = vcmask (!%p6606_p3), 254976   ;;  %vm809_vm3 = vcmask (!%p6606_p3), 1041408   ;;  %vm819_vm4 = vcmask (!%p6606_p3), 261120  }
  0x68   : > { %s5498_s17 = scalar_lea.vmem %s6578_s5, %s3967_s28  ;;  %s5503_s21 = scalar_lea.vmem %s6579_s6, %s4088_s19  ;;  %v804_v16 = vsub.s32 (!%p6606_p3), 0, %v803_v14 }
  0x69   : > { %s5508_s29 = scalar_lea.vmem %s6580_s7, %s4088_s19  ;;  %s5513_s1 = scalar_lea.vmem %s6581_s8, %s4088_s19 }
  0x6a   : > { %s4091_s25 = sshll.u32 %s5491_s30, 7  ;;  %v674_v0 = vld [vmem:[%s6607_s23] sm:$0xff] (!%p6606_p3)  ;;  %v675_v1 = vld [vmem:[%s6607_s23 + $0x8] sm:$0xff] (!%p6606_p3)  ;;  %v676_v2 = vld [vmem:[%s6607_s23 + $0x10] sm:$0xff] (!%p6606_p3)  ;;  %v805_v29 = vrot.slane (!%p6606_p3), %v785_v18, %v804_v16 }
  0x6b   : > { %s5523_s24 = scalar_lea.vmem %s6583_s10, %s4091_s25  ;;  %v4688_v3 = vpack.c.bf16 (!%p6606_p3), %v675_v1, %v674_v0  ;;  %v677_v4 = vld [vmem:[%s6607_s23 + $0x18] sm:$0xff] (!%p6606_p3)  ;;  %v678_v6 = vld [vmem:[%s6607_s23 + $0x20] sm:$0xff] (!%p6606_p3)  ;;  %v679_v7 = vld [vmem:[%s6607_s23 + $0x28] sm:$0xff] (!%p6606_p3) }
  0x6c   : > { %v4692_v5 = vpack.c.bf16 (!%p6606_p3), %v677_v4, %v676_v2  ;;  %v670_v8 = vld [vmem:[%s6608_s0] sm:$0xff] (!%p6606_p3)  ;;  %v672_v9 = vld [vmem:[%s6608_s0 + $0x10] sm:$0xff] (!%p6606_p3)  ;;  %v4696_v10 = vpack.c.bf16 (!%p6606_p3), %v679_v7, %v678_v6  ;;  %v671_v11 = vld [vmem:[%s6608_s0 + $0x8] sm:$0xff] (!%p6606_p3) }
  0x6d   : > { %4689 = vmatprep.subr.bf16.mxu0 %v4688_v3  ;;  %4828 = vmatprep.subr.bf16.mxu1 %v4688_v3  ;;  %v673_v12 = vld [vmem:[%s6608_s0 + $0x18] sm:$0xff] }
  0x6e   : > { %4691 = vmatpush3.bf16.msra.mxu0 %v4688_v3  ;;  %4831 = vmatpush3.bf16.msra.mxu1 %v4688_v3 }
  0x6f   : > { %4693 = vmatprep.subr.bf16.mxu0 %v4692_v5  ;;  %4829 = vmatprep.subr.bf16.mxu1 %v4692_v5 }
  0x70   : > { %4280 = vmatprep.mubr.msk.f32.mxu0 %vm687_vm0, %v670_v8  ;;  %4283 = vmatprep.mubr.msk.f32.mxu1 %vm687_vm0, %v672_v9 }
  0x72   : > { %4695 = vmatpush3.bf16.msra.mxu0 %v4692_v5  ;;  %4832 = vmatpush3.bf16.msra.mxu1 %v4692_v5 }
  0x73   : > { %4697 = vmatprep.subr.bf16.mxu0 %v4696_v10  ;;  %4830 = vmatprep.subr.bf16.mxu1 %v4696_v10 }
  0x76   : > { %4699 = vmatpush3.bf16.msra.mxu0 %v4696_v10  ;;  %4833 = vmatpush3.bf16.msra.mxu1 %v4696_v10 }
  0x79   : > { %4281 = vmatmul.mubr.msk.f32.vlgmr.msra.gmra.mrb[0].mxu0 %vm687_vm0, %v671_v11  ;;  %4284 = vmatmul.mubr.msk.f32.vlgmr.msra.gmra.mrb[0].mxu1 %vm687_vm0, %v673_v12 }
 0x14c   : > { %v4282_v17 = vpop.f32.mrb[0].mxu0  ;;  %v4285_v20 = vpop.f32.mrb[0].mxu1 }
 0x14d   : > { %v772_v21 = vadd.f32 %v4282_v17, %v3977_v15  ;;  %v782_v22 = vadd.f32 %v4285_v20, %v3977_v15  ;;  %v766_v23 = vpop.f32.mrb[1].mxu0  ;;  %v776_v25 = vpop.f32.mrb[1].mxu1 }
 0x14e   : > { %v767_v26 = vadd.f32 %v3977_v15, %v766_v23  ;;  %v777_v27 = vadd.f32 %v3977_v15, %v776_v25 }
 0x14f   : > { %v789_v28 = vadd.f32 %v787_v19, %v772_v21  ;;  %v791_v30 = vadd.f32 %v787_v19, %v782_v22 }
 0x150   : > { %v788_v31 = vadd.f32 %v786_v24, %v767_v26  ;;  %v790_v32 = vadd.f32 %v786_v24, %v777_v27 }
 0x151   : > { %v796_v33 = vrot.slane %v789_v28, 7  ;;  %v811_v34 = vrot.slane %v791_v30, 6 }
 0x152   : > { %v795_v35 = vrot.slane %v788_v31, 7  ;;  %v810_v36 = vrot.slane %v790_v32, 6 }
 0x153   : > { %v817_v37 = vsel %vm794_vm1, %v796_v33, %v805_v29  ;;  %825 = vst.msk [vmem:[#allocation2 + $0x20] sm:$0x3] %vm824_vm2, %v811_v34 }
 0x154   : > { %v797_v38 = vsel %vm794_vm1, %v795_v35, %v796_v33  ;;  %v816_v39 = vsel %vm794_vm1, %v785_v18, %v795_v35  ;;  %v812_v40 = vsel %vm809_vm3, %v810_v36, %v811_v34  ;;  %v818_v41 = vsel %vm809_vm3, %v817_v37, %v810_v36 }
 0x155   : > { %820 = vst.msk [vmem:[#allocation2] sm:$0xff] %vm819_vm4, %v816_v39  ;;  %821 = vst.msk [vmem:[#allocation2 + $0x8] sm:$0xff] %vm819_vm4, %v797_v38 }
 0x156   : > { %822 = vst.msk [vmem:[#allocation2 + $0x10] sm:$0xff] %vm819_vm4, %v818_v41  ;;  %823 = vst.msk [vmem:[#allocation2 + $0x18] sm:$0xff] %vm819_vm4, %v812_v40 }
 0x157 PF: > { %vm832_vm5 = vcmask 261120   ;;  %v918_v63 = vld [vmem:[%s5503_s21] sm:$0xff]  ;;  %v919_v0 = vld [vmem:[%s5503_s21 + $0x8] sm:$0xff]  ;;  %v920_v1 = vld [vmem:[%s5503_s21 + $0x10] sm:$0xff]  ;;  %v5261_v2 = vmov 0.0|0.0   ;;  %vm5262_vm6 = vmmov 0   ;;  %v900_v9 = vlaneseq }
 0x158   : > { %4700 = vmatprep.subr.bf16.mxu0 %v5261_v2  ;;  %v4701_v3 = vpack.c.bf16 %v919_v0, %v918_v63  ;;  %v921_v4 = vld [vmem:[%s5503_s21 + $0x18] sm:$0xff]  ;;  %v5263_v5 = vmov 0.0   ;;  %4706 = vmatprep.subr.bf16.mxu1 %v5261_v2  ;;  %v826_v19 = vld [vmem:[%s5498_s17] sm:$0x3f]  ;;  %s5264_s21 = smov 96   ;;  %vm845_vm7 = vcmask 254976  }
 0x159   : > { %4294 = vmatprep.mubr.msk.f32.mxu0 %vm5262_vm6, %v5263_v5  ;;  %4315 = vmatprep.mubr.msk.f32.mxu1 %vm5262_vm6, %v5263_v5  ;;  %v4704_v6 = vpack.c.bf16 %v921_v4, %v920_v1  ;;  %v5579_v15 = vshrl.u32 %v900_v9, 7  ;;  %vm1036_vm8 = vcmask 64512   ;;  %vm1129_vm10 = vcmask 138240   ;;  %s5265_s14 = smov 64   ;;  %s5266_s20 = smov 88  }
 0x15a   : > { %4702 = vmatpush3.bf16.msra.mxu0 %v4701_v3  ;;  %vm5621_vm9 = vmpackc.low %vm1036_vm8, %vm1036_vm8  ;;  %vm1136_vm11 = vcmask 131072   ;;  %s5267_s22 = smov 80   ;;  %s5268_s18 = smov 120   ;;  %vm2021_vm12 = vcmask 1046528   ;;  %vm1181_vm13 = vcmask 1040384   ;;  %vm2011_vm14 = vcmask 130048  }
 0x15b   : > { %4703 = vmatprep.subr.bf16.mxu0 %v5261_v2  ;;  %v902_v18 = vsub.s32 0, %v5579_v15  ;;  %v911_v20 = vsub.s32 1, %v5579_v15  ;;  %s5269_s19 = smov 112   ;;  %s5270_s26 = smov 104   ;;  %vm2015_vm15 = vcmask 195584  }
 0x15c   : > { %v827_v42 = vld [vmem:[#allocation2] sm:$0xff]  ;;  %v828_v44 = vld [vmem:[#allocation2 + $0x8] sm:$0xff]  ;;  %s5271_s16 = smov 72   ;;  %s5272_s2 = smov 56  }
 0x15d   : > { %v829_v43 = vld [vmem:[#allocation2 + $0x10] sm:$0xff]  ;;  %v833_v45 = vsel %vm832_vm5, %v827_v42, 0.0  ;;  %v836_v47 = vsel %vm832_vm5, %v828_v44, 0.0  ;;  %v5584_v21 = vrot.slane %v826_v19, %v902_v18  ;;  %v5586_v24 = vrot.slane %v826_v19, %v911_v20  ;;  %s5273_s28 = smov 48   ;;  %s5274_s25 = smov 40  }
 0x15e   : > { %v839_v46 = vsel %vm832_vm5, %v829_v43, 0.0  ;;  %834 = vadd.xlane.f32.xlu0 %v833_v45  ;;  %4705 = vmatpush3.bf16.msra.mxu0 %v4704_v6  ;;  %p4078_p4 = scmp.ne.s32.totalorder %s5378_s27, 1 }
 0x15f   : > { %840 = vadd.xlane.f32.xlu1 %v839_v46  ;;  %4720 = vmatprep.subr.bf16.mxu0 %v5261_v2  ;;  %vm5279_vm0 = vmmov (!%p4078_p4), 0   ;;  %vm3601_vm1 = vcmask (!%p4078_p4), 253952  }
 0x162   : > { %837 = vadd.xlane.f32.xlu0 %v836_v47 }
 0x1eb   : > { %v835_v48 = vpop.xlane.xlu0 %834 }
 0x1ec   : > { %v841_v49 = vpop.xlane.xlu1 %840  ;;  %v850_v50 = vmul.f32 0.03125, %v835_v48 }
 0x1ed   : > { %v852_v51 = vmul.f32 0.03125, %v841_v49 }
 0x1ee   : > { %v855_v52 = vsub.f32 %v827_v42, %v850_v50  ;;  %v831_v42 = vld [vmem:[#allocation2 + $0x20] sm:$0x3] }
 0x1ef   : > { %v857_v53 = vsub.f32 %v829_v43, %v852_v51  ;;  %v838_v54 = vpop.xlane.xlu0 %837  ;;  %v846_v43 = vsel %vm845_vm7, %v831_v42, 0.0 }
 0x1f0   : > { %v851_v55 = vmul.f32 0.03125, %v838_v54  ;;  %v860_v56 = vmul.f32 %v855_v52, %v855_v52 }
 0x1f1   : > { %v862_v57 = vmul.f32 %v857_v53, %v857_v53 }
 0x1f2   : > { %v856_v58 = vsub.f32 %v828_v44, %v851_v55  ;;  %v865_v59 = vsel %vm832_vm5, %v860_v56, 0.0  ;;  %v830_v44 = vld [vmem:[#allocation2 + $0x18] sm:$0xff] }
 0x1f3   : > { %866 = vadd.xlane.f32.xlu1 %v865_v59  ;;  %v871_v60 = vsel %vm832_vm5, %v862_v57, 0.0  ;;  %v842_v45 = vsel %vm832_vm5, %v830_v44, 0.0 }
 0x1f4   : > { %v861_v61 = vmul.f32 %v856_v58, %v856_v58 }
 0x1f6   : > { %v868_v62 = vsel %vm832_vm5, %v861_v61, 0.0 }
 0x1f7   : > { %872 = vadd.xlane.f32.xlu1 %v871_v60  ;;  %869 = vadd.xlane.f32.xlu0 %v868_v62 }
 0x280   : > { %v867_v7 = vpop.xlane.xlu1 %866 }
 0x281   : > { %v880_v8 = vmul.f32 0.03125, %v867_v7 }
 0x283   : > { %v885_v10 = vadd.f32 1e-05, %v880_v8 }
 0x284   : > { %v873_v11 = vpop.xlane.xlu1 %872  ;;  %v870_v12 = vpop.xlane.xlu0 %869 }
 0x285   : > { %4982 = vrsqrt.f32 %v885_v10  ;;  %v882_v13 = vmul.f32 0.03125, %v873_v11  ;;  %v881_v14 = vmul.f32 0.03125, %v870_v12 }
 0x287   : > { %v887_v16 = vadd.f32 1e-05, %v882_v13  ;;  %v886_v17 = vadd.f32 1e-05, %v881_v14 }
 0x289   : > { %4984 = vrsqrt.f32 %v887_v16 }
 0x28a   : > { %4986 = vrsqrt.f32 %v886_v17 }
 0x28f   : > { %v4983_v22 = vpop.eup %4982 }
 0x290   : > { %v895_v23 = vmul.f32 %v4983_v22, %v855_v52 }
 0x292   : > { %v904_v25 = vmul.f32 %v5584_v21, %v895_v23 }
 0x293   : > { %v4985_v26 = vpop.eup %4984 }
 0x294   : > { %v4987_v27 = vpop.eup %4986  ;;  %v913_v28 = vadd.f32 %v5586_v24, %v904_v25  ;;  %v897_v30 = vmul.f32 %v4985_v26, %v857_v53 }
 0x295   : > { %v896_v29 = vmul.f32 %v4987_v27, %v856_v58 }
 0x296   : > { %4295 = vmatmul.mubr.msk.f32.vlgmr.msra.gmra.mrb[0].mxu0 %vm832_vm5, %v913_v28  ;;  %v906_v33 = vmul.f32 %v5584_v21, %v897_v30 }
 0x297   : > { %4297 = vmatprep.mubr.msk.f32.mxu0 %vm5262_vm6, %v5263_v5  ;;  %v905_v31 = vmul.f32 %v5584_v21, %v896_v29 }
 0x298   : > { %v915_v34 = vadd.f32 %v5586_v24, %v906_v33 }
 0x299   : > { %v914_v32 = vadd.f32 %v5586_v24, %v905_v31 }
 0x29b   : > { %4298 = vmatmul.mubr.msk.f32.gmra.mrb[2].mxu0 %vm832_vm5, %v914_v32 }
 0x29c   : > { %4300 = vmatprep.mubr.msk.f32.mxu0 %vm5262_vm6, %v5263_v5 }
 0x29f   : > { %4301 = vmatmul.mubr.msk.f32.gmra.mrb[4].mxu0 %vm832_vm5, %v915_v34 }
 0x2a0   : > { %4303 = vmatprep.mubr.msk.f32.mxu0 %vm5262_vm6, %v5263_v5 }
 0x369   : > { %v5603_v35 = vpop.f32.mrb[0].mxu0 }
 0x36a   : > { %v4296_v36 = vpop.f32.mrb[1].mxu0 }
 0x36e   : > { %v5605_v37 = vpop.f32.mrb[2].mxu0 }
 0x36f   : > { %v4299_v38 = vpop.f32.mrb[3].mxu0  ;;  %v5609_v39 = vpack.i.bf16 %v5605_v37, %v5603_v35 }
 0x371   : > { %4903 = vrot.lane.b32.xlu0 %v5609_v39, %s5264_s21 }
 0x372   : > { %v5613_v40 = vpop.f32.mrb[4].mxu0 }
 0x373   : > { %1034 = vrot.lane.b32.xlu1 %v5613_v40, %s5264_s21  ;;  %v4302_v41 = vpop.f32.mrb[5].mxu0 }
 0x390   : > { %847 = vadd.xlane.f32.xlu0 %v846_v43 }
 0x397   : > { %843 = vadd.xlane.f32.xlu1 %v842_v45 }
 0x3e3   : > { %v4904_v46 = vpop.permute.xlu0 %4903 }
 0x3e4   : > { %v4906_v47 = vunpack.i.h.bf16 %v4904_v46  ;;  %v4905_v48 = vunpack.i.l.bf16 %v4904_v46 }
 0x3e5   : > { %v1035_v51 = vpop.permute.xlu1 %1034 }
 0x3e6   : > { %v4707_v50 = vpack.c.bf16 %v4906_v47, %v4905_v48 }
 0x3e8   : > { %4709 = vmatpush3.bf16.xpose.msk.msra.mxu1 %vm5621_vm9, %v4707_v50 }
 0x3e9   : > { %4313 = vmatprep.subr.mxu1 %v5263_v5 }
 0x3f0   : > { %4314 = vmatpush3.xpose.msk.msra.mxu1 %vm1036_vm8, %v1035_v51 }
 0x3f1   : > { %4710 = vmatprep.subr.bf16.mxu1 %v5261_v2 }
 0x3f3   : > { %4316 = vmatmul.mubr.msk.f32.vlgmr.msra.gmra.mrb[0].mxu1 %vm1036_vm8, %v5603_v35 }
 0x3f4   : > { %4318 = vmatprep.mubr.msk.f32.mxu1 %vm5262_vm6, %v5263_v5 }
 0x3f7   : > { %4319 = vmatmul.mubr.msk.f32.gmra.mrb[2].mxu1 %vm1036_vm8, %v5605_v37 }
 0x3f8   : > { %4321 = vmatprep.mubr.msk.f32.mxu1 %vm5262_vm6, %v5263_v5 }
 0x3fb   : > { %4322 = vmatmul.mubr.msk.f32.gmra.mrb[4].mxu1 %vm1036_vm8, %v5613_v40 }
 0x3fc   : > { %4330 = vmatprep.mubr.msk.f32.mxu1 %vm5262_vm6, %v5263_v5 }
 0x41d   : > { %v848_v52 = vpop.xlane.xlu0 %847 }
 0x41e   : > { %v854_v53 = vmul.f32 0.03125, %v848_v52 }
 0x420   : > { %v859_v54 = vsub.f32 %v831_v42, %v854_v53 }
 0x422   : > { %v864_v55 = vmul.f32 %v859_v54, %v859_v54 }
 0x424   : > { %v844_v56 = vpop.xlane.xlu1 %843  ;;  %v877_v57 = vsel %vm845_vm7, %v864_v55, 0.0 }
 0x425   : > { %v853_v58 = vmul.f32 0.03125, %v844_v56  ;;  %878 = vadd.xlane.f32.xlu1 %v877_v57 }
 0x427   : > { %v858_v59 = vsub.f32 %v830_v44, %v853_v58  ;;  %v2022_v44 = vrot.slane %v5613_v40, 1 }
 0x429   : > { %v863_v60 = vmul.f32 %v858_v59, %v858_v59 }
 0x42b   : > { %v874_v61 = vsel %vm832_vm5, %v863_v60, 0.0 }
 0x42c   : > { %875 = vadd.xlane.f32.xlu0 %v874_v61 }
 0x4b2   : > { %v879_v62 = vpop.xlane.xlu1 %878 }
 0x4b3   : > { %v884_v63 = vmul.f32 0.03125, %v879_v62 }
 0x4b5   : > { %v889_v0 = vadd.f32 1e-05, %v884_v63 }
 0x4b7   : > { %4988 = vrsqrt.f32 %v889_v0 }
 0x4b9   : > { %v876_v1 = vpop.xlane.xlu0 %875 }
 0x4ba   : > { %v883_v3 = vmul.f32 0.03125, %v876_v1 }
 0x4bc   : > { %v888_v4 = vadd.f32 1e-05, %v883_v3 }
 0x4be   : > { %4990 = vrsqrt.f32 %v888_v4 }
 0x4c1   : > { %v4989_v6 = vpop.eup %4988 }
 0x4c2   : > { %v899_v12 = vmul.f32 %v4989_v6, %v859_v54 }
 0x4c4   : > { %v908_v19 = vmul.f32 %v5584_v21, %v899_v12 }
 0x4c6   : > { %v1115_v7 = vpop.f32.mrb[0].mxu1  ;;  %v917_v25 = vadd.f32 %v5586_v24, %v908_v19 }
 0x4c7   : > { %v4317_v8 = vpop.f32.mrb[1].mxu1  ;;  %v1130_v9 = vsel %vm1129_vm10, %v1115_v7, -inf }
 0x4c8   : > { %v4991_v10 = vpop.eup %4990  ;;  %1131 = vmax.xlane.f32.xlu0 %v1130_v9 }
 0x4c9   : > { %v898_v11 = vmul.f32 %v4991_v10, %v858_v59 }
 0x4ca   : > { %v1120_v13 = vpop.f32.mrb[2].mxu1 }
 0x4cb   : > { %v4320_v14 = vpop.f32.mrb[3].mxu1  ;;  %v1133_v16 = vsel %vm1129_vm10, %v1120_v13, -inf  ;;  %v907_v17 = vmul.f32 %v5584_v21, %v898_v11 }
 0x4cc   : > { %1134 = vmax.xlane.f32.xlu1 %v1133_v16 }
 0x4cd   : > { %v916_v18 = vadd.f32 %v5586_v24, %v907_v17 }
 0x4ce   : > { %v1125_v20 = vpop.f32.mrb[4].mxu1 }
 0x4cf   : > { %4304 = vmatmul.mubr.msk.f32.gmra.mrb[6].mxu0 %vm832_vm5, %v916_v18  ;;  %v4323_v22 = vpop.f32.mrb[5].mxu1  ;;  %v1137_v23 = vsel %vm1136_vm11, %v1125_v20, -inf }
 0x4d0   : > { %1138 = vmax.xlane.f32.xlu0 %v1137_v23  ;;  %4306 = vmatprep.mubr.msk.f32.mxu0 %vm5262_vm6, %v5263_v5 }
 0x4d3   : > { %4307 = vmatmul.mubr.msk.f32.gmra.mrb[8].mxu0 %vm832_vm5, %v917_v25 }
 0x4d4   : > { %4375 = vmatprep.mubr.msk.f32.mxu0 %vm5262_vm6, %v5263_v5 }
 0x555   : > { %v1132_v26 = vpop.xlane.xlu0 %1131 }
 0x556   : > { %v1140_v27 = vsub.f32 %v1115_v7, %v1132_v26 }
 0x558   : > { %v1143_v21 = vmul.f32 1.442695, %v1140_v27 }
 0x559   : > { %v1135_v28 = vpop.xlane.xlu1 %1134 }
 0x55a   : > { %4992 = vpow2.f32 %v1143_v21  ;;  %v1141_v29 = vsub.f32 %v1120_v13, %v1135_v28 }
 0x55c   : > { %v1145_v30 = vmul.f32 1.442695, %v1141_v29 }
 0x55d   : > { %v1139_v34 = vpop.xlane.xlu0 %1138 }
 0x55e   : > { %4994 = vpow2.f32 %v1145_v30  ;;  %v1142_v36 = vsub.f32 %v1125_v20, %v1139_v34 }
 0x560   : > { %v1147_v38 = vmul.f32 1.442695, %v1142_v36 }
 0x562   : > { %4996 = vpow2.f32 %v1147_v38 }
 0x564   : > { %v5657_v31 = vpop.eup %4992 }
 0x565   : > { %v1149_v32 = vsel %vm1129_vm10, %v5657_v31, 0.0 }
 0x566   : > { %1150 = vadd.xlane.f32.xlu1 %v1149_v32 }
 0x568   : > { %v5661_v24 = vpop.eup %4994 }
 0x569   : > { %v1152_v33 = vsel %vm1129_vm10, %v5661_v24, 0.0 }
 0x56a   : > { %1153 = vadd.xlane.f32.xlu0 %v1152_v33 }
 0x56c   : > { %v5683_v41 = vpop.eup %4996 }
 0x56d   : > { %v1155_v43 = vsel %vm1136_vm11, %v5683_v41, 0.0 }
 0x577   : > { %1168 = vrot.lane.b32.xlu1 %v5613_v40, %s5265_s14 }
 0x57b   : > { %4913 = vrot.lane.b32.xlu1 %v5609_v39, %s5266_s20 }
 0x57f   : > { %1274 = vrot.lane.b32.xlu1 %v5613_v40, %s5266_s20 }
 0x580   : > { %4908 = vrot.lane.b32.xlu0 %v5609_v39, %s5265_s14 }
 0x584   : > { %4918 = vrot.lane.b32.xlu0 %v5609_v39, %s5267_s22 }
 0x588   : > { %1266 = vrot.lane.b32.xlu0 %v5605_v37, %s5268_s18 }
 0x58c   : > { %1510 = vrot.lane.b32.xlu0 %v5613_v40, %s5267_s22 }
 0x590   : > { %1500 = vrot.lane.b32.xlu0 %v5603_v35, %s5269_s19 }
 0x594   : > { %1504 = vrot.lane.b32.xlu0 %v5613_v40, %s5269_s19 }
 0x5a2   : > { %v1018_v42 = vpop.f32.mrb[6].mxu0 }
 0x5a3   : > { %v2023_v45 = vrot.slane %v1018_v42, 1  ;;  %1156 = vadd.xlane.f32.xlu1 %v1155_v43  ;;  %v4305_v46 = vpop.f32.mrb[7].mxu0 }
 0x5a5   : > { %v5689_v47 = vsel %vm2021_vm12, %v2022_v44, %v2023_v45 }
 0x5a6   : > { %v1023_v48 = vpop.f32.mrb[8].mxu0 }
 0x5a7   : > { %v5691_v50 = vrot.slane %v1023_v48, 1  ;;  %v4308_v51 = vpop.f32.mrb[9].mxu0 }
 0x5a9   : > { %v5695_v52 = vsel %vm2021_vm12, %v2023_v45, %v5691_v50 }
 0x5aa   : > { %v5699_v53 = vpack.i.bf16 %v5695_v52, %v5689_v47 }
 0x5ac   : > { %4928 = vrot.lane.b32.xlu0 %v5699_v53, %s5264_s21 }
 0x5b0   : > { %1738 = vrot.lane.b32.xlu0 %v5605_v37, %s5270_s26 }
 0x5b4   : > { %1264 = vrot.lane.b32.xlu1 %v5603_v35, %s5268_s18  ;;  %2031 = vrot.lane.b32.xlu0 %v5691_v50, %s5264_s21  ;;  %s5275_s21 = smov 8  }
 0x5b8   : > { %1268 = vrot.lane.b32.xlu1 %v5613_v40, %s5268_s18  ;;  %2267 = vrot.lane.b32.xlu0 %v5691_v50, %s5266_s20 }
 0x5bc   : > { %4923 = vrot.lane.b32.xlu1 %v5609_v39, %s5271_s16  ;;  %2257 = vrot.lane.b32.xlu0 %v5689_v47, %s5268_s18 }
 0x5c0   : > { %1502 = vrot.lane.b32.xlu1 %v5605_v37, %s5269_s19  ;;  %2261 = vrot.lane.b32.xlu0 %v5691_v50, %s5268_s18 }
 0x5c4   : > { %1746 = vrot.lane.b32.xlu1 %v5613_v40, %s5271_s16  ;;  %4943 = vrot.lane.b32.xlu0 %v5699_v53, %s5271_s16 }
 0x5c8   : > { %1736 = vrot.lane.b32.xlu1 %v5603_v35, %s5270_s26  ;;  %2495 = vrot.lane.b32.xlu0 %v5695_v52, %s5269_s19 }
 0x5cc   : > { %1740 = vrot.lane.b32.xlu1 %v5613_v40, %s5270_s26  ;;  %2739 = vrot.lane.b32.xlu0 %v5691_v50, %s5271_s16 }
 0x5d0   : > { %4933 = vrot.lane.b32.xlu1 %v5699_v53, %s5266_s20  ;;  %2731 = vrot.lane.b32.xlu0 %v5695_v52, %s5270_s26  ;;  %s6611_s20 = scalar_lea.vmem %s6582_s9, %s5491_s30 }
 0x5d4   : > { %4938 = vrot.lane.b32.xlu1 %v5699_v53, %s5267_s22 }
 0x5d8   : > { %2259 = vrot.lane.b32.xlu1 %v5695_v52, %s5268_s18 }
 0x5dc   : > { %2503 = vrot.lane.b32.xlu1 %v5691_v50, %s5267_s22 }
 0x5e0   : > { %2493 = vrot.lane.b32.xlu1 %v5689_v47, %s5269_s19 }
 0x5e4   : > { %2497 = vrot.lane.b32.xlu1 %v5691_v50, %s5269_s19 }
 0x5e8   : > { %2729 = vrot.lane.b32.xlu1 %v5689_v47, %s5270_s26 }
 0x5ec   : > { %2733 = vrot.lane.b32.xlu1 %v5691_v50, %s5270_s26 }
 0x5f3   : > { %v1151_v35 = vpop.xlane.xlu1 %1150 }
 0x5f4   : > { %4998 = vrcp.f32 %v1151_v35 }
 0x5f7   : > { %v1154_v37 = vpop.xlane.xlu0 %1153  ;;  %v1169_v55 = vpop.permute.xlu1 %1168 }
 0x5f8   : > { %5000 = vrcp.f32 %v1154_v37 }
 0x5fb   : > { %v4909_v54 = vpop.permute.xlu0 %4908  ;;  %v4914_v63 = vpop.permute.xlu1 %4913 }
 0x5fc   : > { %v4911_v56 = vunpack.i.h.bf16 %v4909_v54  ;;  %v4910_v57 = vunpack.i.l.bf16 %v4909_v54  ;;  %v4916_v6 = vunpack.i.h.bf16 %v4914_v63  ;;  %v4915_v7 = vunpack.i.l.bf16 %v4914_v63 }
 0x5fe   : > { %v4711_v58 = vpack.c.bf16 %v4911_v56, %v4910_v57  ;;  %v4999_v60 = vpop.eup %4998  ;;  %v4714_v10 = vpack.c.bf16 %v4916_v6, %v4915_v7 }
 0x5ff   : > { %v4919_v59 = vpop.permute.xlu0 %4918  ;;  %v1161_v1 = vmul.f32 %v4999_v60, %v5657_v31  ;;  %v1275_v12 = vpop.permute.xlu1 %1274 }
 0x600   : > { %v4921_v61 = vunpack.i.h.bf16 %v4919_v59  ;;  %v4920_v62 = vunpack.i.l.bf16 %v4919_v59  ;;  %4712 = vmatpush3.bf16.msra.mxu1 %v4711_v58 }
 0x601   : > { %4328 = vmatprep.subr.mxu1 %v5263_v5 }
 0x602   : > { %v4721_v0 = vpack.c.bf16 %v4921_v61, %v4920_v62  ;;  %v5001_v4 = vpop.eup %5000 }
 0x603   : > { %v1267_v3 = vpop.permute.xlu0 %1266  ;;  %v1162_v8 = vmul.f32 %v5001_v4, %v5661_v24 }
 0x604   : > { %4329 = vmatpush3.msk.msra.mxu1 %vm1181_vm13, %v1169_v55  ;;  %4723 = vmatpush3.bf16.xpose.msk.msra.mxu0 %vm5621_vm9, %v4721_v0 }
 0x605   : > { %4331 = vmatmul.mubr.msk.f32.vlgmr.msra.gmra.mrb[6].mxu1 %vm1129_vm10, %v1161_v1  ;;  %4713 = vmatprep.subr.bf16.mxu1 %v5261_v2 }
 0x606   : > { %4333 = vmatprep.mubr.msk.f32.mxu1 %vm5262_vm6, %v5263_v5  ;;  %4373 = vmatprep.subr.mxu0 %v5263_v5 }
 0x607   : > { %v1511_v9 = vpop.permute.xlu0 %1510 }
 0x609   : > { %4334 = vmatmul.mubr.msk.f32.gmra.mrb[8].mxu1 %vm1129_vm10, %v1162_v8 }
 0x60a   : > { %4336 = vmatprep.mubr.msk.f32.mxu1 %vm5262_vm6, %v5263_v5 }
 0x60b   : > { %4716 = vmatpush3.bf16.xpose.msk.msra.mxu1 %vm5621_vm9, %v4714_v10  ;;  %v1501_v11 = vpop.permute.xlu0 %1500 }
 0x60c   : > { %4374 = vmatpush3.xpose.msk.msra.mxu0 %vm1036_vm8, %v1511_v9  ;;  %4343 = vmatprep.subr.mxu1 %v5263_v5 }
 0x60d   : > { %4727 = vmatprep.subr.bf16.mxu0 %v5261_v2 }
 0x60f   : > { %4376 = vmatmul.mubr.msk.f32.vlgmr.msra.gmra.mrb[10].mxu0 %vm1036_vm8, %v1501_v11  ;;  %v1505_v26 = vpop.permute.xlu0 %1504 }
 0x610   : > { %4378 = vmatprep.mubr.msk.f32.mxu0 %vm5262_vm6, %v5263_v5 }
 0x613   : > { %4344 = vmatpush3.xpose.msk.msra.mxu1 %vm1036_vm8, %v1275_v12 }
 0x614   : > { %4717 = vmatprep.subr.bf16.mxu1 %v5261_v2 }
 0x61e   : > { %v4929_v21 = vpop.permute.xlu0 %4928 }
 0x61f   : > { %v4931_v28 = vunpack.i.h.bf16 %v4929_v21  ;;  %v4930_v29 = vunpack.i.l.bf16 %v4929_v21 }
 0x621   : > { %v4735_v32 = vpack.c.bf16 %v4931_v28, %v4930_v29 }
 0x622   : > { %v1739_v31 = vpop.permute.xlu0 %1738 }
 0x626   : > { %v2032_v33 = vpop.permute.xlu0 %2031 }
 0x630   : > { %v1157_v13 = vpop.xlane.xlu1 %1156 }
 0x631   : > { %5002 = vrcp.f32 %v1157_v13 }
 0x634   : > { %v1265_v14 = vpop.permute.xlu1 %1264 }
 0x638   : > { %v1269_v16 = vpop.permute.xlu1 %1268 }
 0x63b   : > { %v5003_v17 = vpop.eup %5002 }
 0x63c   : > { %v4924_v18 = vpop.permute.xlu1 %4923  ;;  %v1163_v19 = vmul.f32 %v5003_v17, %v5683_v41  ;;  %v2268_v41 = vpop.permute.xlu0 %2267 }
 0x63d   : > { %v4926_v20 = vunpack.i.h.bf16 %v4924_v18  ;;  %v4925_v22 = vunpack.i.l.bf16 %v4924_v18 }
 0x63e   : > { %4337 = vmatmul.mubr.msk.f32.gmra.mrb[10].mxu1 %vm1129_vm10, %v1163_v19 }
 0x63f   : > { %v4728_v23 = vpack.c.bf16 %v4926_v20, %v4925_v22  ;;  %4345 = vmatprep.mubr.msk.f32.mxu1 %vm5262_vm6, %v5263_v5 }
 0x640   : > { %v1503_v25 = vpop.permute.xlu1 %1502  ;;  %v2258_v43 = vpop.permute.xlu0 %2257 }
 0x641   : > { %4379 = vmatmul.mubr.msk.f32.gmra.mrb[12].mxu0 %vm1036_vm8, %v1503_v25 }
 0x642   : > { %4730 = vmatpush3.bf16.xpose.msk.msra.mxu0 %vm5621_vm9, %v4728_v23  ;;  %4346 = vmatmul.mubr.msk.f32.vlgmr.msra.gmra.mrb[12].mxu1 %vm1036_vm8, %v1265_v14 }
 0x643   : > { %4381 = vmatprep.mubr.msk.f32.mxu0 %vm5262_vm6, %v5263_v5  ;;  %4348 = vmatprep.mubr.msk.f32.mxu1 %vm5262_vm6, %v5263_v5 }
 0x644   : > { %v1747_v27 = vpop.permute.xlu1 %1746  ;;  %4403 = vmatprep.subr.mxu0 %v5263_v5 }
 0x645   : > { %4382 = vmatmul.mubr.msk.f32.gmra.mrb[14].mxu0 %vm1036_vm8, %v1505_v26 }
 0x646   : > { %4349 = vmatmul.mubr.msk.f32.gmra.mrb[14].mxu1 %vm1036_vm8, %v1267_v3  ;;  %4405 = vmatprep.mubr.msk.f32.mxu0 %vm5262_vm6, %v5263_v5 }
 0x647   : > { %4351 = vmatprep.mubr.msk.f32.mxu1 %vm5262_vm6, %v5263_v5 }
 0x648   : > { %v1737_v30 = vpop.permute.xlu1 %1736 }
 0x64a   : > { %4404 = vmatpush3.xpose.msk.msra.mxu0 %vm1036_vm8, %v1747_v27  ;;  %4352 = vmatmul.mubr.msk.f32.gmra.mrb[16].mxu1 %vm1036_vm8, %v1269_v16 }
 0x64b   : > { %4734 = vmatprep.subr.bf16.mxu0 %v5261_v2  ;;  %4360 = vmatprep.mubr.msk.f32.mxu1 %vm5262_vm6, %v5263_v5 }
 0x64c   : > { %v1741_v24 = vpop.permute.xlu1 %1740 }
 0x64d   : > { %4406 = vmatmul.mubr.msk.f32.vlgmr.msra.gmra.mrb[16].mxu0 %vm1036_vm8, %v1737_v30 }
 0x64e   : > { %4737 = vmatpush3.bf16.xpose.msk.msra.mxu0 %vm5621_vm9, %v4735_v32  ;;  %4408 = vmatprep.mubr.msk.f32.mxu0 %vm5262_vm6, %v5263_v5 }
 0x64f   : > { %4433 = vmatprep.subr.mxu0 %v5263_v5 }
 0x650   : > { %v4934_v34 = vpop.permute.xlu1 %4933 }
 0x651   : > { %4409 = vmatmul.mubr.msk.f32.gmra.mrb[18].mxu0 %vm1036_vm8, %v1739_v31  ;;  %v4936_v36 = vunpack.i.h.bf16 %v4934_v34  ;;  %v4935_v38 = vunpack.i.l.bf16 %v4934_v34 }
 0x652   : > { %4411 = vmatprep.mubr.msk.f32.mxu0 %vm5262_vm6, %v5263_v5 }
 0x653   : > { %v4742_v42 = vpack.c.bf16 %v4936_v36, %v4935_v38 }
 0x654   : > { %v4939_v44 = vpop.permute.xlu1 %4938 }
 0x655   : > { %4412 = vmatmul.mubr.msk.f32.gmra.mrb[20].mxu0 %vm1036_vm8, %v1741_v24  ;;  %v4941_v45 = vunpack.i.h.bf16 %v4939_v44  ;;  %v4940_v46 = vunpack.i.l.bf16 %v4939_v44 }
 0x656   : > { %4434 = vmatpush3.xpose.msk.msra.mxu0 %vm1036_vm8, %v2032_v33  ;;  %4435 = vmatprep.mubr.msk.f32.mxu0 %vm5262_vm6, %v5263_v5 }
 0x657   : > { %4741 = vmatprep.subr.bf16.mxu0 %v5261_v2  ;;  %v4749_v48 = vpack.c.bf16 %v4941_v45, %v4940_v46 }
 0x658   : > { %v2260_v51 = vpop.permute.xlu1 %2259 }
 0x659   : > { %4436 = vmatmul.mubr.msk.f32.vlgmr.msra.gmra.mrb[22].mxu0 %vm1036_vm8, %v5689_v47  ;;  %v2262_v47 = vpop.permute.xlu0 %2261 }
 0x65a   : > { %4744 = vmatpush3.bf16.xpose.msk.msra.mxu0 %vm5621_vm9, %v4742_v42  ;;  %4438 = vmatprep.mubr.msk.f32.mxu0 %vm5262_vm6, %v5263_v5 }
 0x65b   : > { %4463 = vmatprep.subr.mxu0 %v5263_v5 }
 0x65c   : > { %v2504_v35 = vpop.permute.xlu1 %2503 }
 0x65d   : > { %4439 = vmatmul.mubr.msk.f32.gmra.mrb[24].mxu0 %vm1036_vm8, %v5695_v52  ;;  %v4944_v52 = vpop.permute.xlu0 %4943 }
 0x65e   : > { %4441 = vmatprep.mubr.msk.f32.mxu0 %vm5262_vm6, %v5263_v5  ;;  %v4946_v37 = vunpack.i.h.bf16 %v4944_v52  ;;  %v4945_v54 = vunpack.i.l.bf16 %v4944_v52 }
 0x660   : > { %v4756_v55 = vpack.c.bf16 %v4946_v37, %v4945_v54  ;;  %v2494_v56 = vpop.permute.xlu1 %2493 }
 0x661   : > { %4442 = vmatmul.mubr.msk.f32.gmra.mrb[26].mxu0 %vm1036_vm8, %v5691_v50  ;;  %v2496_v57 = vpop.permute.xlu0 %2495 }
 0x662   : > { %4464 = vmatpush3.xpose.msk.msra.mxu0 %vm1036_vm8, %v2268_v41  ;;  %4465 = vmatprep.mubr.msk.f32.mxu0 %vm5262_vm6, %v5263_v5 }
 0x663   : > { %4748 = vmatprep.subr.bf16.mxu0 %v5261_v2 }
 0x664   : > { %v2498_v58 = vpop.permute.xlu1 %2497 }
 0x665   : > { %4466 = vmatmul.mubr.msk.f32.vlgmr.msra.gmra.mrb[28].mxu0 %vm1036_vm8, %v2258_v43  ;;  %v2740_v59 = vpop.permute.xlu0 %2739 }
 0x666   : > { %4751 = vmatpush3.bf16.xpose.msk.msra.mxu0 %vm5621_vm9, %v4749_v48  ;;  %4468 = vmatprep.mubr.msk.f32.mxu0 %vm5262_vm6, %v5263_v5 }
 0x667   : > { %4493 = vmatprep.subr.mxu0 %v5263_v5 }
 0x668   : > { %v2730_v49 = vpop.permute.xlu1 %2729 }
 0x669   : > { %4469 = vmatmul.mubr.msk.f32.gmra.mrb[30].mxu0 %vm1036_vm8, %v2260_v51  ;;  %v2732_v60 = vpop.permute.xlu0 %2731 }
 0x66a   : > { %4471 = vmatprep.mubr.msk.f32.mxu0 %vm5262_vm6, %v5263_v5 }
 0x66c   : > { %v2734_v61 = vpop.permute.xlu1 %2733 }
 0x66d   : > { %4472 = vmatmul.mubr.msk.f32.gmra.mrb[32].mxu0 %vm1036_vm8, %v2262_v47 }
 0x66e   : > { %4494 = vmatpush3.xpose.msk.msra.mxu0 %vm1036_vm8, %v2504_v35  ;;  %4495 = vmatprep.mubr.msk.f32.mxu0 %vm5262_vm6, %v5263_v5 }
 0x66f   : > { %4755 = vmatprep.subr.bf16.mxu0 %v5261_v2 }
 0x671   : > { %4496 = vmatmul.mubr.msk.f32.vlgmr.msra.gmra.mrb[34].mxu0 %vm1036_vm8, %v2494_v56 }
 0x672   : > { %4758 = vmatpush3.bf16.xpose.msk.msra.mxu0 %vm5621_vm9, %v4756_v55  ;;  %4498 = vmatprep.mubr.msk.f32.mxu0 %vm5262_vm6, %v5263_v5 }
 0x673   : > { %4523 = vmatprep.subr.mxu0 %v5263_v5 }
 0x675   : > { %4499 = vmatmul.mubr.msk.f32.gmra.mrb[36].mxu0 %vm1036_vm8, %v2496_v57 }
 0x676   : > { %4501 = vmatprep.mubr.msk.f32.mxu0 %vm5262_vm6, %v5263_v5 }
 0x679   : > { %4502 = vmatmul.mubr.msk.f32.gmra.mrb[38].mxu0 %vm1036_vm8, %v2498_v58 }
 0x67a   : > { %4524 = vmatpush3.xpose.msk.msra.mxu0 %vm1036_vm8, %v2740_v59  ;;  %4525 = vmatprep.mubr.msk.f32.mxu0 %vm5262_vm6, %v5263_v5 }
 0x67b   : > { %4762 = vmatprep.subr.bf16.mxu0 %v5261_v2 }
 0x67d   : > { %4526 = vmatmul.mubr.msk.f32.vlgmr.msra.gmra.mrb[40].mxu0 %vm1036_vm8, %v2730_v49 }
 0x67e   : > { %4528 = vmatprep.mubr.msk.f32.mxu0 %vm5262_vm6, %v5263_v5 }
 0x681   : > { %4529 = vmatmul.mubr.msk.f32.gmra.mrb[42].mxu0 %vm1036_vm8, %v2732_v60 }
 0x682   : > { %4531 = vmatprep.mubr.msk.f32.mxu0 %vm5262_vm6, %v5263_v5 }
 0x685   : > { %4532 = vmatmul.mubr.msk.f32.gmra.mrb[44].mxu0 %vm1036_vm8, %v2734_v61 }
 0x686   : > { %4557 = vmatprep.mubr.msk.f32.mxu0 %vm5262_vm6, %v5263_v5 }
 0x6d8   : > { %v5857_v62 = vpop.f32.mrb[6].mxu1 }
 0x6d9   : > { %v4332_v63 = vpop.f32.mrb[7].mxu1 }
 0x6dc   : > { %v5859_v0 = vpop.f32.mrb[8].mxu1 }
 0x6dd   : > { %v4335_v1 = vpop.f32.mrb[9].mxu1 }
 0x6e2   : > { %v5861_v3 = vpop.f32.mrb[10].mxu0 }
 0x6e3   : > { %v4377_v4 = vpop.f32.mrb[11].mxu0  ;;  %v1604_v6 = vsel %vm1129_vm10, %v5861_v3, -inf }
 0x6e4   : > { %1605 = vmax.xlane.f32.xlu0 %v1604_v6 }
 0x711   : > { %v5865_v7 = vpop.f32.mrb[10].mxu1 }
 0x712   : > { %v4338_v8 = vpop.f32.mrb[11].mxu1 }
 0x714   : > { %v5867_v9 = vpop.f32.mrb[12].mxu0 }
 0x715   : > { %v5869_v10 = vpop.f32.mrb[12].mxu1  ;;  %v4380_v11 = vpop.f32.mrb[13].mxu0  ;;  %v1607_v12 = vsel %vm1129_vm10, %v5867_v9, -inf }
 0x716   : > { %v4347_v13 = vpop.f32.mrb[13].mxu1  ;;  %1608 = vmax.xlane.f32.xlu0 %v1607_v12 }
 0x718   : > { %v5873_v14 = vpop.f32.mrb[14].mxu0 }
 0x719   : > { %v5875_v16 = vpop.f32.mrb[14].mxu1  ;;  %v4383_v17 = vpop.f32.mrb[15].mxu0  ;;  %v1610_v18 = vsel %vm1136_vm11, %v5873_v14, -inf }
 0x71a   : > { %v4350_v19 = vpop.f32.mrb[15].mxu1  ;;  %1611 = vmax.xlane.f32.xlu1 %v1610_v18 }
 0x71d   : > { %v5879_v20 = vpop.f32.mrb[16].mxu1 }
 0x71e   : > { %v4353_v22 = vpop.f32.mrb[17].mxu1 }
 0x720   : > { %v5881_v23 = vpop.f32.mrb[16].mxu0 }
 0x721   : > { %v4407_v25 = vpop.f32.mrb[17].mxu0  ;;  %v1840_v26 = vsel %vm1129_vm10, %v5881_v23, -inf }
 0x722   : > { %1841 = vmax.xlane.f32.xlu0 %v1840_v26 }
 0x724   : > { %v5885_v27 = vpop.f32.mrb[18].mxu0 }
 0x725   : > { %v4410_v21 = vpop.f32.mrb[19].mxu0  ;;  %v1843_v28 = vsel %vm1129_vm10, %v5885_v27, -inf }
 0x726   : > { %1844 = vmax.xlane.f32.xlu1 %v1843_v28 }
 0x728   : > { %v5889_v29 = vpop.f32.mrb[20].mxu0 }
 0x729   : > { %v4413_v30 = vpop.f32.mrb[21].mxu0  ;;  %v1846_v31 = vsel %vm1136_vm11, %v5889_v29, -inf }
 0x72a   : > { %1847 = vmax.xlane.f32.xlu0 %v1846_v31 }
 0x72c   : > { %v5893_v32 = vpop.f32.mrb[22].mxu0 }
 0x72d   : > { %v4437_v24 = vpop.f32.mrb[23].mxu0  ;;  %v2125_v33 = vsel %vm1129_vm10, %v5893_v32, -inf }
 0x72e   : > { %2126 = vmax.xlane.f32.xlu1 %v2125_v33 }
 0x730   : > { %v5897_v34 = vpop.f32.mrb[24].mxu0 }
 0x731   : > { %v4440_v36 = vpop.f32.mrb[25].mxu0  ;;  %v2128_v38 = vsel %vm1129_vm10, %v5897_v34, -inf }
 0x732   : > { %2129 = vmax.xlane.f32.xlu0 %v2128_v38 }
 0x734   : > { %v5901_v41 = vpop.f32.mrb[26].mxu0 }
 0x735   : > { %v4443_v42 = vpop.f32.mrb[27].mxu0  ;;  %v2131_v43 = vsel %vm1136_vm11, %v5901_v41, -inf }
 0x736   : > { %2132 = vmax.xlane.f32.xlu1 %v2131_v43 }
 0x738   : > { %v5905_v44 = vpop.f32.mrb[28].mxu0 }
 0x739   : > { %v4467_v45 = vpop.f32.mrb[29].mxu0  ;;  %v2361_v46 = vsel %vm1129_vm10, %v5905_v44, -inf }
 0x73a   : > { %2362 = vmax.xlane.f32.xlu0 %v2361_v46 }
 0x73c   : > { %v5909_v47 = vpop.f32.mrb[30].mxu0 }
 0x73d   : > { %v4470_v48 = vpop.f32.mrb[31].mxu0  ;;  %v2364_v51 = vsel %vm1129_vm10, %v5909_v47, -inf }
 0x73e   : > { %2365 = vmax.xlane.f32.xlu1 %v2364_v51 }
 0x740   : > { %v5913_v52 = vpop.f32.mrb[32].mxu0 }
 0x741   : > { %v4473_v35 = vpop.f32.mrb[33].mxu0  ;;  %v2367_v37 = vsel %vm1136_vm11, %v5913_v52, -inf }
 0x742   : > { %2368 = vmax.xlane.f32.xlu0 %v2367_v37 }
 0x744   : > { %v5917_v54 = vpop.f32.mrb[34].mxu0 }
 0x745   : > { %v4497_v55 = vpop.f32.mrb[35].mxu0  ;;  %v2597_v56 = vsel %vm1129_vm10, %v5917_v54, -inf }
 0x746   : > { %2598 = vmax.xlane.f32.xlu1 %v2597_v56  ;;  %v1368_v56 = vsel %vm1129_vm10, %v5869_v10, -inf }
 0x748   : > { %v5921_v57 = vpop.f32.mrb[36].mxu0 }
 0x749   : > { %v4500_v58 = vpop.f32.mrb[37].mxu0  ;;  %v2600_v59 = vsel %vm1129_vm10, %v5921_v57, -inf }
 0x74a   : > { %2601 = vmax.xlane.f32.xlu0 %v2600_v59 }
 0x74c   : > { %v5925_v49 = vpop.f32.mrb[38].mxu0 }
 0x74d   : > { %v4503_v60 = vpop.f32.mrb[39].mxu0  ;;  %v2603_v61 = vsel %vm1136_vm11, %v5925_v49, -inf }
 0x74e   : > { %2604 = vmax.xlane.f32.xlu1 %v2603_v61  ;;  %v1374_v60 = vsel %vm1136_vm11, %v5879_v20, -inf }
 0x750   : > { %v5929_v63 = vpop.f32.mrb[40].mxu0 }
 0x751   : > { %v4527_v1 = vpop.f32.mrb[41].mxu0  ;;  %v2833_v4 = vsel %vm1129_vm10, %v5929_v63, -inf }
 0x752   : > { %2834 = vmax.xlane.f32.xlu0 %v2833_v4 }
 0x754   : > { %v5933_v6 = vpop.f32.mrb[42].mxu0 }
 0x755   : > { %v4530_v8 = vpop.f32.mrb[43].mxu0  ;;  %v2836_v11 = vsel %vm1129_vm10, %v5933_v6, -inf }
 0x756   : > { %2837 = vmax.xlane.f32.xlu1 %v2836_v11 }
 0x758   : > { %v5937_v12 = vpop.f32.mrb[44].mxu0 }
 0x759   : > { %v4533_v13 = vpop.f32.mrb[45].mxu0  ;;  %v2839_v17 = vsel %vm1136_vm11, %v5937_v12, -inf }
 0x75a   : > { %2840 = vmax.xlane.f32.xlu0 %v2839_v17 }
 0x771   : > { %v1606_v18 = vpop.xlane.xlu0 %1605 }
 0x772   : > { %v1613_v19 = vsub.f32 %v5861_v3, %v1606_v18 }
 0x774   : > { %v1616_v22 = vmul.f32 1.442695, %v1613_v19 }
 0x776   : > { %5004 = vpow2.f32 %v1616_v22 }
 0x780   : > { %v5942_v25 = vpop.eup %5004 }
 0x781   : > { %v1622_v26 = vsel %vm1129_vm10, %v5942_v25, 0.0 }
 0x782   : > { %1623 = vadd.xlane.f32.xlu0 %v1622_v26 }
 0x798   : > { %4948 = vrot.lane.b32.xlu0 %v5609_v39, %s5272_s2 }
 0x7a3   : > { %v1609_v21 = vpop.xlane.xlu0 %1608 }
 0x7a4   : > { %v1614_v28 = vsub.f32 %v5867_v9, %v1609_v21 }
 0x7a6   : > { %v1618_v30 = vmul.f32 1.442695, %v1614_v28 }
 0x7a7   : > { %v1612_v31 = vpop.xlane.xlu1 %1611 }
 0x7a8   : > { %5006 = vpow2.f32 %v1618_v30  ;;  %v1615_v61 = vsub.f32 %v5873_v14, %v1612_v31 }
 0x7aa   : > { %v1620_v11 = vmul.f32 1.442695, %v1615_v61 }
 0x7af   : > { %v1842_v46 = vpop.xlane.xlu0 %1841 }
 0x7b0   : > { %v1849_v13 = vsub.f32 %v5881_v23, %v1842_v46 }
 0x7b2   : > { %v5949_v24 = vpop.eup %5006  ;;  %v1852_v19 = vmul.f32 1.442695, %v1849_v13 }
 0x7b3   : > { %v1845_v3 = vpop.xlane.xlu1 %1844  ;;  %v1625_v33 = vsel %vm1129_vm10, %v5949_v24, 0.0 }
 0x7b4   : > { %v1850_v36 = vsub.f32 %v5885_v27, %v1845_v3  ;;  %1626 = vadd.xlane.f32.xlu1 %v1625_v33 }
 0x7b6   : > { %v1854_v38 = vmul.f32 1.442695, %v1850_v36 }
 0x7b7   : > { %v1848_v51 = vpop.xlane.xlu0 %1847 }
 0x7b8   : > { %5008 = vpow2.f32 %v1854_v38  ;;  %v1851_v22 = vsub.f32 %v5889_v29, %v1848_v51 }
 0x7ba   : > { %v1856_v21 = vmul.f32 1.442695, %v1851_v22 }
 0x7bb   : > { %v2127_v42 = vpop.xlane.xlu1 %2126 }
 0x7bc   : > { %v2134_v43 = vsub.f32 %v5893_v32, %v2127_v42 }
 0x7be   : > { %v2137_v45 = vmul.f32 1.442695, %v2134_v43 }
 0x7bf   : > { %v2130_v32 = vpop.xlane.xlu0 %2129 }
 0x7c0   : > { %5010 = vpow2.f32 %v2137_v45  ;;  %v2135_v28 = vsub.f32 %v5897_v34, %v2130_v32  ;;  %v1371_v45 = vsel %vm1129_vm10, %v5875_v16, -inf }
 0x7c1   : > { %5012 = vpow2.f32 %v1620_v11 }
 0x7c2   : > { %v5955_v9 = vpop.eup %5008  ;;  %5014 = vpow2.f32 %v1852_v19  ;;  %v2139_v29 = vmul.f32 1.442695, %v2135_v28 }
 0x7c3   : > { %v1861_v48 = vsel %vm1129_vm10, %v5955_v9, 0.0  ;;  %v2133_v37 = vpop.xlane.xlu1 %2132  ;;  %5016 = vpow2.f32 %v1856_v21 }
 0x7c4   : > { %1862 = vadd.xlane.f32.xlu0 %v1861_v48  ;;  %5018 = vpow2.f32 %v2139_v29  ;;  %v2136_v38 = vsub.f32 %v5901_v41, %v2133_v37 }
 0x7c5   : > { %1405 = vrot.lane.b32.xlu1 %v5613_v40, %s5272_s2 }
 0x7c6   : > { %v2141_v43 = vmul.f32 1.442695, %v2136_v38 }
 0x7c7   : > { %v2363_v55 = vpop.xlane.xlu0 %2362 }
 0x7c8   : > { %5020 = vpow2.f32 %v2141_v43  ;;  %v2370_v61 = vsub.f32 %v5905_v44, %v2363_v55 }
 0x7c9   : > { %4953 = vrot.lane.b32.xlu1 %v5609_v39, %s5273_s28 }
 0x7ca   : > { %v5963_v27 = vpop.eup %5010  ;;  %v2373_v11 = vmul.f32 1.442695, %v2370_v61 }
 0x7cb   : > { %v2143_v35 = vsel %vm1129_vm10, %v5963_v27, 0.0  ;;  %v2366_v58 = vpop.xlane.xlu1 %2365  ;;  %v5993_v31 = vpop.eup %5012 }
 0x7cc   : > { %2144 = vadd.xlane.f32.xlu0 %v2143_v35  ;;  %v1628_v3 = vsel %vm1136_vm11, %v5993_v31, 0.0  ;;  %v5999_v33 = vpop.eup %5014  ;;  %v2371_v13 = vsub.f32 %v5909_v47, %v2366_v58  ;;  %5022 = vpow2.f32 %v2373_v11 }
 0x7cd   : > { %v1858_v34 = vsel %vm1129_vm10, %v5999_v33, 0.0  ;;  %v6003_v36 = vpop.eup %5016 }
 0x7ce   : > { %v1864_v42 = vsel %vm1136_vm11, %v6003_v36, 0.0  ;;  %v6010_v46 = vpop.eup %5018  ;;  %v2375_v19 = vmul.f32 1.442695, %v2371_v13 }
 0x7cf   : > { %v2369_v59 = vpop.xlane.xlu0 %2368  ;;  %v2146_v48 = vsel %vm1129_vm10, %v6010_v46, 0.0 }
 0x7d0   : > { %1369 = vmax.xlane.f32.xlu0 %v1368_v56  ;;  %5024 = vpow2.f32 %v2375_v19 }
 0x7d2   : > { %v6014_v51 = vpop.eup %5020 }
 0x7d3   : > { %v5972_v1 = vpop.xlane.xlu1 %2598  ;;  %v2149_v41 = vsel %vm1136_vm11, %v6014_v51, 0.0 }
 0x7d4   : > { %1375 = vmax.xlane.f32.xlu0 %v1374_v60 }
 0x7d6   : > { %v6028_v21 = vpop.eup %5022 }
 0x7d7   : > { %v5974_v4 = vpop.xlane.xlu0 %2601  ;;  %v2379_v28 = vsel %vm1129_vm10, %v6028_v21, 0.0 }
 0x7d8   : > { %v2607_v8 = vsub.f32 %v5921_v57, %v5974_v4 }
 0x7da   : > { %v6032_v29 = vpop.eup %5024 }
 0x7db   : > { %v5979_v17 = vpop.xlane.xlu1 %2604 }
 0x7dc   : > { %v2608_v18 = vsub.f32 %v5925_v49, %v5979_v17 }
 0x7df   : > { %v5984_v14 = vpop.xlane.xlu0 %2834 }
 0x7e0   : > { %v2842_v26 = vsub.f32 %v5929_v63, %v5984_v14  ;;  %v2613_v14 = vmul.f32 1.442695, %v2608_v18 }
 0x7e3   : > { %v2838_v47 = vpop.xlane.xlu1 %2837 }
 0x7e7   : > { %v5989_v23 = vpop.xlane.xlu0 %2840 }
 0x7e8   : > { %v2844_v30 = vsub.f32 %v5937_v12, %v5989_v23 }
 0x7ea   : > { %1641 = vrot.lane.b32.xlu0 %v5613_v40, %s5273_s28 }
 0x7ed   : > { %1629 = vadd.xlane.f32.xlu1 %v1628_v3 }
 0x7f1   : > { %1859 = vadd.xlane.f32.xlu1 %v1858_v34 }
 0x7f5   : > { %1865 = vadd.xlane.f32.xlu1 %v1864_v42 }
 0x7f9   : > { %1372 = vmax.xlane.f32.xlu1 %v1371_v45 }
 0x7fd   : > { %2147 = vadd.xlane.f32.xlu1 %v2146_v48  ;;  %v2611_v48 = vmul.f32 1.442695, %v2607_v8 }
 0x809   : > { %2150 = vadd.xlane.f32.xlu0 %v2149_v41 }
 0x80e   : > { %4958 = vrot.lane.b32.xlu1 %v5609_v39, %s5274_s25  ;;  %v2372_v39 = vsub.f32 %v5913_v52, %v2369_v59  ;;  %v2606_v59 = vsub.f32 %v5917_v54, %v5972_v1 }
 0x80f   : > { %v6020_v32 = vpop.xlane.xlu0 %1623 }
 0x810   : > { %v2377_v22 = vmul.f32 1.442695, %v2372_v39  ;;  %v2609_v34 = vmul.f32 1.442695, %v2606_v59 }
 0x812   : > { %5026 = vpow2.f32 %v2377_v22 }
 0x813   : > { %v4949_v35 = vpop.permute.xlu0 %4948  ;;  %5028 = vpow2.f32 %v2609_v34 }
 0x814   : > { %v4951_v37 = vunpack.i.h.bf16 %v4949_v35  ;;  %v4950_v56 = vunpack.i.l.bf16 %v4949_v35 }
 0x816   : > { %v4718_v60 = vpack.c.bf16 %v4951_v37, %v4950_v56 }
 0x818   : > { %4719 = vmatpush3.bf16.msra.mxu1 %v4718_v60 }
 0x819   : > { %4358 = vmatprep.subr.mxu1 %v5263_v5 }
 0x81c   : > { %v6036_v44 = vpop.eup %5026 }
 0x81d   : > { %v2385_v52 = vsel %vm1136_vm11, %v6036_v44, 0.0  ;;  %v6057_v1 = vpop.eup %5028 }
 0x81e   : > { %v2615_v37 = vsel %vm1129_vm10, %v6057_v1, 0.0 }
 0x81f   : > { %1877 = vrot.lane.b32.xlu0 %v5613_v40, %s5274_s25  ;;  %v2382_v40 = vsel %vm1129_vm10, %v6032_v29, 0.0 }
 0x832   : > { %2380 = vadd.xlane.f32.xlu1 %v2379_v28 }
 0x836   : > { %2383 = vadd.xlane.f32.xlu1 %v2382_v40 }
 0x83e   : > { %2386 = vadd.xlane.f32.xlu0 %v2385_v52  ;;  %v2845_v52 = vmul.f32 1.442695, %v2842_v26 }
 0x841   : > { %v6040_v55 = vpop.xlane.xlu1 %1626 }
 0x845   : > { %v1406_v58 = vpop.permute.xlu1 %1405 }
 0x846   : > { %4359 = vmatpush3.msk.msra.mxu1 %vm1181_vm13, %v1406_v58  ;;  %v2843_v58 = vsub.f32 %v5933_v6, %v2838_v47 }
 0x847   : > { %4963 = vrot.lane.b32.xlu1 %v5699_v53, %s5265_s14  ;;  %4724 = vmatprep.subr.bf16.mxu1 %v5261_v2 }
 0x848   : > { %v2847_v59 = vmul.f32 1.442695, %v2843_v58 }
 0x851   : > { %v6048_v3 = vpop.xlane.xlu0 %1862 }
 0x859   : > { %v6050_v38 = vpop.xlane.xlu0 %2144 }
 0x85d   : > { %v1370_v42 = vpop.xlane.xlu0 %1369 }
 0x85e   : > { %v1377_v43 = vsub.f32 %v5869_v10, %v1370_v42 }
 0x860   : > { %v1380_v45 = vmul.f32 1.442695, %v1377_v43 }
 0x861   : > { %v1376_v41 = vpop.xlane.xlu0 %1375 }
 0x862   : > { %5030 = vpow2.f32 %v1380_v45  ;;  %v1379_v35 = vsub.f32 %v5879_v20, %v1376_v41  ;;  %v4954_v20 = vpop.permute.xlu1 %4953 }
 0x863   : > { %5032 = vpow2.f32 %v2611_v48  ;;  %v4956_v41 = vunpack.i.h.bf16 %v4954_v20 }
 0x864   : > { %v1384_v54 = vmul.f32 1.442695, %v1379_v35  ;;  %v4955_v35 = vunpack.i.l.bf16 %v4954_v20 }
 0x866   : > { %5034 = vpow2.f32 %v1384_v54 }
 0x86b   : > { %2616 = vadd.xlane.f32.xlu1 %v2615_v37  ;;  %v4725_v37 = vpack.c.bf16 %v4956_v41, %v4955_v35 }
 0x86c   : > { %v5031_v56 = vpop.eup %5030 }
 0x86d   : > { %v1386_v10 = vsel %vm1129_vm10, %v5031_v56, 0.0  ;;  %v6062_v60 = vpop.eup %5032 }
 0x86e   : > { %v2618_v57 = vsel %vm1129_vm10, %v6062_v60, 0.0 }
 0x86f   : > { %1387 = vadd.xlane.f32.xlu1 %v1386_v10 }
 0x870   : > { %v6066_v4 = vpop.eup %5034 }
 0x871   : > { %v1392_v8 = vsel %vm1136_vm11, %v6066_v4, 0.0 }
 0x873   : > { %2619 = vadd.xlane.f32.xlu1 %v2618_v57 }
 0x877   : > { %1393 = vadd.xlane.f32.xlu1 %v1392_v8 }
 0x87a   : > { %v6070_v61 = vpop.xlane.xlu1 %1629 }
 0x87e   : > { %v6072_v11 = vpop.xlane.xlu1 %1859 }
 0x882   : > { %v6074_v13 = vpop.xlane.xlu1 %1865 }
 0x886   : > { %v1373_v19 = vpop.xlane.xlu1 %1372 }
 0x887   : > { %v1378_v39 = vsub.f32 %v5875_v16, %v1373_v19  ;;  %v2849_v16 = vmul.f32 1.442695, %v2844_v30 }
 0x888   : > { %4968 = vrot.lane.b32.xlu1 %v5699_v53, %s5272_s2 }
 0x889   : > { %v1382_v22 = vmul.f32 1.442695, %v1378_v39 }
 0x88a   : > { %v6110_v30 = vpop.xlane.xlu1 %2147 }
 0x88b   : > { %5036 = vpow2.f32 %v1382_v22 }
 0x88c   : > { %5038 = vpow2.f32 %v2845_v52 }
 0x88d   : > { %5040 = vpow2.f32 %v2847_v59 }
 0x88e   : > { %5042 = vpow2.f32 %v2849_v16  ;;  %v4959_v47 = vpop.permute.xlu1 %4958 }
 0x88f   : > { %5044 = vpow2.f32 %v2613_v14  ;;  %v4961_v59 = vunpack.i.h.bf16 %v4959_v47  ;;  %v4960_v16 = vunpack.i.l.bf16 %v4959_v47 }
 0x895   : > { %v5037_v28 = vpop.eup %5036 }
 0x896   : > { %v1389_v40 = vsel %vm1129_vm10, %v5037_v28, 0.0  ;;  %v6087_v34 = vpop.eup %5038 }
 0x897   : > { %1390 = vadd.xlane.f32.xlu0 %v1389_v40  ;;  %v2851_v42 = vsel %vm1129_vm10, %v6087_v34, 0.0  ;;  %v6091_v43 = vpop.eup %5040 }
 0x898   : > { %v2854_v63 = vsel %vm1129_vm10, %v6091_v43, 0.0  ;;  %v6097_v6 = vpop.eup %5042 }
 0x899   : > { %v2857_v12 = vsel %vm1136_vm11, %v6097_v6, 0.0  ;;  %v6106_v26 = vpop.eup %5044 }
 0x89a   : > { %v2621_v23 = vsel %vm1136_vm11, %v6106_v26, 0.0 }
 0x8ac   : > { %2852 = vadd.xlane.f32.xlu1 %v2851_v42 }
 0x8ad   : > { %2162 = vrot.lane.b32.xlu0 %v5691_v50, %s5265_s14  ;;  %s5276_s14 = smov 16  }
 0x8b0   : > { %2855 = vadd.xlane.f32.xlu1 %v2854_v63 }
 0x8b4   : > { %2858 = vadd.xlane.f32.xlu1 %v2857_v12 }
 0x8bf   : > { %v6116_v49 = vpop.xlane.xlu1 %2380 }
 0x8c3   : > { %v6120_v17 = vpop.xlane.xlu1 %2383 }
 0x8c5   : > { %4978 = vrot.lane.b32.xlu1 %v5699_v53, %s5274_s25 }
 0x8c7   : > { %v6124_v18 = vpop.permute.xlu1 %4963 }
 0x8c8   : > { %v4965_v42 = vunpack.i.l.bf16 %v6124_v18 }
 0x8cc   : > { %2622 = vadd.xlane.f32.xlu0 %v2621_v23 }
 0x8e2   : > { %2398 = vrot.lane.b32.xlu0 %v5691_v50, %s5272_s2 }
 0x8e6   : > { %4973 = vrot.lane.b32.xlu0 %v5699_v53, %s5273_s28 }
 0x8ea   : > { %2634 = vrot.lane.b32.xlu0 %v5691_v50, %s5273_s28 }
 0x8ee   : > { %2870 = vrot.lane.b32.xlu0 %v5691_v50, %s5274_s25  ;;  %v1642_v50 = vpop.permute.xlu0 %1641 }
 0x8f2   : > { %v2151_v10 = vpop.xlane.xlu0 %2150 }
 0x8f6   : > { %v1878_v57 = vpop.permute.xlu0 %1877 }
 0x8f8   : > { %v6126_v45 = vpop.xlane.xlu1 %2616 }
 0x8fa   : > { %v6136_v20 = vpop.xlane.xlu0 %2386 }
 0x8fc   : > { %v1388_v48 = vpop.xlane.xlu1 %1387 }
 0x8fd   : > { %5046 = vrcp.f32 %v1388_v48 }
 0x900   : > { %v6134_v8 = vpop.xlane.xlu1 %2619 }
 0x907   : > { %v5047_v54 = vpop.eup %5046 }
 0x908   : > { %v1398_v53 = vmul.f32 %v5047_v54, %v5031_v56  ;;  %v1394_v56 = vpop.xlane.xlu1 %1393 }
 0x90a   : > { %4361 = vmatmul.mubr.msk.f32.vlgmr.msra.gmra.mrb[18].mxu1 %vm1129_vm10, %v1398_v53 }
 0x90b   : > { %4726 = vmatpush3.bf16.msra.mxu1 %v4725_v37  ;;  %4363 = vmatprep.mubr.msk.f32.mxu1 %vm5262_vm6, %v5263_v5 }
 0x90c   : > { %4388 = vmatprep.subr.mxu1 %v5263_v5  ;;  %v4969_v12 = vpop.permute.xlu1 %4968 }
 0x90d   : > { %v4970_v47 = vunpack.i.l.bf16 %v4969_v12 }
 0x90f   : > { %4389 = vmatpush3.msk.msra.mxu1 %vm1181_vm13, %v1642_v50 }
 0x910   : > { %4731 = vmatprep.subr.bf16.mxu1 %v5261_v2 }
 0x924   : > { %v1391_v19 = vpop.xlane.xlu0 %1390 }
 0x925   : > { %5048 = vrcp.f32 %v1391_v19 }
 0x926   : > { %5050 = vrcp.f32 %v1394_v56 }
 0x927   : > { %5052 = vrcp.f32 %v6020_v32 }
 0x928   : > { %5054 = vrcp.f32 %v6040_v55  ;;  %v2163_v14 = vpop.permute.xlu0 %2162 }
 0x929   : > { %5056 = vrcp.f32 %v6070_v61 }
 0x92a   : > { %5058 = vrcp.f32 %v6072_v11  ;;  %v4966_v11 = vunpack.i.h.bf16 %v6124_v18 }
 0x92b   : > { %5060 = vrcp.f32 %v6048_v3 }
 0x92c   : > { %5062 = vrcp.f32 %v6074_v13  ;;  %v4739_v63 = vpack.c.bf16 %v4966_v11, %v4965_v42 }
 0x92d   : > { %5064 = vrcp.f32 %v6050_v38 }
 0x92e   : > { %5066 = vrcp.f32 %v6110_v30  ;;  %v4971_v30 = vunpack.i.h.bf16 %v4969_v12 }
 0x92f   : > { %v5049_v39 = vpop.eup %5048  ;;  %5068 = vrcp.f32 %v2151_v10 }
 0x930   : > { %v1399_v22 = vmul.f32 %v5049_v39, %v5037_v28  ;;  %v5051_v40 = vpop.eup %5050  ;;  %v4732_v28 = vpack.c.bf16 %v4961_v59, %v4960_v16  ;;  %5070 = vrcp.f32 %v6116_v49  ;;  %v4746_v48 = vpack.c.bf16 %v4971_v30, %v4970_v47 }
 0x931   : > { %v1400_v52 = vmul.f32 %v5051_v40, %v6066_v4  ;;  %v5053_v58 = vpop.eup %5052  ;;  %5072 = vrcp.f32 %v6120_v17 }
 0x932   : > { %4364 = vmatmul.mubr.msk.f32.gmra.mrb[20].mxu1 %vm1129_vm10, %v1399_v22  ;;  %v1634_v32 = vmul.f32 %v5053_v58, %v5942_v25  ;;  %v5055_v55 = vpop.eup %5054  ;;  %5074 = vrcp.f32 %v6136_v20 }
 0x933   : > { %4366 = vmatprep.mubr.msk.f32.mxu1 %vm5262_vm6, %v5263_v5  ;;  %v1635_v4 = vmul.f32 %v5055_v55, %v5949_v24  ;;  %v5057_v61 = vpop.eup %5056  ;;  %5076 = vrcp.f32 %v6126_v45 }
 0x934   : > { %v1636_v25 = vmul.f32 %v5057_v61, %v5993_v31  ;;  %v5059_v3 = vpop.eup %5058  ;;  %5078 = vrcp.f32 %v6134_v8 }
 0x935   : > { %v1870_v24 = vmul.f32 %v5059_v3, %v5999_v33  ;;  %v5061_v13 = vpop.eup %5060  ;;  %v3021_v3 = vld [vmem:[%s5508_s29 + $0x8] sm:$0xff] }
 0x936   : > { %4367 = vmatmul.mubr.msk.f32.gmra.mrb[22].mxu1 %vm1129_vm10, %v1400_v52  ;;  %v1871_v31 = vmul.f32 %v5061_v13, %v5955_v9  ;;  %v5063_v38 = vpop.eup %5062  ;;  %v3023_v13 = vld [vmem:[%s5508_s29 + $0x18] sm:$0xff] }
 0x937   : > { %4390 = vmatprep.mubr.msk.f32.mxu1 %vm5262_vm6, %v5263_v5  ;;  %v1872_v33 = vmul.f32 %v5063_v38, %v6003_v36  ;;  %v5065_v23 = vpop.eup %5064 }
 0x938   : > { %v2155_v9 = vmul.f32 %v5065_v23, %v5963_v27  ;;  %v5067_v18 = vpop.eup %5066 }
 0x939   : > { %v2853_v41 = vpop.xlane.xlu1 %2852  ;;  %v2156_v36 = vmul.f32 %v5067_v18, %v6010_v46  ;;  %v5069_v35 = vpop.eup %5068 }
 0x93a   : > { %4391 = vmatmul.mubr.msk.f32.vlgmr.msra.gmra.mrb[24].mxu1 %vm1129_vm10, %v1634_v32  ;;  %v2157_v49 = vmul.f32 %v5069_v35, %v6014_v51  ;;  %v5071_v53 = vpop.eup %5070 }
 0x93b   : > { %4733 = vmatpush3.bf16.msra.mxu1 %v4732_v28  ;;  %4393 = vmatprep.mubr.msk.f32.mxu1 %vm5262_vm6, %v5263_v5  ;;  %v2391_v46 = vmul.f32 %v5071_v53, %v6028_v21  ;;  %v5073_v50 = vpop.eup %5072 }
 0x93c   : > { %4418 = vmatprep.subr.mxu1 %v5263_v5  ;;  %v2392_v10 = vmul.f32 %v5073_v50, %v6032_v29  ;;  %v5075_v45 = vpop.eup %5074 }
 0x93d   : > { %v2856_v27 = vpop.xlane.xlu1 %2855  ;;  %v2393_v19 = vmul.f32 %v5075_v45, %v6036_v44  ;;  %v5077_v8 = vpop.eup %5076 }
 0x93e   : > { %4394 = vmatmul.mubr.msk.f32.gmra.mrb[26].mxu1 %vm1129_vm10, %v1635_v4  ;;  %v2627_v29 = vmul.f32 %v5077_v8, %v6057_v1  ;;  %v5079_v52 = vpop.eup %5078 }
 0x93f   : > { %4419 = vmatpush3.msk.msra.mxu1 %vm1181_vm13, %v1878_v57  ;;  %4396 = vmatprep.mubr.msk.f32.mxu1 %vm5262_vm6, %v5263_v5  ;;  %v2628_v44 = vmul.f32 %v5079_v52, %v6062_v60 }
 0x940   : > { %4738 = vmatprep.subr.bf16.mxu1 %v5261_v2 }
 0x941   : > { %v2859_v17 = vpop.xlane.xlu1 %2858 }
 0x942   : > { %4397 = vmatmul.mubr.msk.f32.gmra.mrb[28].mxu1 %vm1129_vm10, %v1636_v25  ;;  %v3020_v25 = vld [vmem:[%s5508_s29] sm:$0xff] }
 0x943   : > { %4420 = vmatprep.mubr.msk.f32.mxu1 %vm5262_vm6, %v5263_v5  ;;  %v4763_v42 = vpack.c.bf16 %v3021_v3, %v3020_v25 }
 0x945   : > { %v4979_v20 = vpop.permute.xlu1 %4978  ;;  %4764 = vmatpush3.bf16.msra.mxu0 %v4763_v42 }
 0x946   : > { %4421 = vmatmul.mubr.msk.f32.vlgmr.msra.gmra.mrb[30].mxu1 %vm1129_vm10, %v1870_v24  ;;  %v4981_v39 = vunpack.i.h.bf16 %v4979_v20  ;;  %v4980_v22 = vunpack.i.l.bf16 %v4979_v20  ;;  %4765 = vmatprep.subr.bf16.mxu0 %v5261_v2  ;;  %v3022_v24 = vld [vmem:[%s5508_s29 + $0x10] sm:$0xff]  ;;  %s5277_s29 = smov 24  }
 0x947   : > { %4740 = vmatpush3.bf16.msra.mxu1 %v4739_v63  ;;  %4423 = vmatprep.mubr.msk.f32.mxu1 %vm5262_vm6, %v5263_v5 }
 0x948   : > { %4448 = vmatprep.subr.mxu1 %v5263_v5  ;;  %v4760_v58 = vpack.c.bf16 %v4981_v39, %v4980_v22 }
 0x94a   : > { %4424 = vmatmul.mubr.msk.f32.gmra.mrb[32].mxu1 %vm1129_vm10, %v1871_v31  ;;  %v4766_v31 = vpack.c.bf16 %v3023_v13, %v3022_v24 }
 0x94b   : > { %4449 = vmatpush3.msk.msra.mxu1 %vm1181_vm13, %v2163_v14  ;;  %4426 = vmatprep.mubr.msk.f32.mxu1 %vm5262_vm6, %v5263_v5 }
 0x94c   : > { %4745 = vmatprep.subr.bf16.mxu1 %v5261_v2  ;;  %4767 = vmatpush3.bf16.msra.mxu0 %v4766_v31 }
 0x94d   : > { %4774 = vmatprep.subr.bf16.mxu0 %v5261_v2 }
 0x94e   : > { %4427 = vmatmul.mubr.msk.f32.gmra.mrb[34].mxu1 %vm1129_vm10, %v1872_v33 }
 0x94f   : > { %4450 = vmatprep.mubr.msk.f32.mxu1 %vm5262_vm6, %v5263_v5 }
 0x952   : > { %4451 = vmatmul.mubr.msk.f32.vlgmr.msra.gmra.mrb[36].mxu1 %vm1129_vm10, %v2155_v9 }
 0x953   : > { %4747 = vmatpush3.bf16.msra.mxu1 %v4746_v48  ;;  %4453 = vmatprep.mubr.msk.f32.mxu1 %vm5262_vm6, %v5263_v5 }
 0x954   : > { %4478 = vmatprep.subr.mxu1 %v5263_v5 }
 0x956   : > { %4454 = vmatmul.mubr.msk.f32.gmra.mrb[38].mxu1 %vm1129_vm10, %v2156_v36 }
 0x957   : > { %4456 = vmatprep.mubr.msk.f32.mxu1 %vm5262_vm6, %v5263_v5 }
 0x959   : > { %v2623_v54 = vpop.xlane.xlu0 %2622 }
 0x95a   : > { %4457 = vmatmul.mubr.msk.f32.gmra.mrb[40].mxu1 %vm1129_vm10, %v2157_v49  ;;  %5080 = vrcp.f32 %v2623_v54 }
 0x95b   : > { %4480 = vmatprep.mubr.msk.f32.mxu1 %vm5262_vm6, %v5263_v5  ;;  %5082 = vrcp.f32 %v2853_v41 }
 0x95c   : > { %5084 = vrcp.f32 %v2856_v27 }
 0x95d   : > { %v2399_v37 = vpop.permute.xlu0 %2398  ;;  %5086 = vrcp.f32 %v2859_v17 }
 0x95e   : > { %4479 = vmatpush3.msk.msra.mxu1 %vm1181_vm13, %v2399_v37 }
 0x95f   : > { %4481 = vmatmul.mubr.msk.f32.vlgmr.msra.gmra.mrb[42].mxu1 %vm1129_vm10, %v2391_v46  ;;  %4752 = vmatprep.subr.bf16.mxu1 %v5261_v2 }
 0x960   : > { %4483 = vmatprep.mubr.msk.f32.mxu1 %vm5262_vm6, %v5263_v5 }
 0x961   : > { %v4974_v51 = vpop.permute.xlu0 %4973 }
 0x962   : > { %v4976_v57 = vunpack.i.h.bf16 %v4974_v51  ;;  %v4975_v21 = vunpack.i.l.bf16 %v4974_v51 }
 0x963   : > { %4484 = vmatmul.mubr.msk.f32.gmra.mrb[44].mxu1 %vm1129_vm10, %v2392_v10 }
 0x964   : > { %v4753_v56 = vpack.c.bf16 %v4976_v57, %v4975_v21  ;;  %4486 = vmatprep.mubr.msk.f32.mxu1 %vm5262_vm6, %v5263_v5  ;;  %v5081_v59 = vpop.eup %5080 }
 0x965   : > { %v2635_v40 = vpop.permute.xlu0 %2634  ;;  %v2629_v16 = vmul.f32 %v5081_v59, %v6106_v26  ;;  %v5083_v32 = vpop.eup %5082 }
 0x966   : > { %4754 = vmatpush3.bf16.msra.mxu1 %v4753_v56  ;;  %v2863_v60 = vmul.f32 %v5083_v32, %v6087_v34  ;;  %v5085_v55 = vpop.eup %5084 }
 0x967   : > { %4487 = vmatmul.mubr.msk.f32.gmra.mrb[46].mxu1 %vm1129_vm10, %v2393_v19  ;;  %4508 = vmatprep.subr.mxu1 %v5263_v5  ;;  %v2864_v26 = vmul.f32 %v5085_v55, %v6091_v43  ;;  %v5087_v28 = vpop.eup %5086 }
 0x968   : > { %4510 = vmatprep.mubr.msk.f32.mxu1 %vm5262_vm6, %v5263_v5  ;;  %v2865_v4 = vmul.f32 %v5087_v28, %v6097_v6 }
 0x969   : > { %v2871_v1 = vpop.permute.xlu0 %2870 }
 0x96a   : > { %4509 = vmatpush3.msk.msra.mxu1 %vm1181_vm13, %v2635_v40 }
 0x96b   : > { %4511 = vmatmul.mubr.msk.f32.vlgmr.msra.gmra.mrb[48].mxu1 %vm1129_vm10, %v2627_v29  ;;  %4759 = vmatprep.subr.bf16.mxu1 %v5261_v2 }
 0x96c   : > { %4761 = vmatpush3.bf16.msra.mxu1 %v4760_v58  ;;  %4513 = vmatprep.mubr.msk.f32.mxu1 %vm5262_vm6, %v5263_v5 }
 0x96d   : > { %4538 = vmatprep.subr.mxu1 %v5263_v5 }
 0x96f   : > { %4514 = vmatmul.mubr.msk.f32.gmra.mrb[50].mxu1 %vm1129_vm10, %v2628_v44 }
 0x970   : > { %4539 = vmatpush3.msk.msra.mxu1 %vm1181_vm13, %v2871_v1  ;;  %4516 = vmatprep.mubr.msk.f32.mxu1 %vm5262_vm6, %v5263_v5 }
 0x971   : > { %4768 = vmatprep.subr.bf16.mxu1 %v5261_v2 }
 0x973   : > { %4517 = vmatmul.mubr.msk.f32.gmra.mrb[52].mxu1 %vm1129_vm10, %v2629_v16 }
 0x974   : > { %4540 = vmatprep.mubr.msk.f32.mxu1 %vm5262_vm6, %v5263_v5 }
 0x977   : > { %4541 = vmatmul.mubr.msk.f32.vlgmr.msra.gmra.mrb[54].mxu1 %vm1129_vm10, %v2863_v60 }
 0x978   : > { %4543 = vmatprep.mubr.msk.f32.mxu1 %vm5262_vm6, %v5263_v5 }
 0x97b   : > { %4544 = vmatmul.mubr.msk.f32.gmra.mrb[56].mxu1 %vm1129_vm10, %v2864_v26 }
 0x97c   : > { %4546 = vmatprep.mubr.msk.f32.mxu1 %vm5262_vm6, %v5263_v5 }
 0x97f   : > { %4547 = vmatmul.mubr.msk.f32.gmra.mrb[58].mxu1 %vm1129_vm10, %v2865_v4 }
 0x980   : > { %4580 = vmatprep.mubr.msk.f32.mxu1 %vm5262_vm6, %v5263_v5 }
 0x9dd   : > { %v1486_v34 = vpop.f32.mrb[18].mxu1 }
 0x9de   : > { %1975 = vrot.lane.b32.xlu0 %v1486_v34, %s5275_s21  ;;  %v4362_v43 = vpop.f32.mrb[19].mxu1 }
 0xa05   : > { %v1491_v61 = vpop.f32.mrb[20].mxu1 }
 0xa06   : > { %1977 = vrot.lane.b32.xlu1 %v1491_v61, %s5275_s21  ;;  %v4365_v11 = vpop.f32.mrb[21].mxu1 }
 0xa09   : > { %v1496_v6 = vpop.f32.mrb[22].mxu1 }
 0xa0a   : > { %1979 = vrot.lane.b32.xlu0 %v1496_v6, %s5275_s21  ;;  %v4368_v63 = vpop.f32.mrb[23].mxu1 }
 0xa0d   : > { %v1722_v38 = vpop.f32.mrb[24].mxu1 }
 0xa0e   : > { %1987 = vrot.lane.b32.xlu0 %v1722_v38, %s5276_s14  ;;  %v4392_v12 = vpop.f32.mrb[25].mxu1 }
 0xa11   : > { %v1727_v14 = vpop.f32.mrb[26].mxu1 }
 0xa12   : > { %1989 = vrot.lane.b32.xlu0 %v1727_v14, %s5276_s14  ;;  %v4395_v33 = vpop.f32.mrb[27].mxu1 }
 0xa15   : > { %v1732_v23 = vpop.f32.mrb[28].mxu1 }
 0xa16   : > { %1991 = vrot.lane.b32.xlu0 %v1732_v23, %s5276_s14  ;;  %v4398_v30 = vpop.f32.mrb[29].mxu1 }
 0xa19   : > { %v1958_v47 = vpop.f32.mrb[30].mxu1 }
 0xa1a   : > { %1999 = vrot.lane.b32.xlu0 %v1958_v47, %s5277_s29  ;;  %v4422_v9 = vpop.f32.mrb[31].mxu1 }
 0xa1d   : > { %v1963_v18 = vpop.f32.mrb[32].mxu1 }
 0xa1e   : > { %2001 = vrot.lane.b32.xlu0 %v1963_v18, %s5277_s29  ;;  %v4425_v48 = vpop.f32.mrb[33].mxu1 }
 0xa21   : > { %v1968_v41 = vpop.f32.mrb[34].mxu1 }
 0xa22   : > { %2003 = vrot.lane.b32.xlu1 %v1968_v41, %s5277_s29  ;;  %v4428_v36 = vpop.f32.mrb[35].mxu1 }
 0xa25   : > { %v2243_v35 = vpop.f32.mrb[36].mxu1 }
 0xa26   : > { %v4452_v27 = vpop.f32.mrb[37].mxu1 }
 0xa29   : > { %v6262_v49 = vpop.f32.mrb[38].mxu1 }
 0xa2a   : > { %v4455_v54 = vpop.f32.mrb[39].mxu1 }
 0xa2d   : > { %v6264_v53 = vpop.f32.mrb[40].mxu1 }
 0xa2e   : > { %v4458_v46 = vpop.f32.mrb[41].mxu1 }
 0xa32   : > { %v2479_v17 = vpop.f32.mrb[42].mxu1 }
 0xa33   : > { %2968 = vrot.lane.b32.xlu1 %v2479_v17, %s5275_s21  ;;  %v4482_v37 = vpop.f32.mrb[43].mxu1  ;;  %v6318_v17 = vld [vmem:[%s5498_s17] sm:$0x3f] }
 0xa36   : > { %v2484_v50 = vpop.f32.mrb[44].mxu1 }
 0xa37   : > { %2970 = vrot.lane.b32.xlu0 %v2484_v50, %s5275_s21  ;;  %v4485_v51 = vpop.f32.mrb[45].mxu1 }
 0xa3a   : > { %v2489_v10 = vpop.f32.mrb[46].mxu1 }
 0xa3b   : > { %v4488_v45 = vpop.f32.mrb[47].mxu1 }
 0xa3c   : > { %v5109_v45 = vld [vmem:[#allocation2] sm:$0xff] }
 0xa3e   : > { %v2715_v57 = vpop.f32.mrb[48].mxu1 }
 0xa3f   : > { %2980 = vrot.lane.b32.xlu1 %v2715_v57, %s5276_s14  ;;  %v4512_v21 = vpop.f32.mrb[49].mxu1 }
 0xa42   : > { %v2720_v20 = vpop.f32.mrb[50].mxu1 }
 0xa43   : > { %2982 = vrot.lane.b32.xlu1 %v2720_v20, %s5276_s14  ;;  %v4515_v56 = vpop.f32.mrb[51].mxu1 }
 0xa46   : > { %v2725_v19 = vpop.f32.mrb[52].mxu1 }
 0xa47   : > { %v4518_v8 = vpop.f32.mrb[53].mxu1 }
 0xa48   : > { %v5110_v8 = vld [vmem:[#allocation2 + $0x8] sm:$0xff] }
 0xa4a   : > { %v2951_v39 = vpop.f32.mrb[54].mxu1 }
 0xa4b   : > { %2992 = vrot.lane.b32.xlu1 %v2951_v39, %s5277_s29  ;;  %v4542_v22 = vpop.f32.mrb[55].mxu1 }
 0xa4e   : > { %v2956_v29 = vpop.f32.mrb[56].mxu1 }
 0xa4f   : > { %2972 = vrot.lane.b32.xlu1 %v2489_v10, %s5275_s21  ;;  %2994 = vrot.lane.b32.xlu0 %v2956_v29, %s5277_s29  ;;  %v4545_v40 = vpop.f32.mrb[57].mxu1 }
 0xa50   : > { %v1976_v44 = vpop.permute.xlu0 %1975 }
 0xa51   : > { %v2008_v55 = vsel %vm1036_vm8, %v5857_v62, %v1976_v44 }
 0xa52   : > { %v2961_v52 = vpop.f32.mrb[58].mxu1 }
 0xa53   : > { %2984 = vrot.lane.b32.xlu0 %v2725_v19, %s5276_s14  ;;  %2996 = vrot.lane.b32.xlu1 %v2961_v52, %s5277_s29  ;;  %v4548_v58 = vpop.f32.mrb[59].mxu1 }
 0xa54   : > { %v5111_v58 = vld [vmem:[#allocation2 + $0x10] sm:$0xff] }
 0xa78   : > { %v1978_v26 = vpop.permute.xlu1 %1977 }
 0xa79   : > { %v2009_v43 = vsel %vm1036_vm8, %v5859_v0, %v1978_v26 }
 0xa7c   : > { %v1980_v59 = vpop.permute.xlu0 %1979 }
 0xa7d   : > { %v2010_v1 = vsel %vm1036_vm8, %v5865_v7, %v1980_v59 }
 0xa80   : > { %v1988_v16 = vpop.permute.xlu0 %1987 }
 0xa81   : > { %v2012_v28 = vsel %vm2011_vm14, %v2008_v55, %v1988_v16 }
 0xa84   : > { %v1990_v32 = vpop.permute.xlu0 %1989 }
 0xa85   : > { %v2013_v7 = vsel %vm2011_vm14, %v2009_v43, %v1990_v32  ;;  %v5113_v43 = vld [vmem:[#allocation2 + $0x20] sm:$0x3] }
 0xa88   : > { %v1992_v60 = vpop.permute.xlu0 %1991 }
 0xa89   : > { %v2014_v31 = vsel %vm2011_vm14, %v2010_v1, %v1992_v60  ;;  %v5112_v60 = vld [vmem:[#allocation2 + $0x18] sm:$0xff] }
 0xa8c   : > { %v2000_v4 = vpop.permute.xlu0 %1999 }
 0xa8d   : > { %v2016_v34 = vsel %vm2015_vm15, %v2012_v28, %v2000_v4 }
 0xa8e   : > { %4558 = vmatmul.mubr.msk.f32.vlgmr.msra.gmra.mrb[46].mxu0 %vm832_vm5, %v2016_v34 }
 0xa8f   : > { %4560 = vmatprep.mubr.msk.f32.mxu0 %vm5262_vm6, %v5263_v5 }
 0xa90   : > { %v2002_v61 = vpop.permute.xlu0 %2001 }
 0xa91   : > { %v2017_v25 = vsel %vm2015_vm15, %v2013_v7, %v2002_v61 }
 0xa92   : > { %4561 = vmatmul.mubr.msk.f32.gmra.mrb[48].mxu0 %vm832_vm5, %v2017_v25 }
 0xa93   : > { %4563 = vmatprep.mubr.msk.f32.mxu0 %vm5262_vm6, %v5263_v5 }
 0xa94   : > { %v2004_v62 = vpop.permute.xlu1 %2003 }
 0xa95   : > { %v2018_v12 = vsel %vm2015_vm15, %v2014_v31, %v2004_v62  ;;  %v3219_v31 = vld [vmem:[%s5513_s1] sm:$0xff] }
 0xaa5   : > { %v2969_v3 = vpop.permute.xlu1 %2968 }
 0xaa6   : > { %v3001_v6 = vsel %vm1036_vm8, %v2243_v35, %v2969_v3 }
 0xaa9   : > { %v2971_v0 = vpop.permute.xlu0 %2970 }
 0xaaa   : > { %v3002_v14 = vsel %vm1036_vm8, %v6262_v49, %v2971_v0 }
 0xab1   : > { %v2981_v11 = vpop.permute.xlu1 %2980 }
 0xab2   : > { %v3004_v24 = vsel %vm2011_vm14, %v3001_v6, %v2981_v11 }
 0xab5   : > { %v2983_v42 = vpop.permute.xlu1 %2982 }
 0xab6   : > { %v3005_v33 = vsel %vm2011_vm14, %v3002_v14, %v2983_v42  ;;  %v3221_v14 = vld [vmem:[%s5513_s1 + $0x10] sm:$0xff] }
 0xabd   : > { %v2993_v13 = vpop.permute.xlu1 %2992 }
 0xabe   : > { %v3007_v63 = vsel %vm2015_vm15, %v3004_v24, %v2993_v13 }
 0xabf   : > { %v3013_v38 = vrot.slane %v3007_v63, 7 }
 0xac1   : > { %v2973_v23 = vpop.permute.xlu1 %2972  ;;  %v2995_v30 = vpop.permute.xlu0 %2994  ;;  %v3019_v47 = vsel %vm1181_vm13, %v2018_v12, %v3013_v38 }
 0xac2   : > { %v3008_v9 = vsel %vm2015_vm15, %v3005_v33, %v2995_v30  ;;  %4564 = vmatmul.mubr.msk.f32.gmra.mrb[50].mxu0 %vm832_vm5, %v3019_v47  ;;  %v3003_v48 = vsel %vm1036_vm8, %v6264_v53, %v2973_v23  ;;  %v3026_v53 = vsub.s32 2, %v5579_v15  ;;  %v3222_v33 = vld [vmem:[%s5513_s1 + $0x18] sm:$0xff] }
 0xac3   : > { %v3014_v18 = vrot.slane %v3008_v9, 7  ;;  %4566 = vmatprep.mubr.msk.f32.mxu0 %vm5262_vm6, %v5263_v5  ;;  %v4772_v23 = vpack.c.bf16 %v3222_v33, %v3221_v14 }
 0xac4   : > { %v3027_v37 = vrot.slane %v6318_v17, %v3026_v53 }
 0xac5   : > { %v2985_v41 = vpop.permute.xlu0 %2984  ;;  %v2997_v36 = vpop.permute.xlu1 %2996  ;;  %v3015_v35 = vsel %vm1181_vm13, %v3013_v38, %v3014_v18  ;;  %v3220_v38 = vld [vmem:[%s5513_s1 + $0x8] sm:$0xff]  ;;  %s6612_s1 = sld [smem:[#allocation17_spill]] (!%p4078_p4) }
 0xac6   : > { %v3006_v27 = vsel %vm2011_vm14, %v3003_v48, %v2985_v41  ;;  %4567 = vmatmul.mubr.msk.f32.gmra.mrb[52].mxu0 %vm832_vm5, %v3015_v35  ;;  %v4769_v12 = vpack.c.bf16 %v3220_v38, %v3219_v31 }
 0xac7   : > { %v3009_v49 = vsel %vm2015_vm15, %v3006_v27, %v2997_v36  ;;  %4569 = vmatprep.mubr.msk.f32.mxu0 %vm5262_vm6, %v5263_v5 }
 0xac8   : > { %v3016_v54 = vrot.slane %v3009_v49, 7  ;;  %4770 = vmatpush3.bf16.msra.mxu1 %v4769_v12 }
 0xac9   : > { %4771 = vmatprep.subr.bf16.mxu1 %v5261_v2 }
 0xaca   : > { %v3017_v46 = vsel %vm1181_vm13, %v3014_v18, %v3016_v54 }
 0xacb   : > { %4570 = vmatmul.mubr.msk.f32.gmra.mrb[54].mxu0 %vm832_vm5, %v3017_v46 }
 0xacc   : > { %4627 = vmatprep.mubr.msk.f32.mxu0 %vm5262_vm6, %v5263_v5  ;;  %4773 = vmatpush3.bf16.msra.mxu1 %v4772_v23 }
 0xb61   : > { %v3107_v50 = vpop.f32.mrb[46].mxu0 }
 0xb62   : > { %v3108_v51 = vadd.f32 %v3107_v50, %v3027_v37  ;;  %v4559_v10 = vpop.f32.mrb[47].mxu0 }
 0xb63   : > { %v3381_v10 = vld [vmem:[%s5523_s24 + $0x8] sm:$0xff] }
 0xb64   : > { %v6321_v57 = vadd.f32 %v5109_v45, %v3108_v51  ;;  %v3380_v51 = vld [vmem:[%s5523_s24] sm:$0xff] }
 0xb65   : > { %v3112_v21 = vpop.f32.mrb[48].mxu0  ;;  %v4775_v45 = vpack.c.bf16 %v3381_v10, %v3380_v51  ;;  %v3391_v51 = vld [vmem:[%s5523_s24 + $0x58] sm:$0xff] }
 0xb66   : > { %v3113_v20 = vadd.f32 %v3112_v21, %v3027_v37  ;;  %v4562_v56 = vpop.f32.mrb[49].mxu0  ;;  %v3136_v19 = vsel %vm832_vm5, %v6321_v57, 0.0 }
 0xb67   : > { %3137 = vadd.xlane.f32.xlu0 %v3136_v19  ;;  %4776 = vmatpush3.bf16.msra.mxu0 %v4775_v45  ;;  %v3392_v45 = vld [vmem:[%s5523_s24 + $0x60] sm:$0xff] }
 0xb68   : > { %v6325_v39 = vadd.f32 %v5110_v8, %v3113_v20  ;;  %4777 = vmatprep.subr.bf16.mxu0 %v5261_v2 }
 0xb6a   : > { %v3139_v22 = vsel %vm832_vm5, %v6325_v39, 0.0 }
 0xb6b   : > { %3140 = vadd.xlane.f32.xlu1 %v3139_v22 }
 0xb95   : > { %v3117_v29 = vpop.f32.mrb[50].mxu0 }
 0xb96   : > { %v3118_v40 = vadd.f32 %v3117_v29, %v3027_v37  ;;  %v4565_v52 = vpop.f32.mrb[51].mxu0  ;;  %v3203_v29 = vsub.s32 3, %v5579_v15 }
 0xb98   : > { %v6329_v44 = vadd.f32 %v5111_v58, %v3118_v40  ;;  %v3212_v40 = vsub.s32 4, %v5579_v15  ;;  %v3204_v52 = vrot.slane %v6318_v17, %v3203_v29 }
 0xb99   : > { %v3122_v59 = vpop.f32.mrb[52].mxu0 }
 0xb9a   : > { %v3123_v1 = vadd.f32 %v3122_v59, %v3027_v37  ;;  %v4568_v16 = vpop.f32.mrb[53].mxu0  ;;  %v3142_v32 = vsel %vm832_vm5, %v6329_v44, 0.0  ;;  %v3213_v59 = vrot.slane %v6318_v17, %v3212_v40 }
 0xb9b   : > { %3143 = vadd.xlane.f32.xlu0 %v3142_v32 }
 0xb9c   : > { %v6333_v55 = vadd.f32 %v5112_v60, %v3123_v1 }
 0xb9e   : > { %v3127_v26 = vpop.f32.mrb[54].mxu0  ;;  %v3145_v28 = vsel %vm832_vm5, %v6333_v55, 0.0 }
 0xb9f   : > { %v3128_v4 = vadd.f32 %v3127_v26, %v3027_v37  ;;  %3146 = vadd.xlane.f32.xlu0 %v3145_v28  ;;  %v4571_v34 = vpop.f32.mrb[55].mxu0 }
 0xba1   : > { %v6337_v7 = vadd.f32 %v5113_v43, %v3128_v4 }
 0xba3   : > { %v3148_v61 = vsel %vm845_vm7, %v6337_v7, 0.0 }
 0xba4   : > { %3149 = vadd.xlane.f32.xlu0 %v3148_v61 }
 0xbf4   : > { %v3138_v25 = vpop.xlane.xlu0 %3137 }
 0xbf5   : > { %v3151_v62 = vmul.f32 0.03125, %v3138_v25 }
 0xbf7   : > { %v3156_v3 = vsub.f32 %v6321_v57, %v3151_v62 }
 0xbf8   : > { %v3141_v11 = vpop.xlane.xlu1 %3140 }
 0xbf9   : > { %v3152_v42 = vmul.f32 0.03125, %v3141_v11  ;;  %v3161_v6 = vmul.f32 %v3156_v3, %v3156_v3 }
 0xbfb   : > { %v3157_v0 = vsub.f32 %v6325_v39, %v3152_v42  ;;  %v3166_v24 = vsel %vm832_vm5, %v3161_v6, 0.0 }
 0xbfc   : > { %3167 = vadd.xlane.f32.xlu1 %v3166_v24 }
 0xbfd   : > { %v3162_v13 = vmul.f32 %v3157_v0, %v3157_v0 }
 0xbff   : > { %v3169_v63 = vsel %vm832_vm5, %v3162_v13, 0.0 }
 0xc00   : > { %3170 = vadd.xlane.f32.xlu0 %v3169_v63 }
 0xc28   : > { %v3144_v30 = vpop.xlane.xlu0 %3143 }
 0xc29   : > { %v3153_v47 = vmul.f32 0.03125, %v3144_v30 }
 0xc2b   : > { %v3158_v9 = vsub.f32 %v6329_v44, %v3153_v47 }
 0xc2c   : > { %v3147_v18 = vpop.xlane.xlu0 %3146 }
 0xc2d   : > { %v3154_v48 = vmul.f32 0.03125, %v3147_v18  ;;  %v3163_v41 = vmul.f32 %v3158_v9, %v3158_v9  ;;  %v3383_v18 = vld [vmem:[%s5523_s24 + $0x18] sm:$0xff] }
 0xc2f   : > { %v3159_v36 = vsub.f32 %v6333_v55, %v3154_v48  ;;  %v3172_v35 = vsel %vm832_vm5, %v3163_v41, 0.0  ;;  %v3384_v41 = vld [vmem:[%s5523_s24 + $0x20] sm:$0xff] }
 0xc30   : > { %3173 = vadd.xlane.f32.xlu1 %v3172_v35 }
 0xc31   : > { %v3150_v27 = vpop.xlane.xlu0 %3149  ;;  %v3164_v49 = vmul.f32 %v3159_v36, %v3159_v36 }
 0xc32   : > { %v3155_v54 = vmul.f32 0.03125, %v3150_v27  ;;  %v3386_v27 = vld [vmem:[%s5523_s24 + $0x30] sm:$0xff] }
 0xc33   : > { %v3175_v46 = vsel %vm832_vm5, %v3164_v49, 0.0  ;;  %v3387_v49 = vld [vmem:[%s5523_s24 + $0x38] sm:$0xff] }
 0xc34   : > { %v3160_v53 = vsub.f32 %v6337_v7, %v3155_v54  ;;  %3176 = vadd.xlane.f32.xlu0 %v3175_v46  ;;  %v4784_v54 = vpack.c.bf16 %v3387_v49, %v3386_v27  ;;  %v3388_v46 = vld [vmem:[%s5523_s24 + $0x40] sm:$0xff] }
 0xc36   : > { %v3165_v37 = vmul.f32 %v3160_v53, %v3160_v53 }
 0xc38   : > { %v3178_v50 = vsel %vm845_vm7, %v3165_v37, 0.0 }
 0xc39   : > { %3179 = vadd.xlane.f32.xlu1 %v3178_v50  ;;  %v3390_v50 = vld [vmem:[%s5523_s24 + $0x50] sm:$0xff] }
 0xc3a   : > { %v4790_v10 = vpack.c.bf16 %v3391_v51, %v3390_v50 }
 0xc89   : > { %v3168_v21 = vpop.xlane.xlu1 %3167 }
 0xc8a   : > { %v3181_v20 = vmul.f32 0.03125, %v3168_v21  ;;  %v3393_v21 = vld [vmem:[%s5523_s24 + $0x68] sm:$0xff] }
 0xc8c   : > { %v3186_v56 = vadd.f32 1e-05, %v3181_v20  ;;  %v4793_v20 = vpack.c.bf16 %v3393_v21, %v3392_v45 }
 0xc8d   : > { %v3171_v19 = vpop.xlane.xlu0 %3170 }
 0xc8e   : > { %5088 = vrsqrt.f32 %v3186_v56  ;;  %v3182_v8 = vmul.f32 0.03125, %v3171_v19  ;;  %v3394_v56 = vld [vmem:[%s5523_s24 + $0x70] sm:$0xff]  ;;  %v3395_v19 = vld [vmem:[%s5523_s24 + $0x78] sm:$0xff] }
 0xc90   : > { %v3187_v22 = vadd.f32 1e-05, %v3182_v8  ;;  %v4796_v8 = vpack.c.bf16 %v3395_v19, %v3394_v56 }
 0xc92   : > { %5090 = vrsqrt.f32 %v3187_v22  ;;  %v4072_v22 = vld [vmem:[%s6611_s20] ss:$0 sm:$0xff] }
 0xc98   : > { %v5089_v58 = vpop.eup %5088 }
 0xc99   : > { %v3196_v1 = vmul.f32 %v5089_v58, %v3156_v3 }
 0xc9b   : > { %v3205_v16 = vmul.f32 %v3204_v52, %v3196_v1 }
 0xc9c   : > { %v5091_v32 = vpop.eup %5090 }
 0xc9d   : > { %v3214_v60 = vadd.f32 %v3213_v59, %v3205_v16  ;;  %v3197_v26 = vmul.f32 %v5091_v32, %v3157_v0 }
 0xc9f   : > { %4581 = vmatmul.mubr.msk.f32.vlgmr.msra.gmra.mrb[60].mxu1 %vm832_vm5, %v3214_v60  ;;  %v3206_v28 = vmul.f32 %v3204_v52, %v3197_v26 }
 0xca0   : > { %4583 = vmatprep.mubr.msk.f32.mxu1 %vm5262_vm6, %v5263_v5 }
 0xca1   : > { %v3215_v4 = vadd.f32 %v3213_v59, %v3206_v28 }
 0xca3   : > { %4584 = vmatmul.mubr.msk.f32.gmra.mrb[62].mxu1 %vm832_vm5, %v3215_v4 }
 0xca4   : > { %4586 = vmatprep.mubr.msk.f32.mxu1 %vm5262_vm6, %v5263_v5 }
 0xcbd   : > { %v3174_v34 = vpop.xlane.xlu1 %3173 }
 0xcbe   : > { %v3183_v43 = vmul.f32 0.03125, %v3174_v34 }
 0xcc0   : > { %v3188_v61 = vadd.f32 1e-05, %v3183_v43 }
 0xcc1   : > { %v3177_v25 = vpop.xlane.xlu0 %3176 }
 0xcc2   : > { %5092 = vrsqrt.f32 %v3188_v61  ;;  %v3184_v62 = vmul.f32 0.03125, %v3177_v25 }
 0xcc4   : > { %v3189_v3 = vadd.f32 1e-05, %v3184_v62 }
 0xcc6   : > { %5094 = vrsqrt.f32 %v3189_v3  ;;  %v3180_v11 = vpop.xlane.xlu1 %3179 }
 0xcc7   : > { %v3185_v42 = vmul.f32 0.03125, %v3180_v11 }
 0xcc9   : > { %v3190_v6 = vadd.f32 1e-05, %v3185_v42 }
 0xccb   : > { %5096 = vrsqrt.f32 %v3190_v6 }
 0xccc   : > { %v5093_v0 = vpop.eup %5092 }
 0xccd   : > { %v3198_v24 = vmul.f32 %v5093_v0, %v3158_v9  ;;  %v3382_v9 = vld [vmem:[%s5523_s24 + $0x10] sm:$0xff] }
 0xcce   : > { %v4778_v48 = vpack.c.bf16 %v3383_v18, %v3382_v9 }
 0xccf   : > { %v3207_v13 = vmul.f32 %v3204_v52, %v3198_v24 }
 0xcd0   : > { %v5095_v63 = vpop.eup %5094  ;;  %4779 = vmatpush3.bf16.msra.mxu0 %v4778_v48 }
 0xcd1   : > { %v3216_v31 = vadd.f32 %v3213_v59, %v3207_v13  ;;  %v3199_v38 = vmul.f32 %v5095_v63, %v3159_v36  ;;  %4780 = vmatprep.subr.bf16.mxu0 %v5261_v2  ;;  %v3385_v36 = vld [vmem:[%s5523_s24 + $0x28] sm:$0xff] }
 0xcd2   : > { %v4781_v35 = vpack.c.bf16 %v3385_v36, %v3384_v41 }
 0xcd3   : > { %4587 = vmatmul.mubr.msk.f32.gmra.mrb[64].mxu1 %vm832_vm5, %v3216_v31  ;;  %v3208_v12 = vmul.f32 %v3204_v52, %v3199_v38 }
 0xcd4   : > { %4589 = vmatprep.mubr.msk.f32.mxu1 %vm5262_vm6, %v5263_v5  ;;  %4782 = vmatpush3.bf16.msra.mxu0 %v4781_v35 }
 0xcd5   : > { %v5097_v14 = vpop.eup %5096  ;;  %v3217_v33 = vadd.f32 %v3213_v59, %v3208_v12  ;;  %4783 = vmatprep.subr.bf16.mxu0 %v5261_v2 }
 0xcd6   : > { %v3200_v23 = vmul.f32 %v5097_v14, %v3160_v53  ;;  %v3389_v53 = vld [vmem:[%s5523_s24 + $0x48] sm:$0xff]  ;;  %s6613_s24 = sld [smem:[#allocation18_spill]] (!%p4078_p4) }
 0xcd7   : > { %4590 = vmatmul.mubr.msk.f32.gmra.mrb[66].mxu1 %vm832_vm5, %v3217_v33  ;;  %v4787_v37 = vpack.c.bf16 %v3389_v53, %v3388_v46 }
 0xcd8   : > { %4592 = vmatprep.mubr.msk.f32.mxu1 %vm5262_vm6, %v5263_v5  ;;  %v3209_v30 = vmul.f32 %v3204_v52, %v3200_v23  ;;  %4785 = vmatpush3.bf16.msra.mxu0 %v4784_v54 }
 0xcd9   : > { %4786 = vmatprep.subr.bf16.mxu0 %v5261_v2 }
 0xcda   : > { %v3218_v47 = vadd.f32 %v3213_v59, %v3209_v30 }
 0xcdc   : > { %4593 = vmatmul.mubr.msk.f32.gmra.mrb[68].mxu1 %vm832_vm5, %v3218_v47  ;;  %4788 = vmatpush3.bf16.msra.mxu0 %v4787_v37 }
 0xcdd   : > { %4789 = vmatprep.subr.bf16.mxu0 %v5261_v2 }
 0xce0   : > { %4791 = vmatpush3.bf16.msra.mxu0 %v4790_v10 }
 0xce1   : > { %4792 = vmatprep.subr.bf16.mxu0 %v5261_v2 }
 0xce4   : > { %4794 = vmatpush3.bf16.msra.mxu0 %v4793_v20 }
 0xce5   : > { %4795 = vmatprep.subr.bf16.mxu0 %v5261_v2 }
 0xce8   : > { %4797 = vmatpush3.bf16.msra.mxu0 %v4796_v8 }
 0xd72   : > { %v3311_v29 = vpop.f32.mrb[60].mxu1 }
 0xd73   : > { %v3312_v40 = vadd.f32 %v4072_v22, %v3311_v29  ;;  %v4582_v52 = vpop.f32.mrb[61].mxu1 }
 0xd75   : > { %v3340_v58 = vmul.f32 0.044715, %v3312_v40  ;;  %v3335_v62 = vmul.f32 0.5, %v3312_v40 }
 0xd76   : > { %v3316_v59 = vpop.f32.mrb[62].mxu1 }
 0xd77   : > { %v3345_v1 = vmul.f32 %v3340_v58, %v3312_v40  ;;  %v3317_v16 = vadd.f32 %v4072_v22, %v3316_v59  ;;  %v4585_v32 = vpop.f32.mrb[63].mxu1  ;;  %v3493_v59 = vsub.s32 5, %v5579_v15 }
 0xd79   : > { %v3350_v60 = vmul.f32 %v3345_v1, %v3312_v40  ;;  %v3341_v26 = vmul.f32 0.044715, %v3317_v16  ;;  %v3336_v6 = vmul.f32 0.5, %v3317_v16  ;;  %v3494_v1 = vrot.slane %v6318_v17, %v3493_v59 }
 0xd7b   : > { %v3355_v28 = vadd.f32 %v3350_v60, %v3312_v40  ;;  %v3346_v4 = vmul.f32 %v3341_v26, %v3317_v16 }
 0xd7d   : > { %v3360_v34 = vmul.f32 0.7978846, %v3355_v28  ;;  %v3351_v2 = vmul.f32 %v3346_v4, %v3317_v16 }
 0xd7f   : > { %5098 = vtanh.f32 %v3360_v34  ;;  %v3356_v43 = vadd.f32 %v3351_v2, %v3317_v16 }
 0xd81   : > { %v3361_v61 = vmul.f32 0.7978846, %v3356_v43 }
 0xd83   : > { %5100 = vtanh.f32 %v3361_v61 }
 0xd89   : > { %v5099_v25 = vpop.eup %5098 }
 0xd8a   : > { %v3370_v3 = vadd.f32 1.0, %v5099_v25 }
 0xd8c   : > { %v3375_v11 = vmul.f32 %v3370_v3, %v3335_v62 }
 0xd8d   : > { %v5101_v42 = vpop.eup %5100 }
 0xd8e   : > { %4628 = vmatmul.mubr.f32.vlgmr.msra.gmra.mrb[56].mxu0 %v3375_v11  ;;  %v3371_v0 = vadd.f32 1.0, %v5101_v42 }
 0xd8f   : > { %4630 = vmatprep.mubr.msk.f32.mxu0 %vm5262_vm6, %v5263_v5 }
 0xd90   : > { %v3376_v24 = vmul.f32 %v3371_v0, %v3336_v6 }
 0xd92   : > { %4631 = vmatmul.mubr.f32.gmra.mrb[58].mxu0 %v3376_v24 }
 0xd93   : > { %4633 = vmatprep.mubr.msk.f32.mxu0 %vm5262_vm6, %v5263_v5 }
 0xda6   : > { %v3321_v13 = vpop.f32.mrb[64].mxu1 }
 0xda7   : > { %v3322_v63 = vadd.f32 %v4072_v22, %v3321_v13  ;;  %v4588_v31 = vpop.f32.mrb[65].mxu1 }
 0xda9   : > { %v3342_v38 = vmul.f32 0.044715, %v3322_v63  ;;  %v3337_v45 = vmul.f32 0.5, %v3322_v63 }
 0xdaa   : > { %v3326_v12 = vpop.f32.mrb[66].mxu1 }
 0xdab   : > { %v3347_v14 = vmul.f32 %v3342_v38, %v3322_v63  ;;  %v3327_v33 = vadd.f32 %v4072_v22, %v3326_v12  ;;  %v4591_v23 = vpop.f32.mrb[67].mxu1 }
 0xdad   : > { %v3343_v30 = vmul.f32 0.044715, %v3327_v33  ;;  %v3352_v47 = vmul.f32 %v3347_v14, %v3322_v63  ;;  %v3338_v19 = vmul.f32 0.5, %v3327_v33 }
 0xdaf   : > { %v3348_v9 = vmul.f32 %v3343_v30, %v3327_v33  ;;  %v3331_v18 = vpop.f32.mrb[68].mxu1  ;;  %v3357_v48 = vadd.f32 %v3352_v47, %v3322_v63 }
 0xdb0   : > { %v3332_v41 = vadd.f32 %v4072_v22, %v3331_v18  ;;  %v4594_v36 = vpop.f32.mrb[69].mxu1 }
 0xdb1   : > { %v3362_v35 = vmul.f32 0.7978846, %v3357_v48  ;;  %v3353_v27 = vmul.f32 %v3348_v9, %v3327_v33 }
 0xdb2   : > { %v3344_v49 = vmul.f32 0.044715, %v3332_v41  ;;  %v3339_v40 = vmul.f32 0.5, %v3332_v41 }
 0xdb3   : > { %5102 = vtanh.f32 %v3362_v35  ;;  %v3358_v54 = vadd.f32 %v3353_v27, %v3327_v33 }
 0xdb4   : > { %v3349_v46 = vmul.f32 %v3344_v49, %v3332_v41 }
 0xdb5   : > { %v3363_v53 = vmul.f32 0.7978846, %v3358_v54 }
 0xdb6   : > { %v3354_v37 = vmul.f32 %v3349_v46, %v3332_v41 }
 0xdb7   : > { %5104 = vtanh.f32 %v3363_v53 }
 0xdb8   : > { %v3359_v50 = vadd.f32 %v3354_v37, %v3332_v41 }
 0xdba   : > { %v3364_v51 = vmul.f32 0.7978846, %v3359_v50 }
 0xdbc   : > { %5106 = vtanh.f32 %v3364_v51 }
 0xdbd   : > { %v5103_v10 = vpop.eup %5102 }
 0xdbe   : > { %v3372_v21 = vadd.f32 1.0, %v5103_v10  ;;  %v3636_v10 = vld [vmem:[%s6586_s13] sm:$0xff] (!%p4078_p4) }
 0xdc0   : > { %v3377_v20 = vmul.f32 %v3372_v21, %v3337_v45  ;;  %v3637_v45 = vld [vmem:[%s6586_s13 + $0x8] sm:$0xff] (!%p4078_p4)  ;;  %v3638_v21 = vld [vmem:[%s6586_s13 + $0x10] sm:$0xff] (!%p4078_p4) }
 0xdc1   : > { %v5105_v56 = vpop.eup %5104 }
 0xdc2   : > { %4634 = vmatmul.mubr.f32.gmra.mrb[60].mxu0 %v3377_v20  ;;  %v3373_v8 = vadd.f32 1.0, %v5105_v56  ;;  %v5278_v20 = vmov (!%p4078_p4), 0.0|0.0   ;;  %v4799_v56 = vpack.c.bf16 (!%p4078_p4), %v3637_v45, %v3636_v10 }
 0xdc3   : > { %4636 = vmatprep.mubr.msk.f32.mxu0 %vm5262_vm6, %v5263_v5  ;;  %4798 = vmatprep.subr.bf16.mxu0 (!%p4078_p4), %v5278_v20 }
 0xdc4   : > { %v3378_v22 = vmul.f32 %v3373_v8, %v3338_v19  ;;  %v3639_v19 = vld [vmem:[%s6586_s13 + $0x18] sm:$0xff] (!%p4078_p4)  ;;  %v5280_v8 = vmov (!%p4078_p4), 0.0   ;;  %4804 = vmatprep.subr.bf16.mxu1 (!%p4078_p4), %v5278_v20  ;;  %4800 = vmatpush3.bf16.msra.mxu0 (!%p4078_p4), %v4799_v56 }
 0xdc5   : > { %4685 = vmatprep.mubr.msk.f32.mxu1 (!%p4078_p4), %vm5279_vm0, %v5280_v8  ;;  %4801 = vmatprep.subr.bf16.mxu0 (!%p4078_p4), %v5278_v20 }
 0xdc6   : > { %v5107_v29 = vpop.eup %5106  ;;  %4637 = vmatmul.mubr.f32.gmra.mrb[62].mxu0 %v3378_v22  ;;  %v4802_v22 = vpack.c.bf16 (!%p4078_p4), %v3639_v19, %v3638_v21 }
 0xdc7   : > { %4639 = vmatprep.mubr.msk.f32.mxu0 %vm5262_vm6, %v5263_v5  ;;  %v3374_v52 = vadd.f32 1.0, %v5107_v29  ;;  %v3729_v29 = vld [vmem:[%s6588_s15] sm:$0xff] (!%p4078_p4) }
 0xdc8   : > { %4803 = vmatpush3.bf16.msra.mxu0 (!%p4078_p4), %v4802_v22 }
 0xdc9   : > { %v3379_v58 = vmul.f32 %v3374_v52, %v3339_v40  ;;  %v3730_v40 = vld [vmem:[%s6588_s15 + $0x8] sm:$0xff] (!%p4078_p4) }
 0xdca   : > { %v4805_v52 = vpack.c.bf16 (!%p4078_p4), %v3730_v40, %v3729_v29 }
 0xdcb   : > { %4640 = vmatmul.mubr.f32.gmra.mrb[64].mxu0 %v3379_v58 }
 0xdcc   : > { %4650 = vmatprep.mubr.msk.f32.mxu0 (!%p4078_p4), %vm5279_vm0, %v5280_v8  ;;  %4806 = vmatpush3.bf16.msra.mxu1 (!%p4078_p4), %v4805_v52 }
 0xdcd   : > { %4807 = vmatprep.subr.bf16.mxu1 (!%p4078_p4), %v5278_v20 }
 0xe61   : > { %v3462_v16 = vpop.f32.mrb[56].mxu0 }
 0xe62   : > { %v3486_v32 = vadd.f32 %v3462_v16, %v6321_v57  ;;  %v4629_v60 = vpop.f32.mrb[57].mxu0 }
 0xe64   : > { %v3495_v26 = vadd.f32 %v3494_v1, %v3486_v32 }
 0xe65   : > { %v3467_v28 = vpop.f32.mrb[58].mxu0 }
 0xe66   : > { %3500 = vst.msk [vmem:[#allocation2] sm:$0xff] %vm832_vm5, %v3495_v26  ;;  %v3487_v4 = vadd.f32 %v3467_v28, %v6325_v39  ;;  %v4632_v34 = vpop.f32.mrb[59].mxu0  ;;  %v3511_v0 = vsel (!%p4078_p4), %vm832_vm5, %v3495_v26, 0.0 }
 0xe68   : > { %v3496_v5 = vadd.f32 %v3494_v1, %v3487_v4 }
 0xe6a   : > { %3501 = vst.msk [vmem:[#allocation2 + $0x8] sm:$0xff] %vm832_vm5, %v3496_v5 }
 0xe95   : > { %v3472_v2 = vpop.f32.mrb[60].mxu0 }
 0xe96   : > { %v3488_v43 = vadd.f32 %v3472_v2, %v6329_v44  ;;  %v4635_v15 = vpop.f32.mrb[61].mxu0 }
 0xe98   : > { %v3497_v61 = vadd.f32 %v3494_v1, %v3488_v43 }
 0xe99   : > { %v3477_v17 = vpop.f32.mrb[62].mxu0 }
 0xe9a   : > { %3502 = vst.msk [vmem:[#allocation2 + $0x10] sm:$0xff] %vm832_vm5, %v3497_v61  ;;  %v3489_v57 = vadd.f32 %v3477_v17, %v6333_v55  ;;  %v4638_v25 = vpop.f32.mrb[63].mxu0  ;;  %v3517_v44 = vsel (!%p4078_p4), %vm832_vm5, %v3497_v61, 0.0 }
 0xe9b   : > { %3518 = vadd.xlane.f32.xlu0 (!%p4078_p4), %v3517_v44 }
 0xe9c   : > { %v3498_v62 = vadd.f32 %v3494_v1, %v3489_v57  ;;  %v4079_v57 = vld [vmem:[%s6584_s11] ss:$0 sm:$0xff] (!%p4078_p4) }
 0xe9d   : > { %3508 = sbr.rel (%p4078_p4) target bundleno = 4539 (0x11bb), region = 108 }
 0xe9e   : > { %3503 = vst.msk [vmem:[#allocation2 + $0x18] sm:$0xff] %vm832_vm5, %v3498_v62  ;;  %v3482_v3 = vpop.f32.mrb[64].mxu0  ;;  %v3520_v55 = vsel (!%p4078_p4), %vm832_vm5, %v3498_v62, 0.0 }
 0xe9f   : > { %v3490_v39 = vadd.f32 %v3482_v3, %v6337_v7  ;;  %v4641_v11 = vpop.f32.mrb[65].mxu0  ;;  %3521 = vadd.xlane.f32.xlu0 (!%p4078_p4), %v3520_v55  ;;  %v3514_v7 = vsel (!%p4078_p4), %vm832_vm5, %v3496_v5, 0.0 }
 0xea1   : > { %v3499_v42 = vadd.f32 %v3494_v1, %v3490_v39  ;;  %v4080_v39 = vld [vmem:[%s6585_s12] ss:$0 sm:$0xff] (!%p4078_p4) }
 0xea3   : > { %3504 = vst.msk [vmem:[#allocation2 + $0x20] sm:$0x3] %vm845_vm7, %v3499_v42  ;;  %v3523_v6 = vsel (!%p4078_p4), %vm845_vm7, %v3499_v42, 0.0  ;;  %3515 = vadd.xlane.f32.xlu0 (!%p4078_p4), %v3514_v7 }
 0xea4   : > { %3524 = vadd.xlane.f32.xlu1 %v3523_v6 }
 0xea8   : > { %3512 = vadd.xlane.f32.xlu1 %v3511_v0 }
 0xf28   : > { %v3519_v24 = vpop.xlane.xlu0 %3518 }
 0xf29   : > { %v3528_v63 = vmul.f32 0.03125, %v3519_v24 }
 0xf2b   : > { %v6427_v38 = vsub.f32 %v3497_v61, %v3528_v63 }
 0xf2c   : > { %v3522_v14 = vpop.xlane.xlu0 %3521 }
 0xf2d   : > { %v3529_v23 = vmul.f32 0.03125, %v3522_v14  ;;  %v3538_v30 = vmul.f32 %v6427_v38, %v6427_v38 }
 0xf2f   : > { %v6435_v18 = vsub.f32 %v3498_v62, %v3529_v23  ;;  %v3547_v48 = vsel %vm832_vm5, %v3538_v30, 0.0 }
 0xf30   : > { %v3516_v36 = vpop.xlane.xlu0 %3515  ;;  %3548 = vadd.xlane.f32.xlu1 %v3547_v48 }
 0xf31   : > { %v3525_v13 = vpop.xlane.xlu1 %3524  ;;  %v3527_v35 = vmul.f32 0.03125, %v3516_v36  ;;  %v3539_v27 = vmul.f32 %v6435_v18, %v6435_v18 }
 0xf32   : > { %v3530_v31 = vmul.f32 0.03125, %v3525_v13 }
 0xf33   : > { %v6445_v46 = vsub.f32 %v3496_v5, %v3527_v35  ;;  %v3550_v53 = vsel %vm832_vm5, %v3539_v27, 0.0 }
 0xf34   : > { %v6429_v12 = vsub.f32 %v3499_v42, %v3530_v31  ;;  %3551 = vadd.xlane.f32.xlu0 %v3550_v53 }
 0xf35   : > { %v3513_v33 = vpop.xlane.xlu1 %3512  ;;  %v3537_v37 = vmul.f32 %v6445_v46, %v6445_v46 }
 0xf36   : > { %v3526_v47 = vmul.f32 0.03125, %v3513_v33  ;;  %v3540_v9 = vmul.f32 %v6429_v12, %v6429_v12 }
 0xf37   : > { %v3544_v51 = vsel %vm832_vm5, %v3537_v37, 0.0 }
 0xf38   : > { %v6438_v41 = vsub.f32 %v3495_v26, %v3526_v47  ;;  %v3553_v49 = vsel %vm845_vm7, %v3540_v9, 0.0 }
 0xf39   : > { %3554 = vadd.xlane.f32.xlu1 %v3553_v49 }
 0xf3a   : > { %v3536_v54 = vmul.f32 %v6438_v41, %v6438_v41 }
 0xf3c   : > { %v3541_v50 = vsel %vm832_vm5, %v3536_v54, 0.0 }
 0xf3d   : > { %3545 = vadd.xlane.f32.xlu1 %v3544_v51  ;;  %3542 = vadd.xlane.f32.xlu0 %v3541_v50 }
 0xfbd   : > { %v3549_v58 = vpop.xlane.xlu1 %3548 }
 0xfbe   : > { %v3558_v59 = vmul.f32 0.03125, %v3549_v58 }
 0xfc0   : > { %v3563_v1 = vadd.f32 1e-05, %v3558_v59 }
 0xfc1   : > { %v3552_v16 = vpop.xlane.xlu0 %3551 }
 0xfc2   : > { %5114 = vrsqrt.f32 %v3563_v1  ;;  %v3559_v60 = vmul.f32 0.03125, %v3552_v16 }
 0xfc4   : > { %v3564_v28 = vadd.f32 1e-05, %v3559_v60  ;;  %v3732_v60 = vld [vmem:[%s6588_s15 + $0x18] sm:$0xff] }
 0xfc6   : > { %v3555_v32 = vpop.xlane.xlu1 %3554  ;;  %5116 = vrsqrt.f32 %v3564_v28  ;;  %v3733_v28 = vld [vmem:[%s6588_s15 + $0x20] sm:$0xff] }
 0xfc7   : > { %v3560_v26 = vmul.f32 0.03125, %v3555_v32  ;;  %v3731_v32 = vld [vmem:[%s6588_s15 + $0x10] sm:$0xff] }
 0xfc9   : > { %v3565_v4 = vadd.f32 1e-05, %v3560_v26  ;;  %v4808_v26 = vpack.c.bf16 %v3732_v60, %v3731_v32 }
 0xfca   : > { %v3543_v34 = vpop.xlane.xlu0 %3542  ;;  %v3546_v5 = vpop.xlane.xlu1 %3545 }
 0xfcb   : > { %v3556_v2 = vmul.f32 0.03125, %v3543_v34  ;;  %v3557_v43 = vmul.f32 0.03125, %v3546_v5  ;;  %5118 = vrsqrt.f32 %v3565_v4  ;;  %4809 = vmatpush3.bf16.msra.mxu1 %v4808_v26  ;;  %v3734_v4 = vld [vmem:[%s6588_s15 + $0x28] sm:$0xff]  ;;  %v3735_v5 = vld [vmem:[%s6588_s15 + $0x30] sm:$0xff] }
 0xfcc   : > { %v5115_v17 = vpop.eup %5114  ;;  %4810 = vmatprep.subr.bf16.mxu1 %v5278_v20  ;;  %v4811_v34 = vpack.c.bf16 %v3734_v4, %v3733_v28 }
 0xfcd   : > { %v3561_v15 = vadd.f32 1e-05, %v3556_v2  ;;  %v3562_v61 = vadd.f32 1e-05, %v3557_v43  ;;  %v3573_v25 = vmul.f32 %v5115_v17, %v6427_v38  ;;  %v3736_v2 = vld [vmem:[%s6588_s15 + $0x38] sm:$0xff] }
 0xfce   : > { %v4814_v43 = vpack.c.bf16 %v3736_v2, %v3735_v5 }
 0xfcf   : > { %5120 = vrsqrt.f32 %v3561_v15  ;;  %v3584_v62 = vmul.f32 %v4079_v57, %v3573_v25  ;;  %4812 = vmatpush3.bf16.msra.mxu1 %v4811_v34  ;;  %v3737_v15 = vld [vmem:[%s6588_s15 + $0x40] sm:$0xff]  ;;  %v3740_v25 = vld [vmem:[%s6588_s15 + $0x58] sm:$0xff] }
 0xfd0   : > { %5122 = vrsqrt.f32 %v3562_v61  ;;  %v5117_v3 = vpop.eup %5116  ;;  %4813 = vmatprep.subr.bf16.mxu1 %v5278_v20  ;;  %v3738_v61 = vld [vmem:[%s6588_s15 + $0x48] sm:$0xff] }
 0xfd1   : > { %v3574_v42 = vmul.f32 %v5117_v3, %v6435_v18  ;;  %v3595_v55 = vadd.f32 %v4080_v39, %v3584_v62  ;;  %v4817_v17 = vpack.c.bf16 %v3738_v61, %v3737_v15  ;;  %v3741_v3 = vld [vmem:[%s6588_s15 + $0x60] sm:$0xff] }
 0xfd3   : > { %v3585_v6 = vmul.f32 %v4079_v57, %v3574_v42  ;;  %v3615_v33 = vrot.slane %v3595_v55, 1  ;;  %v3602_v53 = vsel %vm3601_vm1, %v3595_v55, 0.0  ;;  %4815 = vmatpush3.bf16.msra.mxu1 %v4814_v43  ;;  %v3743_v42 = vld [vmem:[%s6588_s15 + $0x70] sm:$0xff]  ;;  %v4081_v55 = vld [vmem:[%s6612_s1] ss:$0 sm:$0xff] }
 0xfd4   : > { %4816 = vmatprep.subr.bf16.mxu1 %v5278_v20 }
 0xfd5   : > { %v5119_v11 = vpop.eup %5118  ;;  %v3596_v63 = vadd.f32 %v4080_v39, %v3585_v6 }
 0xfd6   : > { %v3575_v44 = vmul.f32 %v5119_v11, %v6429_v12 }
 0xfd7   : > { %v3616_v23 = vrot.slane %v3596_v63, 1  ;;  %4818 = vmatpush3.bf16.msra.mxu1 %v4817_v17 }
 0xfd8   : > { %v3586_v7 = vmul.f32 %v4079_v57, %v3575_v44  ;;  %4819 = vmatprep.subr.bf16.mxu1 %v5278_v20  ;;  %v3744_v44 = vld [vmem:[%s6588_s15 + $0x78] sm:$0xff] }
 0xfd9   : > { %v5121_v0 = vpop.eup %5120  ;;  %v3617_v18 = vsel %vm2021_vm12, %v3615_v33, %v3616_v23  ;;  %v4826_v6 = vpack.c.bf16 %v3744_v44, %v3743_v42 }
 0xfda   : > { %v5123_v24 = vpop.eup %5122  ;;  %v3571_v13 = vmul.f32 %v5121_v0, %v6438_v41  ;;  %v3597_v38 = vadd.f32 %v4080_v39, %v3586_v7  ;;  %v3623_v36 = vsel %vm832_vm5, %v3617_v18, 0.0 }
 0xfdb   : > { %v3572_v31 = vmul.f32 %v5123_v24, %v6445_v46 }
 0xfdc   : > { %v3582_v14 = vmul.f32 %v4079_v57, %v3571_v13  ;;  %v3618_v47 = vrot.slane %v3597_v38, 1 }
 0xfdd   : > { %v3583_v30 = vmul.f32 %v4079_v57, %v3572_v31  ;;  %v3739_v57 = vld [vmem:[%s6588_s15 + $0x50] sm:$0xff] }
 0xfde   : > { %v3593_v9 = vadd.f32 %v4080_v39, %v3582_v14  ;;  %v3619_v48 = vsel %vm2021_vm12, %v3616_v23, %v3618_v47  ;;  %v3626_v46 = vsel %vm3601_vm1, %v3618_v47, 0.0  ;;  %v4820_v62 = vpack.c.bf16 %v3740_v25, %v3739_v57 }
 0xfdf   : > { %v3594_v12 = vadd.f32 %v4080_v39, %v3583_v30  ;;  %v3624_v41 = vsel %vm832_vm5, %v3619_v48, 0.0  ;;  %v3742_v39 = vld [vmem:[%s6588_s15 + $0x68] sm:$0xff] }
 0xfe0   : > { %v3598_v35 = vsel %vm832_vm5, %v3593_v9, 0.0  ;;  %v3625_v49 = vadd.f32 %v3624_v41, %v3623_v36  ;;  %4821 = vmatpush3.bf16.msra.mxu1 %v4820_v62  ;;  %v4823_v11 = vpack.c.bf16 %v3742_v39, %v3741_v3 }
 0xfe1   : > { %v3599_v27 = vsel %vm832_vm5, %v3594_v12, 0.0  ;;  %4822 = vmatprep.subr.bf16.mxu1 %v5278_v20 }
 0xfe2   : > { %v3600_v54 = vadd.f32 %v3599_v27, %v3598_v35  ;;  %v3627_v37 = vadd.f32 %v3626_v46, %v3625_v49 }
 0xfe4   : > { %v3603_v50 = vadd.f32 %v3602_v53, %v3600_v54  ;;  %v3628_v51 = vrot.slane %v3627_v37, 4  ;;  %4824 = vmatpush3.bf16.msra.mxu1 %v4823_v11 }
 0xfe5   : > { %4825 = vmatprep.subr.bf16.mxu1 %v5278_v20  ;;  %v4083_v20 = vld [vmem:[%s6613_s24] ss:$0 sm:$0xff] }
 0xfe6   : > { %v3604_v10 = vrot.slane %v3603_v50, 4  ;;  %v3629_v45 = vadd.f32 %v3628_v51, %v3627_v37 }
 0xfe8   : > { %v3605_v21 = vadd.f32 %v3604_v10, %v3603_v50  ;;  %v3630_v56 = vrot.slane %v3629_v45, 2  ;;  %4827 = vmatpush3.bf16.msra.mxu1 %v4826_v6 }
 0xfea   : > { %v3606_v19 = vrot.slane %v3605_v21, 2  ;;  %v3631_v8 = vadd.f32 %v3630_v56, %v3629_v45 }
 0xfec   : > { %v3607_v22 = vadd.f32 %v3606_v19, %v3605_v21  ;;  %v3632_v29 = vrot.slane %v3631_v8, 1 }
 0xfee   : > { %v3608_v40 = vrot.slane %v3607_v22, 1  ;;  %v3633_v52 = vadd.f32 %v3632_v29, %v3631_v8 }
 0xff0   : > { %v3609_v58 = vadd.f32 %v3608_v40, %v3607_v22  ;;  %v3634_v59 = vmul.f32 0.05882353, %v3633_v52 }
 0xff2   : > { %v3611_v1 = vmul.f32 0.05882353, %v3609_v58 }
 0xff4   : > { %v3635_v16 = vsel %vm1181_vm13, %v3611_v1, %v3634_v59 }
 0xff5   : > { %4651 = vmatmul.mubr.msk.f32.vlgmr.msra.gmra.mrb[0].mxu0 %vm832_vm5, %v3635_v16 }
0x10c8   : > { %v3716_v0 = vpop.f32.mrb[0].mxu0 }
0x10c9   : > { %v3717_v7 = vadd.f32 %v4081_v55, %v3716_v0  ;;  %v4652_v24 = vpop.f32.mrb[1].mxu0 }
0x10cb   : > { %v3721_v13 = vmul.f32 0.044715, %v3717_v7  ;;  %v3720_v23 = vmul.f32 0.5, %v3717_v7 }
0x10cd   : > { %v3722_v63 = vmul.f32 %v3721_v13, %v3717_v7 }
0x10cf   : > { %v3723_v31 = vmul.f32 %v3722_v63, %v3717_v7 }
0x10d1   : > { %v3724_v38 = vadd.f32 %v3723_v31, %v3717_v7 }
0x10d3   : > { %v3725_v14 = vmul.f32 0.7978846, %v3724_v38 }
0x10d5   : > { %5124 = vtanh.f32 %v3725_v14 }
0x10df   : > { %v5125_v33 = vpop.eup %5124 }
0x10e0   : > { %v3727_v30 = vadd.f32 1.0, %v5125_v33 }
0x10e2   : > { %v3728_v47 = vmul.f32 %v3727_v30, %v3720_v23 }
0x10e4   : > { %4686 = vmatmul.mubr.f32.vlgmr.msra.gmra.mrb[0].mxu1 %v3728_v47 }
0x11b7   : > { %v3818_v9 = vpop.f32.mrb[0].mxu1 }
0x11b8   : > { %v3819_v18 = vadd.f32 %v4083_v20, %v3818_v9  ;;  %v4687_v12 = vpop.f32.mrb[1].mxu1 }
0x11ba   : > { %3822 = vst [vmem:[#allocation9] sm:$0x3] %v3819_v18 }
0x11bb PF: > { %p4866_p6 = scmp.eq.s32.totalorder %s5378_s27, 1  ;;  %s5281_s22 = smov [#allocation9]  }
0x11bc   : > { %s3830_s18 = sshll.u32 %s5281_s22, 4  ;;  %s3831_s18 = int_to_ptr.vmem [resolvable:$true] %s3830_s18 }
0x11bd   : > { %s5210_s19 = scalar_lea.vmem %s3831_s18, 32  ;;  %p5217_p5 = scmp.lt.s32.totalorder %s3831_s18, %s3831_s18 }
0x11be   : > { %p5211_p13 = scmp.ne.s32.totalorder %s3831_s18, %s5210_s19  ;;  %p5218_p7 = scmp.lt.s32.totalorder %s5210_s19, %s5210_s19 }
0x11c0   : > { %p5212_p0 = pnand %p5211_p13, %p4866_p6  ;;  %p5219_p9 = por %p5218_p7, %p5217_p5 }
0x11c2   : > { %p5213_p1 = pneg %p5212_p0 }
0x11c4   : > { %p5220_p2 = pnand %p5219_p9, %p5213_p1 }
0x11c6   : > { %5223 = shalt.err (!%p5220_p2)
}
0x11c7   : > { %s6614_s2 = sld [smem:[#allocation19_spill]] }
0x11cd   : > { %s5224_s28 = scalar_lea.hbm %s6614_s2, 32 }
0x11ce   : > { %p5225_p10 = scmp.ne.s32.totalorder %s6614_s2, %s5224_s28  ;;  %p5230_p8 = scmp.lt.u32.totalorder %s5224_s28, %s6614_s2 }
0x11d0   : > { %p5226_p11 = pnand %p5225_p10, %p4866_p6 }
0x11d2   : > { %p5227_p12 = pneg %p5226_p11 }
0x11d4   : > { %p5232_p3 = pnand %p5230_p8, %p5227_p12 }
0x11d6   : > { %5235 = shalt.err (!%p5232_p3)
}
0x11d7   : > { %4847 = dma.vmem_to_hbm [thread:$0]  (%p4866_p6), %s3831_s18, 32, %s6614_s2, [#allocation5]  }
0x11d8   : > { %5249 = dma.done.wait (%p4866_p6), [#allocation5], 32  }
0x11d9   : > { %5251 = vsyncadd (%p4866_p6), [#allocation5], 4294967264 }
0x11da PF: > { %s6615_s20 = sld [smem:[#allocation13_spill]] }
0x11e0   : > { %s30_s24 = sadd.s32 1, %s6615_s20  }
0x11e1   : > { %p27_p4 = scmp.ge.s32.totalorder %s30_s24, 4  }
0x11e3   :  { %29 = sbr.rel (!%p27_p4) target bundleno = 10 (0xa), region = 151 }
0x11ea   :  { %3843 = vsyncpa [#allocation4], 1 }
0x11eb   :  { %3845 = vsyncpa [#allocation4 + $0x1], 1 }
0x11ec   :  { %3846 = vsyncpa [#allocation7], 1 }
0x11ed   :  { %3847 = vsyncpa [#allocation5], 1 }
0x11ee   :  { %3849 = vsyncpa [#allocation5 + $0x1], 1 }

</bundles_post_ra>
